<compile_context>
chip_gen: v7x
topology: tpu7x:2x2x1
jax: 0.10.0
libtpu: 0.0.40
codegen_flags: <defaults>
</compile_context>

<pallas_src>
import jax
import jax.numpy as jnp
from jax.experimental import pallas as pl
from jax.experimental.pallas import tpu as pltpu


def _lovasz_hinge_kernel(x_row_ref, y_row_ref, x_col_ref, y_col_ref, rhs_ref,
                         out_ref):
    t = pl.program_id(1)
    TI = x_col_ref.shape[1]
    N = x_row_ref.shape[2]

    x_row = x_row_ref[0]              # (1, N)  logits (row layout)
    y_row = y_row_ref[0]              # (1, N)  labels (row layout)
    x_col = x_col_ref[0]              # (TI, 1) logits for this i-tile
    gt_col = y_col_ref[0]             # (TI, 1) labels for this i-tile

    # Hinge errors, f32 (keep comparisons in f32; no bf16 on the error values).
    e_j = 1.0 - x_row * (2.0 * y_row - 1.0)      # (1, N)   error of pixel j
    e_i = 1.0 - x_col * (2.0 * gt_col - 1.0)     # (TI, 1)  error of pixel i

    # j sorts strictly before i in descending-error order
    # (stable tie-break by original index; loss is tie-order invariant).
    i_idx = jax.lax.broadcasted_iota(jnp.int32, (TI, N), 0) + t * TI
    j_idx = jax.lax.broadcasted_iota(jnp.int32, (TI, N), 1)
    strictly_before = jnp.logical_or(
        e_j > e_i,
        jnp.logical_and(e_j == e_i, j_idx < i_idx),
    ).astype(jnp.bfloat16)                       # (TI, N), exact 0/1

    # One MXU matmul yields both exclusive prefix sums at once:
    #   lane 0 of rhs = gt_j, lane 1 = 1.0, lanes 2..127 = 0.
    pref = jnp.dot(strictly_before, rhs_ref[0],
                   preferred_element_type=jnp.float32)   # (TI, 128)
    cum_gt_excl = pref[:, 0:1]                   # (TI, 1) label mass before i
    pos_excl = pref[:, 1:2]                      # (TI, 1) rank of i (0-based)

    gts = jnp.sum(y_row, keepdims=True)          # (1, 1) total label mass

    cum_gt_incl = cum_gt_excl + gt_col
    pos_incl = pos_excl + 1.0

    # Jaccard at rank r (inclusive) and rank r-1 (exclusive).
    union_incl = gts + (pos_incl - cum_gt_incl)                  # >= 1 always
    jac_incl = 1.0 - (gts - cum_gt_incl) * pl.reciprocal(union_incl,
                                                         approx=False)

    union_excl = gts + (pos_excl - cum_gt_excl)
    union_excl = jnp.where(pos_excl > 0.0, union_excl, 1.0)      # guard rank 0
    jac_excl = 1.0 - (gts - cum_gt_excl) * pl.reciprocal(union_excl,
                                                         approx=False)

    grad = jac_incl - jnp.where(pos_excl > 0.0, jac_excl, 0.0)   # Lovász grad
    tile_loss = jnp.sum(jnp.maximum(e_i, 0.0) * grad, keepdims=True)  # (1, 1)

    @pl.when(t == 0)
    def _init():
        out_ref[...] = jnp.zeros_like(out_ref)

    out_ref[0] = out_ref[0] + tile_loss


def lovasz_hinge_loss(inputs, targets, *, tile_i=256):
    """Pallas implementation of LovaszHingeLoss.forward (per_image=True)."""
    B = inputs.shape[0]
    assert inputs.shape[1] == 1, "module squeezes a singleton channel dim"
    x = inputs.reshape(B, -1).astype(jnp.float32)
    y = targets.reshape(B, -1).astype(jnp.float32)
    N = x.shape[1]

    # Pad pixel count to a multiple of the i-tile (lane-dense layouts).
    # Padded pixels: gt = 0 and logit = -1e9 -> hinge error ~ -1e9, so they
    # sort last, never enter any real pixel's prefix, and relu(error) = 0.
    n_pad = ((N + tile_i - 1) // tile_i) * tile_i
    if n_pad != N:
        x = jnp.pad(x, ((0, 0), (0, n_pad - N)), constant_values=-1e9)
        y = jnp.pad(y, ((0, 0), (0, n_pad - N)), constant_values=0.0)

    # Row and column views (free reshapes) + 128-lane bf16 matmul RHS.
    x_row = x.reshape(B, 1, n_pad)
    y_row = y.reshape(B, 1, n_pad)
    x_col = x.reshape(B, n_pad, 1)
    y_col = y.reshape(B, n_pad, 1)
    rhs = jnp.pad(jnp.stack([y, jnp.ones_like(y)], axis=-1),
                  ((0, 0), (0, 0), (0, 126))).astype(jnp.bfloat16)

    # TODO(synk): for very large N (>~32K pixels) build the RHS in-kernel from
    # the column labels (pl.when(t==0) + VMEM scratch) to cut its HBM traffic.

    n_tiles = n_pad // tile_i
    cost = pl.CostEstimate(
        flops=int(B * (2.0 * n_pad * n_pad * 128 + 10.0 * n_pad * n_pad)),
        transcendentals=int(2 * B * n_pad),
        bytes_accessed=int(4 * B * n_pad * 4 + B * n_pad * 128 * 2 + B * 4),
    )

    out = pl.pallas_call(
        _lovasz_hinge_kernel,
        out_shape=jax.ShapeDtypeStruct((B, 1, 1), jnp.float32),
        grid_spec=pltpu.PrefetchScalarGridSpec(
            num_scalar_prefetch=0,
            grid=(B, n_tiles),
            in_specs=[
                pl.BlockSpec((1, 1, n_pad), lambda b, t: (b, 0, 0)),    # x row
                pl.BlockSpec((1, 1, n_pad), lambda b, t: (b, 0, 0)),    # y row
                pl.BlockSpec((1, tile_i, 1), lambda b, t: (b, t, 0)),   # x col
                pl.BlockSpec((1, tile_i, 1), lambda b, t: (b, t, 0)),   # y col
                pl.BlockSpec((1, n_pad, 128), lambda b, t: (b, 0, 0)),  # rhs
            ],
            out_specs=pl.BlockSpec((1, 1, 1), lambda b, t: (b, 0, 0)),
        ),
        compiler_params=pltpu.CompilerParams(
            dimension_semantics=("parallel", "arbitrary")),
        cost_estimate=cost,
    )(x_row, y_row, x_col, y_col, rhs)

    return jnp.mean(out[:, 0, 0])


def _lovasz_hinge_ref(inputs, targets):
    """Pure-JAX reference (sort-based), mirrors the PyTorch code."""
    B = inputs.shape[0]
    logits = inputs.reshape(B, -1).astype(jnp.float32)
    labels = targets.reshape(B, -1).astype(jnp.float32)

    def per_image(log, lab):
        signs = 2.0 * lab - 1.0
        errors = 1.0 - log * signs
        order = jnp.argsort(-errors)
        errors_sorted = errors[order]
        gt_sorted = lab[order]
        gts = jnp.sum(gt_sorted)
        intersection = gts - jnp.cumsum(gt_sorted)
        union = gts + jnp.cumsum(1.0 - gt_sorted)
        jaccard = 1.0 - intersection / union
        grad = jnp.concatenate([jaccard[:1], jaccard[1:] - jaccard[:-1]])
        return jnp.sum(jnp.maximum(errors_sorted, 0.0) * grad)

    return jnp.mean(jax.vmap(per_image)(logits, labels))


if __name__ == "__main__":
    key = jax.random.PRNGKey(0)
    k1, k2 = jax.random.split(key)
    # B=2, C=1, 24x24 image -> N=576, padded to 768 -> 3 i-tiles of 256
    # (exercises the padding + tiling + accumulation paths).
    B, H, W = 2, 24, 24
    x = jax.random.normal(k1, (B, 1, H, W), dtype=jnp.float32)
    t = jax.random.bernoulli(k2, 0.4, (B, 1, H, W)).astype(jnp.float32)

    loss = jax.block_until_ready(lovasz_hinge_loss(x, t))
    ref = jax.block_until_ready(_lovasz_hinge_ref(x, t))

    assert jnp.isfinite(loss), "non-finite loss"
    assert abs(float(loss) - float(ref)) < 1e-4, (float(loss), float(ref))
    print("KERNEL_OK")
</pallas_src>

<mosaic_0001>
module attributes {stable_mosaic.version = 11 : i64} {
  func.func @_lovasz_hinge_kernel(%arg0: i32, %arg1: i32, %arg2: memref<1x1x768xf32, #tpu.memory_space<vmem>>, %arg3: memref<1x1x768xf32, #tpu.memory_space<vmem>>, %arg4: memref<1x256x1xf32, #tpu.memory_space<vmem>>, %arg5: memref<1x256x1xf32, #tpu.memory_space<vmem>>, %arg6: memref<1x768x128xbf16, #tpu.memory_space<vmem>>, %arg7: memref<1x1x1xf32, #tpu.memory_space<vmem>>) attributes {dimension_semantics = [#tpu.dimension_semantics<parallel>, #tpu.dimension_semantics<arbitrary>], iteration_bounds = array<i64: 2, 3>, scalar_prefetch = 0 : i64, scratch_operands = 0 : i64, tpu.core_type = #tpu.core_type<tc>, window_params = [{transform_indices = @transform_0, window_bounds = array<i64: 1, 1, 768>}, {transform_indices = @transform_1, window_bounds = array<i64: 1, 1, 768>}, {transform_indices = @transform_2, window_bounds = array<i64: 1, 256, 1>}, {transform_indices = @transform_3, window_bounds = array<i64: 1, 256, 1>}, {transform_indices = @transform_4, window_bounds = array<i64: 1, 768, 128>}, {transform_indices = @transform_5, window_bounds = array<i64: 1, 1, 1>}]} {
    %c0 = arith.constant 0 : index
    %c0_0 = arith.constant 0 : index
    %c0_1 = arith.constant 0 : index
    %0 = vector.load %arg2[%c0, %c0_0, %c0_1] : memref<1x1x768xf32, #tpu.memory_space<vmem>>, vector<1x1x768xf32>
    %1 = vector.shape_cast %0 : vector<1x1x768xf32> to vector<1x768xf32>
    %c0_2 = arith.constant 0 : index
    %c0_3 = arith.constant 0 : index
    %c0_4 = arith.constant 0 : index
    %2 = vector.load %arg3[%c0_2, %c0_3, %c0_4] : memref<1x1x768xf32, #tpu.memory_space<vmem>>, vector<1x1x768xf32>
    %3 = vector.shape_cast %2 : vector<1x1x768xf32> to vector<1x768xf32>
    %c0_5 = arith.constant 0 : index
    %c0_6 = arith.constant 0 : index
    %c0_7 = arith.constant 0 : index
    %4 = vector.load %arg4[%c0_5, %c0_6, %c0_7] : memref<1x256x1xf32, #tpu.memory_space<vmem>>, vector<1x256x1xf32>
    %5 = vector.shape_cast %4 : vector<1x256x1xf32> to vector<256x1xf32>
    %c0_8 = arith.constant 0 : index
    %c0_9 = arith.constant 0 : index
    %c0_10 = arith.constant 0 : index
    %6 = vector.load %arg5[%c0_8, %c0_9, %c0_10] : memref<1x256x1xf32, #tpu.memory_space<vmem>>, vector<1x256x1xf32>
    %7 = vector.shape_cast %6 : vector<1x256x1xf32> to vector<256x1xf32>
    %cst = arith.constant 2.000000e+00 : f32
    %8 = vector.broadcast %cst : f32 to vector<1x768xf32>
    %9 = arith.mulf %8, %3 : vector<1x768xf32>
    %cst_11 = arith.constant 1.000000e+00 : f32
    %10 = vector.broadcast %cst_11 : f32 to vector<1x768xf32>
    %11 = arith.subf %9, %10 : vector<1x768xf32>
    %12 = arith.mulf %1, %11 : vector<1x768xf32>
    %cst_12 = arith.constant 1.000000e+00 : f32
    %13 = vector.broadcast %cst_12 : f32 to vector<1x768xf32>
    %14 = arith.subf %13, %12 : vector<1x768xf32>
    %cst_13 = arith.constant 2.000000e+00 : f32
    %15 = vector.broadcast %cst_13 : f32 to vector<256x1xf32>
    %16 = arith.mulf %15, %7 : vector<256x1xf32>
    %cst_14 = arith.constant 1.000000e+00 : f32
    %17 = vector.broadcast %cst_14 : f32 to vector<256x1xf32>
    %18 = arith.subf %16, %17 : vector<256x1xf32>
    %19 = arith.mulf %5, %18 : vector<256x1xf32>
    %cst_15 = arith.constant 1.000000e+00 : f32
    %20 = vector.broadcast %cst_15 : f32 to vector<256x1xf32>
    %21 = arith.subf %20, %19 : vector<256x1xf32>
    %22 = tpu.iota {dimensions = array<i32: 0>} : vector<256x768xi32>
    %c256_i32 = arith.constant 256 : i32
    %23 = arith.muli %arg1, %c256_i32 : i32
    %24 = vector.broadcast %23 : i32 to vector<256x768xi32>
    %25 = arith.addi %22, %24 : vector<256x768xi32>
    %26 = tpu.iota {dimensions = array<i32: 1>} : vector<256x768xi32>
    %27 = vector.broadcast %14 : vector<1x768xf32> to vector<256x768xf32>
    %28 = vector.broadcast %21 : vector<256x1xf32> to vector<256x768xf32>
    %29 = arith.cmpf ogt, %27, %28 : vector<256x768xf32>
    %30 = vector.broadcast %14 : vector<1x768xf32> to vector<256x768xf32>
    %31 = vector.broadcast %21 : vector<256x1xf32> to vector<256x768xf32>
    %32 = arith.cmpf oeq, %30, %31 : vector<256x768xf32>
    %33 = arith.cmpi slt, %26, %25 : vector<256x768xi32>
    %34 = arith.andi %32, %33 : vector<256x768xi1>
    %35 = arith.ori %29, %34 : vector<256x768xi1>
    %36 = arith.extui %35 : vector<256x768xi1> to vector<256x768xi32>
    %37 = arith.sitofp %36 : vector<256x768xi32> to vector<256x768xf32>
    %38 = arith.truncf %37 : vector<256x768xf32> to vector<256x768xbf16>
    %c0_16 = arith.constant 0 : index
    %c0_17 = arith.constant 0 : index
    %c0_18 = arith.constant 0 : index
    %39 = vector.load %arg6[%c0_16, %c0_17, %c0_18] : memref<1x768x128xbf16, #tpu.memory_space<vmem>>, vector<1x768x128xbf16>
    %40 = vector.shape_cast %39 : vector<1x768x128xbf16> to vector<768x128xbf16>
    %cst_19 = arith.constant dense<0.000000e+00> : vector<256x128xf32>
    %41 = tpu.matmul %38, %40, %cst_19 {dimension_numbers = #tpu.dot_dimension_numbers<[1], [0], [0], [1], [0, 0, 1, 1], [], []>} : vector<256x768xbf16>, vector<768x128xbf16>, vector<256x128xf32> -> vector<256x128xf32>
    %42 = vector.extract_strided_slice %41 {offsets = [0, 0], sizes = [256, 1], strides = [1, 1]} : vector<256x128xf32> to vector<256x1xf32>
    %43 = vector.extract_strided_slice %41 {offsets = [0, 1], sizes = [256, 1], strides = [1, 1]} : vector<256x128xf32> to vector<256x1xf32>
    %44 = vector.shape_cast %3 : vector<1x768xf32> to vector<1x1x768xf32>
    %cst_20 = arith.constant dense<0.000000e+00> : vector<1xf32>
    %45 = vector.multi_reduction <add>, %44, %cst_20 [1, 2] : vector<1x1x768xf32> to vector<1xf32>
    %46 = vector.shape_cast %45 : vector<1xf32> to vector<1x1x1xf32>
    %47 = vector.extract %46[0, 0, 0] : f32 from vector<1x1x1xf32>
    %48 = vector.broadcast %47 : f32 to vector<1x1xf32>
    %49 = arith.addf %42, %7 : vector<256x1xf32>
    %cst_21 = arith.constant 1.000000e+00 : f32
    %50 = vector.broadcast %cst_21 : f32 to vector<256x1xf32>
    %51 = arith.addf %43, %50 : vector<256x1xf32>
    %52 = arith.subf %51, %49 : vector<256x1xf32>
    %53 = vector.broadcast %48 : vector<1x1xf32> to vector<256x1xf32>
    %54 = arith.addf %53, %52 : vector<256x1xf32>
    %55 = vector.broadcast %48 : vector<1x1xf32> to vector<256x1xf32>
    %56 = arith.subf %55, %49 : vector<256x1xf32>
    %57 = tpu.reciprocal %54 : vector<256x1xf32> -> vector<256x1xf32>
    %58 = arith.mulf %56, %57 : vector<256x1xf32>
    %cst_22 = arith.constant 1.000000e+00 : f32
    %59 = vector.broadcast %cst_22 : f32 to vector<256x1xf32>
    %60 = arith.subf %59, %58 : vector<256x1xf32>
    %61 = arith.subf %43, %42 : vector<256x1xf32>
    %62 = vector.broadcast %48 : vector<1x1xf32> to vector<256x1xf32>
    %63 = arith.addf %62, %61 : vector<256x1xf32>
    %cst_23 = arith.constant 0.000000e+00 : f32
    %64 = vector.broadcast %cst_23 : f32 to vector<256x1xf32>
    %65 = arith.cmpf ogt, %43, %64 : vector<256x1xf32>
    %cst_24 = arith.constant 1.000000e+00 : f32
    %66 = vector.broadcast %cst_24 : f32 to vector<256x1xf32>
    %67 = arith.select %65, %63, %66 : vector<256x1xi1>, vector<256x1xf32>
    %68 = vector.broadcast %48 : vector<1x1xf32> to vector<256x1xf32>
    %69 = arith.subf %68, %42 : vector<256x1xf32>
    %70 = tpu.reciprocal %67 : vector<256x1xf32> -> vector<256x1xf32>
    %71 = arith.mulf %69, %70 : vector<256x1xf32>
    %cst_25 = arith.constant 1.000000e+00 : f32
    %72 = vector.broadcast %cst_25 : f32 to vector<256x1xf32>
    %73 = arith.subf %72, %71 : vector<256x1xf32>
    %cst_26 = arith.constant 0.000000e+00 : f32
    %74 = vector.broadcast %cst_26 : f32 to vector<256x1xf32>
    %75 = arith.cmpf ogt, %43, %74 : vector<256x1xf32>
    %cst_27 = arith.constant 0.000000e+00 : f32
    %76 = vector.broadcast %cst_27 : f32 to vector<256x1xf32>
    %77 = arith.select %75, %73, %76 : vector<256x1xi1>, vector<256x1xf32>
    %78 = arith.subf %60, %77 : vector<256x1xf32>
    %cst_28 = arith.constant 0.000000e+00 : f32
    %79 = vector.broadcast %cst_28 : f32 to vector<256x1xf32>
    %80 = arith.maximumf %21, %79 : vector<256x1xf32>
    %81 = arith.mulf %80, %78 : vector<256x1xf32>
    %82 = vector.shape_cast %81 : vector<256x1xf32> to vector<1x256x1xf32>
    %cst_29 = arith.constant dense<0.000000e+00> : vector<1xf32>
    %83 = vector.multi_reduction <add>, %82, %cst_29 [1, 2] : vector<1x256x1xf32> to vector<1xf32>
    %84 = vector.shape_cast %83 : vector<1xf32> to vector<1x1x1xf32>
    %85 = vector.extract %84[0, 0, 0] : f32 from vector<1x1x1xf32>
    %86 = vector.broadcast %85 : f32 to vector<1x1xf32>
    %c0_i32 = arith.constant 0 : i32
    %87 = arith.cmpi eq, %arg1, %c0_i32 : i32
    %88 = arith.extui %87 : i1 to i32
    %c0_i32_30 = arith.constant 0 : i32
    %89 = arith.cmpi ne, %88, %c0_i32_30 : i32
    scf.if %89 {
      %cst_37 = arith.constant 0.000000e+00 : f32
      %96 = vector.broadcast %cst_37 : f32 to vector<1x1x1xf32>
      %c0_38 = arith.constant 0 : index
      %c0_39 = arith.constant 0 : index
      %c0_40 = arith.constant 0 : index
      %97 = vector.load %arg7[%c0_38, %c0_39, %c0_40] : memref<1x1x1xf32, #tpu.memory_space<vmem>>, vector<1x1x1xf32>
      tpu.vector_store %arg7[%c0_38, %c0_39, %c0_40], %96 {strides = array<i32>} : memref<1x1x1xf32, #tpu.memory_space<vmem>>, vector<1x1x1xf32>,
    } else {
    }
    %c0_31 = arith.constant 0 : index
    %c0_32 = arith.constant 0 : index
    %c0_33 = arith.constant 0 : index
    %90 = vector.load %arg7[%c0_31, %c0_32, %c0_33] : memref<1x1x1xf32, #tpu.memory_space<vmem>>, vector<1x1x1xf32>
    %91 = vector.shape_cast %90 : vector<1x1x1xf32> to vector<1x1xf32>
    %92 = arith.addf %91, %86 : vector<1x1xf32>
    %c0_34 = arith.constant 0 : index
    %c0_35 = arith.constant 0 : index
    %c0_36 = arith.constant 0 : index
    %93 = vector.load %arg7[%c0_34, %c0_35, %c0_36] : memref<1x1x1xf32, #tpu.memory_space<vmem>>, vector<1x1x1xf32>
    %94 = vector.shape_cast %93 : vector<1x1x1xf32> to vector<1x1xf32>
    %95 = vector.shape_cast %92 : vector<1x1xf32> to vector<1x1x1xf32>
    tpu.vector_store %arg7[%c0_34, %c0_35, %c0_36], %95 {strides = array<i32>} : memref<1x1x1xf32, #tpu.memory_space<vmem>>, vector<1x1x1xf32>,
    return
  }
  func.func @transform_0(%arg0: i32, %arg1: i32) -> (i32, i32, i32) {
    %c0_i32 = arith.constant 0 : i32
    %c0_i32_0 = arith.constant 0 : i32
    %c0_i32_1 = arith.constant 0 : i32
    return %arg0, %c0_i32, %c0_i32_0 : i32, i32, i32
  }
  func.func @transform_1(%arg0: i32, %arg1: i32) -> (i32, i32, i32) {
    %c0_i32 = arith.constant 0 : i32
    %c0_i32_0 = arith.constant 0 : i32
    %c0_i32_1 = arith.constant 0 : i32
    return %arg0, %c0_i32, %c0_i32_0 : i32, i32, i32
  }
  func.func @transform_2(%arg0: i32, %arg1: i32) -> (i32, i32, i32) {
    %c0_i32 = arith.constant 0 : i32
    %c0_i32_0 = arith.constant 0 : i32
    return %arg0, %arg1, %c0_i32 : i32, i32, i32
  }
  func.func @transform_3(%arg0: i32, %arg1: i32) -> (i32, i32, i32) {
    %c0_i32 = arith.constant 0 : i32
    %c0_i32_0 = arith.constant 0 : i32
    return %arg0, %arg1, %c0_i32 : i32, i32, i32
  }
  func.func @transform_4(%arg0: i32, %arg1: i32) -> (i32, i32, i32) {
    %c0_i32 = arith.constant 0 : i32
    %c0_i32_0 = arith.constant 0 : i32
    %c0_i32_1 = arith.constant 0 : i32
    return %arg0, %c0_i32, %c0_i32_0 : i32, i32, i32
  }
  func.func @transform_5(%arg0: i32, %arg1: i32) -> (i32, i32, i32) {
    %c0_i32 = arith.constant 0 : i32
    %c0_i32_0 = arith.constant 0 : i32
    %c0_i32_1 = arith.constant 0 : i32
    return %arg0, %c0_i32, %c0_i32_0 : i32, i32, i32
  }
}

</mosaic_0001>

<bundles_post_ra>
// kernel: tpu_custom_call.1
= control target key start
LH: loop header
LB: loop body
LE: loop exit
PB: predicated region body
PF: predicated region fallthrough
CT: control target
= control target key end

     0   :  { %s5941_s18 = smov 0   ;;  %s5943_s19 = smov 0   ;;  %s9425_s0 = inlined_call_operand.vmem [shape: f32[2,1,768], index: 0, kind: input, shape index: {}]   ;;  %s9426_s1 = inlined_call_operand.vmem [shape: f32[2,1,768], index: 1, kind: input, shape index: {}]   ;;  %s9427_s2 = inlined_call_operand.vmem [shape: f32[2,768,1], index: 2, kind: input, shape index: {}]   ;;  %s9428_s3 = inlined_call_operand.vmem [shape: f32[2,768,1], index: 3, kind: input, shape index: {}]   ;;  %s9429_s4 = inlined_call_operand.vmem [shape: bf16[2,768,128], index: 4, kind: input, shape index: {}]   ;;  %s9430_s5 = inlined_call_operand.vmem [shape: f32[2,1,1], index: 5, kind: output, shape index: {}]  }
   0x1   :  { %s5945_s20 = smov 0   ;;  %s5947_s21 = smov 0  }
   0x2   :  { %s5949_s22 = smov 0  }
   0x3 LB: > { %s24_s23 = sadd.s32 1, %s5896_s20  ;;  %s27_s24 = sadd.s32 1, %s5900_s21  ;;  %s5904_s22 = sphi %s5949_s22, %s15_s22   ;;  %s5900_s21 = sphi %s5947_s21, %s9904_s21   ;;  %s5896_s20 = sphi %s5945_s20, %s9903_s20   ;;  %s5892_s19 = sphi %s5943_s19, %s9902_s19   ;;  %s5888_s18 = sphi %s5941_s18, %s9901_s18  }
   0x4   : > { %p25_p0 = scmp.ge.s32.totalorder %s24_s23, 3  ;;  %p4777_p1 = scmp.ge.s32.totalorder %s5904_s22, 1 }
   0x5   : > { %p251_p2 = scmp.lt.s32.totalorder %s5904_s22, 7 }
   0x6   : > { %s9906_s23 = smov (%p25_p0, %s24_s23), 0  ;;  %s9908_s24 = smov (!%p25_p0, %s27_s24), %s5900_s21 }
   0x7   : > { %p252_p3 = pnand %p4777_p1, %p251_p2  ;;  %p29_p4 = scmp.ge.s32.totalorder %s9908_s24, 2 }
   0x9   : > { %s9910_s24 = smov (%p29_p4, %s9908_s24), 0  ;;  %255 = sbr.rel (%p252_p3) target bundleno = 1581 (0x62d), region = 40 }
  0x10   : > { %p303_p5 = scmp.lt.s32.totalorder %s5892_s19, 1  ;;  %s4778_s25 = sshll.u32 %s5888_s18, 5  ;;  %v5906_v0 = vmov 0  }
  0x11   : > { %5657 = vset.pattern.permute.xlu1 %v5906_v0  ;;  %5656 = vset.pattern.permute.xlu0 %v5906_v0  ;;  %p314_p6 = scmp.lt.s32.totalorder %s4778_s25, 95  ;;  %s5909_s9 = smov 127  }
  0x12   : > { %s9912_s19 = smov (!%p303_p5, %s5892_s19), 1  ;;  %p5249_p7 = scmp.ne.s32.totalorder %s5888_s18, 0 }
  0x13   : > { %s9914_s25 = smov (!%p314_p6, %s4778_s25), 95  ;;  %s5605_s26 = smul.u32 96, %s9912_s19 }
  0x14   : > { %s5981_s29 = scalar_lea.vmem %s9430_s5, %s9912_s19  ;;  %s5606_s30 = smul.u32 384, %s9912_s19 }
  0x15   : > { %s317_s6 = sadd.s32 %s5605_s26, %s9914_s25  ;;  %s5604_s17 = smul.u32 6, %s9912_s19 }
  0x16   : > { %s4779_s7 = sshll.u32 %s317_s6, 3  ;;  %s5987_s10 = scalar_lea.vmem %s9429_s4, %s5606_s30 }
  0x17   : > { %s5992_s13 = scalar_lea.vmem %s9427_s2, %s4779_s7  ;;  %s5997_s16 = scalar_lea.vmem %s9428_s3, %s4779_s7  ;;  %v5658_v1 = vld [vmem:[%s5987_s10 + $0x40] sm:$0xff]  }
  0x18   : > { %v390_v2 = vld [vmem:[%s5997_s16 + $0x80] sm:$0xff]  ;;  %5588 = vmatprep.subr.bf16.mxu1 %v5658_v1  ;;  %5252 = vmatprep.subr.bf16.mxu0 %v5658_v1  ;;  %v391_v7 = vld [vmem:[%s5997_s16 + $0x88] sm:$0xff]  ;;  %v392_v12 = vld [vmem:[%s5997_s16 + $0x90] sm:$0xff]  ;;  %s310_s27 = scalar_lea.vmem %s9426_s1, %s5604_s17  ;;  %s306_s6 = scalar_lea.vmem %s9425_s0, %s5604_s17 }
  0x19   : > { %v426_v3 = vmul.f32 2.0, %v390_v2  ;;  %v374_v4 = vld [vmem:[%s5997_s16] sm:$0xff]  ;;  %v427_v10 = vmul.f32 2.0, %v391_v7  ;;  %v375_v11 = vld [vmem:[%s5997_s16 + $0x8] sm:$0xff]  ;;  %v428_v16 = vmul.f32 2.0, %v392_v12  ;;  %v393_v17 = vld [vmem:[%s5997_s16 + $0x98] sm:$0xff] }
  0x1a   : > { %v358_v5 = vld [vmem:[%s5992_s13 + $0x80] sm:$0xff]  ;;  %v410_v6 = vmul.f32 2.0, %v374_v4  ;;  %v359_v14 = vld [vmem:[%s5992_s13 + $0x88] sm:$0xff]  ;;  %v411_v15 = vmul.f32 2.0, %v375_v11  ;;  %v360_v21 = vld [vmem:[%s5992_s13 + $0x90] sm:$0xff]  ;;  %v429_v22 = vmul.f32 2.0, %v393_v17 }
  0x1b   : > { %v4800_v8 = vadd.f32 -1.0, %v426_v3  ;;  %v342_v9 = vld [vmem:[%s5992_s13] sm:$0xff]  ;;  %v4801_v19 = vadd.f32 -1.0, %v427_v10  ;;  %v343_v20 = vld [vmem:[%s5992_s13 + $0x8] sm:$0xff]  ;;  %v376_v23 = vld [vmem:[%s5997_s16 + $0x10] sm:$0xff]  ;;  %v4802_v26 = vadd.f32 -1.0, %v428_v16 }
  0x1c   : > { %v4784_v13 = vadd.f32 -1.0, %v410_v6  ;;  %v4785_v25 = vadd.f32 -1.0, %v411_v15  ;;  %v361_v29 = vld [vmem:[%s5992_s13 + $0x98] sm:$0xff]  ;;  %v4803_v30 = vadd.f32 -1.0, %v429_v22  ;;  %v412_v31 = vmul.f32 2.0, %v376_v23  ;;  %v344_v36 = vld [vmem:[%s5992_s13 + $0x10] sm:$0xff] }
  0x1d   : > { %v6009_v18 = vmul.f32 %v4800_v8, %v358_v5  ;;  %v6017_v28 = vmul.f32 %v4801_v19, %v359_v14  ;;  %v6023_v34 = vmul.f32 %v4802_v26, %v360_v21  ;;  %v377_v38 = vld [vmem:[%s5997_s16 + $0x18] sm:$0xff]  ;;  %v394_v40 = vld [vmem:[%s5997_s16 + $0xa0] sm:$0xff]  ;;  %v395_v41 = vld [vmem:[%s5997_s16 + $0xa8] sm:$0xff]  ;;  %s4816_s7 = sshll.u32 %s5888_s18, 8  ;;  %s5908_s19 = smov 1  }
  0x1e   : > { %v6014_v24 = vmul.f32 %v4784_v13, %v342_v9  ;;  %v6021_v33 = vmul.f32 %v4785_v25, %v343_v20  ;;  %v4786_v37 = vadd.f32 -1.0, %v412_v31  ;;  %v6032_v39 = vmul.f32 %v4803_v30, %v361_v29  ;;  %v378_v42 = vld [vmem:[%s5997_s16 + $0x20] sm:$0xff]  ;;  %v379_v44 = vld [vmem:[%s5997_s16 + $0x28] sm:$0xff]  ;;  %v345_v48 = vld [vmem:[%s5992_s13 + $0x18] sm:$0xff] }
  0x1f   : > { %9590 = vst [vmem:[#allocation2_spill] sm:$0xff] %v6009_v18  ;;  %v9446_v27 = vsub.f32 1.0, %v6009_v18  ;;  %9592 = vst [vmem:[#allocation4_spill] sm:$0xff] %v6017_v28  ;;  %v9445_v35 = vsub.f32 1.0, %v6017_v28  ;;  %v9444_v45 = vsub.f32 1.0, %v6023_v34  ;;  %v413_v46 = vmul.f32 2.0, %v377_v38 }
  0x20   : > { %9591 = vst [vmem:[#allocation3_spill] sm:$0xff] %v6014_v24  ;;  %v9462_v32 = vsub.f32 1.0, %v6014_v24  ;;  %9593 = vst [vmem:[#allocation5_spill] sm:$0xff] %v6021_v33  ;;  %v9461_v43 = vsub.f32 1.0, %v6021_v33  ;;  %v6042_v47 = vmul.f32 %v4786_v37, %v344_v36  ;;  %v430_v49 = vmul.f32 2.0, %v394_v40  ;;  %v362_v54 = vld [vmem:[%s5992_s13 + $0xa0] sm:$0xff] }
  0x21   : > { %9594 = vst [vmem:[#allocation6_spill] sm:$0xff] %v6023_v34  ;;  %725 = vperm.xlu0 %5656, %v9446_v27   ;;  %9595 = vst [vmem:[#allocation7_spill] sm:$0xff] %v6032_v39  ;;  %v431_v50 = vmul.f32 2.0, %v395_v41  ;;  %v414_v51 = vmul.f32 2.0, %v378_v42  ;;  %v9437_v52 = vsub.f32 1.0, %v6032_v39  ;;  %v4787_v53 = vadd.f32 -1.0, %v413_v46 }
  0x22   : > { %645 = vperm.xlu1 %5657, %v9462_v32   ;;  %9596 = vst [vmem:[#allocation8_spill] sm:$0xff] %v6042_v47  ;;  %v415_v55 = vmul.f32 2.0, %v379_v44  ;;  %v396_v56 = vld [vmem:[%s5997_s16 + $0xb0] sm:$0xff]  ;;  %v4804_v57 = vadd.f32 -1.0, %v430_v49  ;;  %v363_v58 = vld [vmem:[%s5992_s13 + $0xa8] sm:$0xff]  ;;  %v397_v60 = vld [vmem:[%s5997_s16 + $0xb8] sm:$0xff] }
  0x23   : > { %v4805_v59 = vadd.f32 -1.0, %v431_v50  ;;  %v6052_v61 = vmul.f32 %v4787_v53, %v345_v48  ;;  %v4788_v62 = vadd.f32 -1.0, %v414_v51  ;;  %v9460_v63 = vsub.f32 1.0, %v6042_v47  ;;  %v346_v1 = vld [vmem:[%s5992_s13 + $0x20] sm:$0xff]  ;;  %v380_v3 = vld [vmem:[%s5997_s16 + $0x30] sm:$0xff]  ;;  %v347_v8 = vld [vmem:[%s5992_s13 + $0x28] sm:$0xff] }
  0x24   : > { %v6057_v0 = vmul.f32 %v4804_v57, %v362_v54  ;;  %v432_v2 = vmul.f32 2.0, %v396_v56  ;;  %v4789_v6 = vadd.f32 -1.0, %v415_v55  ;;  %v433_v7 = vmul.f32 2.0, %v397_v60  ;;  %v381_v9 = vld [vmem:[%s5997_s16 + $0x38] sm:$0xff]  ;;  %v398_v12 = vld [vmem:[%s5997_s16 + $0xc0] sm:$0xff]  ;;  %v399_v13 = vld [vmem:[%s5997_s16 + $0xc8] sm:$0xff] }
  0x25   : > { %730 = vperm.xlu0 %5656, %v9445_v35   ;;  %9597 = vst [vmem:[#allocation9_spill] sm:$0xff] %v6052_v61  ;;  %v9459_v4 = vsub.f32 1.0, %v6052_v61  ;;  %v6064_v5 = vmul.f32 %v4805_v59, %v363_v58  ;;  %v6068_v10 = vmul.f32 %v4788_v62, %v346_v1  ;;  %v416_v11 = vmul.f32 2.0, %v380_v3  ;;  %v382_v14 = vld [vmem:[%s5997_s16 + $0x40] sm:$0xff]  ;;  %v383_v17 = vld [vmem:[%s5997_s16 + $0x48] sm:$0xff]  ;;  %v364_v21 = vld [vmem:[%s5992_s13 + $0xb0] sm:$0xff] }
  0x26   : > { %650 = vperm.xlu1 %5657, %v9461_v43   ;;  %9598 = vst [vmem:[#allocation10_spill] sm:$0xff] %v6057_v0  ;;  %v9434_v15 = vsub.f32 1.0, %v6057_v0  ;;  %v4806_v16 = vadd.f32 -1.0, %v432_v2  ;;  %v6080_v20 = vmul.f32 %v4789_v6, %v347_v8  ;;  %v4807_v22 = vadd.f32 -1.0, %v433_v7  ;;  %v365_v25 = vld [vmem:[%s5992_s13 + $0xb8] sm:$0xff]  ;;  %v348_v26 = vld [vmem:[%s5992_s13 + $0x30] sm:$0xff] }
  0x27   : > { %9599 = vst [vmem:[#allocation11_spill] sm:$0xff] %v6064_v5  ;;  %9600 = vst [vmem:[#allocation12_spill] sm:$0xff] %v6068_v10  ;;  %v9433_v19 = vsub.f32 1.0, %v6064_v5  ;;  %v417_v23 = vmul.f32 2.0, %v381_v9  ;;  %v434_v29 = vmul.f32 2.0, %v398_v12  ;;  %v435_v30 = vmul.f32 2.0, %v399_v13 }
  0x28   : > { %9601 = vst [vmem:[#allocation13_spill] sm:$0xff] %v6080_v20  ;;  %v418_v31 = vmul.f32 2.0, %v382_v14  ;;  %v9458_v36 = vsub.f32 1.0, %v6068_v10  ;;  %v4790_v37 = vadd.f32 -1.0, %v416_v11  ;;  %v419_v38 = vmul.f32 2.0, %v383_v17  ;;  %v400_v40 = vld [vmem:[%s5997_s16 + $0xd0] sm:$0xff] }
  0x29   : > { %735 = vperm.xlu0 %5656, %v9444_v45   ;;  %v401_v41 = vld [vmem:[%s5997_s16 + $0xd8] sm:$0xff]  ;;  %v5659_v42 = vld [vmem:[%s5987_s10] sm:$0xff]   ;;  %v6091_v44 = vmul.f32 %v4806_v16, %v364_v21  ;;  %v9457_v48 = vsub.f32 1.0, %v6080_v20  ;;  %v6097_v49 = vmul.f32 %v4807_v22, %v365_v25  ;;  %v4791_v50 = vadd.f32 -1.0, %v417_v23  ;;  %v367_v53 = vld [vmem:[%s5992_s13 + $0xc8] sm:$0xff] }
  0x2a   : > { %740 = vperm.xlu1 %5657, %v9437_v52   ;;  %v349_v46 = vld [vmem:[%s5992_s13 + $0x38] sm:$0xff]  ;;  %v366_v51 = vld [vmem:[%s5992_s13 + $0xc0] sm:$0xff]  ;;  %5596 = vmatpush3.bf16.msra.mxu1 %v5659_v42  ;;  %v5660_v54 = vld [vmem:[%s5987_s10 + $0x48] sm:$0xff]   ;;  %v4808_v56 = vadd.f32 -1.0, %v434_v29  ;;  %v4809_v57 = vadd.f32 -1.0, %v435_v30  ;;  %v4792_v58 = vadd.f32 -1.0, %v418_v31  ;;  %v6104_v60 = vmul.f32 %v4790_v37, %v348_v26 }
  0x2b   : > { %9602 = vst [vmem:[#allocation14_spill] sm:$0xff] %v6091_v44  ;;  %9603 = vst [vmem:[#allocation15_spill] sm:$0xff] %v6097_v49  ;;  %v5661_v55 = vld [vmem:[%s5987_s10 + $0x8] sm:$0xff]   ;;  %v384_v59 = vld [vmem:[%s5997_s16 + $0x50] sm:$0xff]  ;;  %5253 = vmatpush3.bf16.msra.mxu0 %v5659_v42  ;;  %v4793_v1 = vadd.f32 -1.0, %v419_v38  ;;  %v436_v2 = vmul.f32 2.0, %v400_v40  ;;  %5589 = vmatprep.subr.bf16.mxu1 %v5660_v54  ;;  %v6115_v11 = vmul.f32 %v4791_v50, %v349_v46 }
  0x2c   : > { %9604 = vst [vmem:[#allocation16_spill] sm:$0xff] %v6104_v60  ;;  %v350_v62 = vld [vmem:[%s5992_s13 + $0x40] sm:$0xff]  ;;  %5254 = vmatprep.subr.bf16.mxu0 %v5660_v54  ;;  %v5662_v3 = vld [vmem:[%s5987_s10 + $0x50] sm:$0xff]   ;;  %v9432_v6 = vsub.f32 1.0, %v6091_v44  ;;  %v351_v7 = vld [vmem:[%s5992_s13 + $0x48] sm:$0xff]  ;;  %v437_v8 = vmul.f32 2.0, %v401_v41  ;;  %v6118_v14 = vmul.f32 %v4808_v56, %v366_v51  ;;  %v6120_v16 = vmul.f32 %v4809_v57, %v367_v53 }
  0x2d   : > { %655 = vperm.xlu0 %5656, %v9460_v63   ;;  %v9431_v9 = vsub.f32 1.0, %v6097_v49  ;;  %9605 = vst [vmem:[#allocation17_spill] sm:$0xff] %v6115_v11  ;;  %v420_v12 = vmul.f32 2.0, %v384_v59  ;;  %v385_v13 = vld [vmem:[%s5997_s16 + $0x58] sm:$0xff]  ;;  %v6122_v17 = vmul.f32 %v4792_v58, %v350_v62  ;;  %v402_v21 = vld [vmem:[%s5997_s16 + $0xe0] sm:$0xff]  ;;  %v403_v22 = vld [vmem:[%s5997_s16 + $0xe8] sm:$0xff]  ;;  %v6127_v25 = vmul.f32 %v4793_v1, %v351_v7 }
  0x2e   : > { %660 = vperm.xlu1 %5657, %v9459_v4   ;;  %5597 = vmatpush3.bf16.msra.mxu1 %v5661_v55  ;;  %9606 = vst [vmem:[#allocation18_spill] sm:$0xff] %v6118_v14  ;;  %9607 = vst [vmem:[#allocation19_spill] sm:$0xff] %v6120_v16  ;;  %v9456_v23 = vsub.f32 1.0, %v6104_v60  ;;  %v4810_v26 = vadd.f32 -1.0, %v436_v2  ;;  %v386_v29 = vld [vmem:[%s5997_s16 + $0x60] sm:$0xff]  ;;  %v5663_v30 = vld [vmem:[%s5987_s10 + $0x10] sm:$0xff]  }
  0x2f   : > { %9608 = vst [vmem:[#allocation20_spill] sm:$0xff] %v6122_v17  ;;  %5255 = vmatpush3.bf16.msra.mxu0 %v5661_v55  ;;  %5590 = vmatprep.subr.bf16.mxu1 %v5662_v3  ;;  %9609 = vst [vmem:[#allocation21_spill] sm:$0xff] %v6127_v25  ;;  %v4811_v31 = vadd.f32 -1.0, %v437_v8  ;;  %v387_v37 = vld [vmem:[%s5997_s16 + $0x68] sm:$0xff]  ;;  %v5664_v38 = vld [vmem:[%s5987_s10 + $0x58] sm:$0xff]   ;;  %v9455_v40 = vsub.f32 1.0, %v6115_v11 }
  0x30   : > { %5256 = vmatprep.subr.bf16.mxu0 %v5662_v3  ;;  %v4794_v41 = vadd.f32 -1.0, %v420_v12  ;;  %v9436_v42 = vsub.f32 1.0, %v6118_v14  ;;  %v9435_v46 = vsub.f32 1.0, %v6120_v16  ;;  %v9454_v50 = vsub.f32 1.0, %v6122_v17  ;;  %v368_v51 = vld [vmem:[%s5992_s13 + $0xd0] sm:$0xff]  ;;  %v369_v53 = vld [vmem:[%s5992_s13 + $0xd8] sm:$0xff] }
  0x31   : > { %745 = vperm.xlu0 %5656, %v9434_v15   ;;  %v421_v54 = vmul.f32 2.0, %v385_v13  ;;  %v404_v55 = vld [vmem:[%s5997_s16 + $0xf0] sm:$0xff]  ;;  %v405_v56 = vld [vmem:[%s5997_s16 + $0xf8] sm:$0xff]  ;;  %v5666_v58 = vld [vmem:[%s5987_s10 + $0x60] sm:$0xff]   ;;  %v9453_v59 = vsub.f32 1.0, %v6127_v25  ;;  %v438_v1 = vmul.f32 2.0, %v402_v21 }
  0x32   : > { %750 = vperm.xlu1 %5657, %v9433_v19   ;;  %5598 = vmatpush3.bf16.msra.mxu1 %v5663_v30  ;;  %v5665_v57 = vld [vmem:[%s5987_s10 + $0x18] sm:$0xff]   ;;  %v352_v62 = vld [vmem:[%s5992_s13 + $0x50] sm:$0xff]  ;;  %v439_v2 = vmul.f32 2.0, %v403_v22  ;;  %v422_v3 = vmul.f32 2.0, %v386_v29  ;;  %v423_v8 = vmul.f32 2.0, %v387_v37  ;;  %v5667_v12 = vld [vmem:[%s5987_s10 + $0x20] sm:$0xff]   ;;  %v6157_v22 = vmul.f32 %v4810_v26, %v368_v51 }
  0x33   : > { %5257 = vmatpush3.bf16.msra.mxu0 %v5663_v30  ;;  %5591 = vmatprep.subr.bf16.mxu1 %v5664_v38  ;;  %v353_v7 = vld [vmem:[%s5992_s13 + $0x58] sm:$0xff]  ;;  %v4795_v13 = vadd.f32 -1.0, %v421_v54  ;;  %v388_v30 = vld [vmem:[%s5997_s16 + $0x70] sm:$0xff]  ;;  %v5668_v21 = vld [vmem:[%s5987_s10 + $0x68] sm:$0xff]   ;;  %v6159_v29 = vmul.f32 %v4811_v31, %v369_v53  ;;  %v441_v19 = vmul.f32 2.0, %v405_v56  ;;  %v6165_v37 = vmul.f32 %v4794_v41, %v352_v62 }
  0x34   : > { %5258 = vmatprep.subr.bf16.mxu0 %v5664_v38  ;;  %9610 = vst [vmem:[#allocation22_spill] sm:$0xff] %v6157_v22  ;;  %v370_v38 = vld [vmem:[%s5992_s13 + $0xe0] sm:$0xff]  ;;  %v4812_v54 = vadd.f32 -1.0, %v438_v1  ;;  %v4796_v26 = vadd.f32 -1.0, %v422_v3  ;;  %v355_v31 = vld [vmem:[%s5992_s13 + $0x68] sm:$0xff]  ;;  %v5670_v41 = vld [vmem:[%s5987_s10 + $0x70] sm:$0xff]  }
  0x35   : > { %665 = vperm.xlu0 %5656, %v9458_v36   ;;  %9611 = vst [vmem:[#allocation23_spill] sm:$0xff] %v6159_v29  ;;  %9612 = vst [vmem:[#allocation24_spill] sm:$0xff] %v6165_v37  ;;  %v354_v15 = vld [vmem:[%s5992_s13 + $0x60] sm:$0xff]  ;;  %v5669_v51 = vld [vmem:[%s5987_s10 + $0x28] sm:$0xff]   ;;  %v6172_v53 = vmul.f32 %v4795_v13, %v353_v7  ;;  %v9438_v56 = vsub.f32 1.0, %v6157_v22  ;;  %v424_v62 = vmul.f32 2.0, %v388_v30 }
  0x36   : > { %670 = vperm.xlu1 %5657, %v9457_v48   ;;  %5599 = vmatpush3.bf16.msra.mxu1 %v5665_v57  ;;  %v389_v1 = vld [vmem:[%s5997_s16 + $0x78] sm:$0xff]  ;;  %v6181_v3 = vmul.f32 %v4812_v54, %v370_v38  ;;  %v4815_v30 = vadd.f32 -1.0, %v441_v19  ;;  %v5675_v63 = vld [vmem:[%s5987_s10 + $0x80] sm:$0xff]   ;;  %v5684_v43 = vld [vmem:[%s5987_s10 + $0x150] sm:$0xff]  }
  0x37   : > { %5259 = vmatpush3.bf16.msra.mxu0 %v5665_v57  ;;  %5592 = vmatprep.subr.bf16.mxu1 %v5666_v58  ;;  %v4813_v57 = vadd.f32 -1.0, %v439_v2  ;;  %9613 = vst [vmem:[#allocation25_spill] sm:$0xff] %v6172_v53  ;;  %v9452_v2 = vsub.f32 1.0, %v6165_v37  ;;  %v373_v13 = vld [vmem:[%s5992_s13 + $0xf8] sm:$0xff]  ;;  %v425_v38 = vmul.f32 2.0, %v389_v1  ;;  %v5678_v32 = vld [vmem:[%s5987_s10 + $0xc8] sm:$0xff]  }
  0x38   : > { %5260 = vmatprep.subr.bf16.mxu0 %v5666_v58  ;;  %v9443_v58 = vsub.f32 1.0, %v6159_v29  ;;  %9614 = vst [vmem:[#allocation26_spill] sm:$0xff] %v6181_v3  ;;  %v5698_v16 = vld [vmem:[%s5987_s10 + $0xf0] sm:$0xff]   ;;  %v5704_v14 = vld [vmem:[%s5987_s10 + $0x178] sm:$0xff]  }
  0x39   : > { %755 = vperm.xlu0 %5656, %v9432_v6   ;;  %v440_v6 = vmul.f32 2.0, %v404_v55  ;;  %v4797_v55 = vadd.f32 -1.0, %v423_v8  ;;  %v372_v8 = vld [vmem:[%s5992_s13 + $0xf0] sm:$0xff]  ;;  %v4799_v1 = vadd.f32 -1.0, %v425_v38  ;;  %v538_v38 = vlaneseq }
  0x3a   : > { %760 = vperm.xlu1 %5657, %v9431_v9   ;;  %v371_v9 = vld [vmem:[%s5992_s13 + $0xe8] sm:$0xff]  ;;  %5600 = vmatpush3.bf16.msra.mxu1 %v5667_v12 }
  0x3b   : > { %5261 = vmatpush3.bf16.msra.mxu0 %v5667_v12  ;;  %5593 = vmatprep.subr.bf16.mxu1 %v5668_v21  ;;  %v6183_v7 = vmul.f32 %v4813_v57, %v371_v9  ;;  %v4814_v12 = vadd.f32 -1.0, %v440_v6  ;;  %v6193_v52 = vmul.f32 %v4797_v55, %v355_v31  ;;  %v5672_v9 = vld [vmem:[%s5987_s10 + $0x78] sm:$0xff]   ;;  %v4798_v6 = vadd.f32 -1.0, %v424_v62  ;;  %v356_v55 = vld [vmem:[%s5992_s13 + $0x70] sm:$0xff]  ;;  %v5674_v62 = vld [vmem:[%s5987_s10 + $0xc0] sm:$0xff]  }
  0x3c   : > { %5262 = vmatprep.subr.bf16.mxu0 %v5668_v21  ;;  %v5671_v21 = vld [vmem:[%s5987_s10 + $0x30] sm:$0xff]   ;;  %v5673_v31 = vld [vmem:[%s5987_s10 + $0x38] sm:$0xff]  }
  0x3d   : > { %675 = vperm.xlu0 %5656, %v9456_v23   ;;  %9615 = vst [vmem:[#allocation27_spill] sm:$0xff] %v6183_v7  ;;  %9617 = vst [vmem:[#allocation29_spill] sm:$0xff] %v6193_v52  ;;  %v9440_v19 = vsub.f32 1.0, %v6183_v7  ;;  %v6203_v57 = vmul.f32 %v4814_v12, %v372_v8  ;;  %v5680_v23 = vld [vmem:[%s5987_s10 + $0x148] sm:$0xff]  }
  0x3e   : > { %680 = vperm.xlu1 %5657, %v9455_v40   ;;  %5601 = vmatpush3.bf16.msra.mxu1 %v5669_v51 }
  0x3f   : > { %5263 = vmatpush3.bf16.msra.mxu0 %v5669_v51  ;;  %5594 = vmatprep.subr.bf16.mxu1 %v5670_v41  ;;  %9618 = vst [vmem:[#allocation30_spill] sm:$0xff] %v6203_v57  ;;  %v9449_v51 = vsub.f32 1.0, %v6193_v52  ;;  %v9441_v8 = vsub.f32 1.0, %v6203_v57 }
  0x40   : > { %5264 = vmatprep.subr.bf16.mxu0 %v5670_v41  ;;  %v357_v41 = vld [vmem:[%s5992_s13 + $0x78] sm:$0xff] }
  0x41   : > { %765 = vperm.xlu0 %5656, %v9436_v42   ;;  %v9451_v42 = vsub.f32 1.0, %v6172_v53 }
  0x42   : > { %770 = vperm.xlu1 %5657, %v9435_v46   ;;  %v6189_v46 = vmul.f32 %v4796_v26, %v354_v15  ;;  %v9442_v15 = vsub.f32 1.0, %v6181_v3  ;;  %v6205_v26 = vmul.f32 %v4815_v30, %v373_v13  ;;  %5602 = vmatpush3.bf16.msra.mxu1 %v5671_v21  ;;  %v6219_v13 = vmul.f32 %v4798_v6, %v356_v55  ;;  %v340_v55 = vld [vmem:[%s306_s6] sm:$0x3f] }
  0x43   : > { %5265 = vmatpush3.bf16.msra.mxu0 %v5671_v21  ;;  %5595 = vmatprep.subr.bf16.mxu1 %v5672_v9  ;;  %v6221_v30 = vmul.f32 %v4799_v1, %v357_v41  ;;  %v6251_v41 = vshrl.u32 %v538_v38, 7  ;;  %v6254_v1 = vand.u32 127, %v538_v38  ;;  %v5691_v3 = vld [vmem:[%s5987_s10 + $0xa0] sm:$0xff]  }
  0x44   : > { %9616 = vst [vmem:[#allocation28_spill] sm:$0xff] %v6189_v46  ;;  %v9450_v54 = vsub.f32 1.0, %v6189_v46  ;;  %9619 = vst [vmem:[#allocation31_spill] sm:$0xff] %v6205_v26  ;;  %5266 = vmatprep.subr.bf16.mxu0 %v5672_v9  ;;  %v9439_v12 = vsub.f32 1.0, %v6205_v26  ;;  %v9448_v21 = vsub.f32 1.0, %v6219_v13  ;;  %v5686_v26 = vld [vmem:[%s5987_s10 + $0xd8] sm:$0xff]  }
  0x45   : > { %685 = vperm.xlu0 %5656, %v9454_v50   ;;  %9620 = vst [vmem:[#allocation32_spill] sm:$0xff] %v6219_v13  ;;  %9621 = vst [vmem:[#allocation33_spill] sm:$0xff] %v6221_v30  ;;  %v9447_v9 = vsub.f32 1.0, %v6221_v30  ;;  %v9464_v27 = vsub.s32 0, %v6251_v41  ;;  %v541_v4 = vadd.s32 16, %v6251_v41  ;;  %v560_v7 = vadd.s32 168, %v6251_v41 }
  0x46   : > { %690 = vperm.xlu1 %5657, %v9453_v59   ;;  %5603 = vmatpush3.bf16.msra.mxu1 %v5673_v31  ;;  %v542_v59 = vadd.s32 24, %v6251_v41  ;;  %v547_v34 = vadd.s32 64, %v6251_v41  ;;  %v9643_v52 = vsub.s32 0, %v6251_v41  ;;  %v9644_v25 = vsub.s32 1, %v6251_v41 }
  0x47   : > { %5267 = vmatpush3.bf16.msra.mxu0 %v5673_v31  ;;  %5364 = vmatprep.subr.bf16.mxu1 %v5674_v62  ;;  %v9646_v11 = vsub.s32 3, %v6251_v41  ;;  %v551_v33 = vadd.s32 96, %v6251_v41 }
  0x49   : > { %775 = vperm.xlu0 %5656, %v9438_v56   ;;  %v5676_v56 = vld [vmem:[%s5987_s10 + $0x140] sm:$0xff]  }
  0x4a   : > { %780 = vperm.xlu1 %5657, %v9443_v58   ;;  %5476 = vmatprep.subr.bf16.mxu0 %v5676_v56  ;;  %v6245_v56 = vld [vmem:[%s310_s27] sm:$0x3f]  ;;  %v6263_v58 = vadd.s32 128, %v6254_v1 }
  0x4b   : > { %v406_v6 = vmul.f32 2.0, %v6245_v56  ;;  %v3114_v37 = vrot.slane %v6245_v56, %v9643_v52  ;;  %v3118_v53 = vrot.slane %v6245_v56, %v9644_v25  ;;  %v3126_v60 = vrot.slane %v6245_v56, %v9646_v11 }
  0x4c   : > { %v9647_v52 = vsub.s32 4, %v6251_v41 }
  0x4d   : > { %695 = vperm.xlu0 %5656, %v9452_v2   ;;  %v4783_v31 = vadd.f32 -1.0, %v406_v6  ;;  %v556_v6 = vadd.s32 136, %v6251_v41  ;;  %v558_v2 = vadd.s32 152, %v6251_v41 }
  0x4e   : > { %700 = vperm.xlu1 %5657, %v9451_v42   ;;  %v9467_v42 = vmov 1.0|1.0   ;;  %v3130_v25 = vrot.slane %v6245_v56, %v9647_v52 }
  0x4f   : > { %v408_v62 = vmul.f32 %v4783_v31, %v340_v55  ;;  %v540_v31 = vadd.s32 8, %v6251_v41 }
  0x51   : > { %785 = vperm.xlu0 %5656, %v9442_v15   ;;  %v6260_v15 = vsub.f32 1.0, %v408_v62 }
  0x52   : > { %790 = vperm.xlu1 %5657, %v9440_v19   ;;  %v6257_v19 = vstv %s4816_s7 }
  0x53   : > { %v6272_v38 = vadd.s32 %v6257_v19, %v6251_v41  ;;  %v6280_v62 = vadd.s32 %v6257_v19, %v556_v6  ;;  %v6377_v36 = vadd.s32 %v6257_v19, %v558_v2  ;;  %v5681_v2 = vld [vmem:[%s5987_s10 + $0x108] sm:$0xff]   ;;  %v6523_v22 = vadd.s32 %v6257_v19, %v560_v7  ;;  %v5705_v7 = vld [vmem:[%s5987_s10 + $0x138] sm:$0xff]  }
  0x54   : > { %v6720_v30 = vadd.s32 %v6257_v19, %v547_v34 }
  0x55   : > { %705 = vperm.xlu0 %5656, %v9450_v54   ;;  %vm1188_vm1 = vcmp.lt.s32.totalorder %v6263_v58, %v6272_v38  ;;  %vm1290_vm8 = vcmp.lt.s32.totalorder %v6263_v58, %v6280_v62  ;;  %v5677_v54 = vld [vmem:[%s5987_s10 + $0x100] sm:$0xff]  }
  0x56   : > { %710 = vperm.xlu1 %5657, %v9449_v51  }
  0x59   : > { %795 = vperm.xlu0 %5656, %v9441_v8   ;;  %v9463_v8 = vsub.s32 1, %v6251_v41 }
  0x5a   : > { %800 = vperm.xlu1 %5657, %v9439_v12   ;;  %v555_v12 = vadd.s32 128, %v6251_v41 }
  0x5b   : > { %v6277_v55 = vrot.slane %v6260_v15, %v9463_v8 }
  0x5c   : > { %v6267_v45 = vadd.s32 %v6257_v19, %v555_v12  ;;  %v6287_v12 = vadd.s32 %v6257_v19, %v540_v31  ;;  %v557_v31 = vadd.s32 144, %v6251_v41 }
  0x5d   : > { %715 = vperm.xlu0 %5656, %v9448_v21   ;;  %v6315_v21 = vrot.slane %v6260_v15, %v9464_v27 }
  0x5e   : > { %720 = vperm.xlu1 %5657, %v9447_v9   ;;  %vm1284_vm0 = vcmp.lt.s32.totalorder %v6263_v58, %v6267_v45  ;;  %vm1194_vm9 = vcmp.lt.s32.totalorder %v6263_v58, %v6287_v12  ;;  %v6367_v40 = vadd.s32 %v6257_v19, %v557_v31  ;;  %v5688_v31 = vld [vmem:[%s5987_s10 + $0x158] sm:$0xff]  }
  0xa0   : > { %v6284_v35 = vpop.permute.xlu0 %725 }
  0xa1   : > { %v6292_v9 = vpop.permute.xlu1 %645  ;;  %vm1092_vm2 = vcmp.eq.f32.partialorder %v6277_v55, %v6284_v35  ;;  %vm900_vm5 = vcmp.gt.f32.partialorder %v6277_v55, %v6284_v35 }
  0xa2   : > { %vm804_vm3 = vcmp.gt.f32.partialorder %v6277_v55, %v6292_v9  ;;  %vm996_vm4 = vcmp.eq.f32.partialorder %v6277_v55, %v6292_v9  ;;  %vm1476_vm6 = vmand %vm1092_vm2, %vm1284_vm0 }
  0xa3   : > { %vm1380_vm7 = vmand %vm996_vm4, %vm1188_vm1  ;;  %vm995_vm4 = vcmp.eq.f32.partialorder %v6315_v21, %v6292_v9 }
  0xa4   : > { %v6304_v6 = vpop.permute.xlu0 %730  ;;  %vm6308_vm10 = vmor %vm804_vm3, %vm1380_vm7 }
  0xa5   : > { %v6317_v51 = vpop.permute.xlu1 %650  ;;  %vm1098_vm11 = vcmp.eq.f32.partialorder %v6277_v55, %v6304_v6  ;;  %vm6321_vm12 = vmor %vm900_vm5, %vm1476_vm6  ;;  %vm906_vm1 = vcmp.gt.f32.partialorder %v6277_v55, %v6304_v6  ;;  %vm1187_vm5 = vcmp.lt.s32.totalorder %v6254_v1, %v6272_v38 }
  0xa6   : > { %vm810_vm13 = vcmp.gt.f32.partialorder %v6277_v55, %v6317_v51  ;;  %vm1002_vm14 = vcmp.eq.f32.partialorder %v6277_v55, %v6317_v51  ;;  %vm1482_vm15 = vmand %vm1098_vm11, %vm1290_vm8  ;;  %vm1001_vm7 = vcmp.eq.f32.partialorder %v6315_v21, %v6317_v51  ;;  %vm1193_vm8 = vcmp.lt.s32.totalorder %v6254_v1, %v6287_v12 }
  0xa7   : > { %vm1386_vm0 = vmand %vm1002_vm14, %vm1194_vm9  ;;  %vm809_vm11 = vcmp.gt.f32.partialorder %v6315_v21, %v6317_v51 }
  0xa8   : > { %vm1578_vm2 = vmor %vm810_vm13, %vm1386_vm0  ;;  %vm1283_vm0 = vcmp.lt.s32.totalorder %v6254_v1, %v6267_v45  ;;  %v6360_v50 = vpop.permute.xlu0 %735 }
  0xa9   : > { %vm5057_vm3 = vmpackc.low %vm1578_vm2, %vm6308_vm10  ;;  %vm803_vm10 = vcmp.gt.f32.partialorder %v6315_v21, %v6292_v9  ;;  %vm1097_vm2 = vcmp.eq.f32.partialorder %v6315_v21, %v6304_v6  ;;  %v6370_v48 = vpop.permute.xlu1 %740 }
  0xaa   : > { %5058 = vmatprep.mubr.msk.bf16.mxu0 %vm5057_vm3, %v9467_v42  ;;  %vm1674_vm6 = vmor %vm906_vm1, %vm1482_vm15  ;;  %vm1289_vm3 = vcmp.lt.s32.totalorder %v6254_v1, %v6280_v62 }
  0xab   : > { %vm5089_vm9 = vmpackc.low %vm1674_vm6, %vm6321_vm12  ;;  %vm1091_vm12 = vcmp.eq.f32.partialorder %v6315_v21, %v6284_v35  ;;  %vm905_vm6 = vcmp.gt.f32.partialorder %v6315_v21, %v6304_v6 }
  0xac   : > { %5090 = vmatprep.mubr.msk.bf16.mxu1 %vm5089_vm9, %v9467_v42  ;;  %vm1379_vm13 = vmand %vm995_vm4, %vm1187_vm5  ;;  %vm899_vm5 = vcmp.gt.f32.partialorder %v6315_v21, %v6284_v35  ;;  %v6411_v8 = vpop.permute.xlu0 %655 }
  0xad   : > { %vm1385_vm14 = vmand %vm1001_vm7, %vm1193_vm8  ;;  %v6419_v27 = vpop.permute.xlu1 %660 }
  0xae   : > { %vm6351_vm15 = vmor %vm803_vm10, %vm1379_vm13  ;;  %vm1104_vm10 = vcmp.eq.f32.partialorder %v6277_v55, %v6360_v50 }
  0xaf   : > { %vm1577_vm1 = vmor %vm809_vm11, %vm1385_vm14  ;;  %vm1296_vm11 = vcmp.lt.s32.totalorder %v6263_v58, %v6367_v40  ;;  %vm1110_vm14 = vcmp.eq.f32.partialorder %v6277_v55, %v6370_v48 }
  0xb0   : > { %vm5059_vm4 = vmpackc.low %vm1577_vm1, %vm6351_vm15  ;;  %vm1302_vm15 = vcmp.lt.s32.totalorder %v6263_v58, %v6377_v36  ;;  %vm918_vm1 = vcmp.gt.f32.partialorder %v6277_v55, %v6370_v48 }
  0xb1   : > { %5060 = vmatmul.mubr.msk.bf16.vlgmr.msra.gmra.mrb[0].mxu0 %vm5059_vm4, %v9467_v42  ;;  %vm1475_vm7 = vmand %vm1091_vm12, %vm1283_vm0  ;;  %vm912_vm0 = vcmp.gt.f32.partialorder %v6277_v55, %v6360_v50  ;;  %v6514_v29 = vpop.permute.xlu1 %750 }
  0xb2   : > { %vm1481_vm8 = vmand %vm1097_vm2, %vm1289_vm3  ;;  %5477 = vmatpush3.bf16.msra.mxu0 %v5677_v54  ;;  %v6406_v54 = vadd.s32 %v6257_v19, %v541_v4  ;;  %v5685_v4 = vld [vmem:[%s5987_s10 + $0x110] sm:$0xff]  }
  0xb3   : > { %vm6391_vm9 = vmor %vm899_vm5, %vm1475_vm7  ;;  %5478 = vmatprep.subr.bf16.mxu0 %v5680_v23  ;;  %v6416_v23 = vadd.s32 %v6257_v19, %v542_v59  ;;  %v5679_v59 = vld [vmem:[%s5987_s10 + $0x88] sm:$0xff]   ;;  %vm1008_vm5 = vcmp.eq.f32.partialorder %v6277_v55, %v6411_v8 }
  0xb4   : > { %vm1673_vm13 = vmor %vm905_vm6, %vm1481_vm8  ;;  %vm1200_vm6 = vcmp.lt.s32.totalorder %v6263_v58, %v6406_v54  ;;  %vm1014_vm8 = vcmp.eq.f32.partialorder %v6277_v55, %v6419_v27 }
  0xb5   : > { %vm5091_vm12 = vmpackc.low %vm1673_vm13, %vm6391_vm9  ;;  %vm1206_vm9 = vcmp.lt.s32.totalorder %v6263_v58, %v6416_v23  ;;  %vm822_vm13 = vcmp.gt.f32.partialorder %v6277_v55, %v6419_v27 }
  0xb6   : > { %5092 = vmatmul.mubr.msk.bf16.vlgmr.msra.gmra.mrb[0].mxu1 %vm5091_vm12, %v9467_v42  ;;  %vm1488_vm2 = vmand %vm1104_vm10, %vm1296_vm11  ;;  %5479 = vmatpush3.bf16.msra.mxu0 %v5681_v2  ;;  %v5682_v2 = vld [vmem:[%s5987_s10 + $0xd0] sm:$0xff]   ;;  %vm816_vm11 = vcmp.gt.f32.partialorder %v6277_v55, %v6411_v8 }
  0xb7   : > { %5365 = vmatpush3.bf16.msra.mxu1 %v5675_v63  ;;  %vm1494_vm3 = vmand %vm1110_vm14, %vm1302_vm15  ;;  %5480 = vmatprep.subr.bf16.mxu0 %v5684_v43  ;;  %v5689_v43 = vld [vmem:[%s5987_s10 + $0x118] sm:$0xff]   ;;  %v5692_v63 = vld [vmem:[%s5987_s10 + $0x160] sm:$0xff]  }
  0xb8   : > { %vm1680_vm4 = vmor %vm912_vm0, %vm1488_vm2  ;;  %5366 = vmatprep.subr.bf16.mxu1 %v5678_v32  ;;  %v5683_v32 = vld [vmem:[%s5987_s10 + $0x90] sm:$0xff]   ;;  %vm1007_vm0 = vcmp.eq.f32.partialorder %v6315_v21, %v6411_v8 }
  0xb9   : > { %vm1686_vm7 = vmor %vm918_vm1, %vm1494_vm3  ;;  %vm1199_vm1 = vcmp.lt.s32.totalorder %v6254_v1, %v6406_v54  ;;  %vm1013_vm3 = vcmp.eq.f32.partialorder %v6315_v21, %v6419_v27 }
  0xba   : > { %vm5093_vm10 = vmpackc.low %vm1686_vm7, %vm1680_vm4  ;;  %5481 = vmatpush3.bf16.msra.mxu0 %v5685_v4  ;;  %vm1205_vm4 = vcmp.lt.s32.totalorder %v6254_v1, %v6416_v23  ;;  %v5693_v4 = vld [vmem:[%s5987_s10 + $0x120] sm:$0xff]   ;;  %vm821_vm7 = vcmp.gt.f32.partialorder %v6315_v21, %v6419_v27 }
  0xbb   : > { %5094 = vmatprep.mubr.msk.bf16.mxu1 %vm5093_vm10, %v9467_v42  ;;  %vm1392_vm14 = vmand %vm1008_vm5, %vm1200_vm6  ;;  %5367 = vmatpush3.bf16.msra.mxu1 %v5679_v59  ;;  %vm815_vm6 = vcmp.gt.f32.partialorder %v6315_v21, %v6411_v8  ;;  %v559_v59 = vadd.s32 160, %v6251_v41 }
  0xbc   : > { %vm1398_vm15 = vmand %vm1014_vm8, %vm1206_vm9  ;;  %5368 = vmatprep.subr.bf16.mxu1 %v5682_v2  ;;  %5482 = vmatprep.subr.bf16.mxu0 %v5688_v31  ;;  %v5687_v2 = vld [vmem:[%s5987_s10 + $0x98] sm:$0xff]   ;;  %v5696_v31 = vld [vmem:[%s5987_s10 + $0x168] sm:$0xff]  }
  0xbd   : > { %vm6453_vm12 = vmor %vm816_vm11, %vm1392_vm14  ;;  %vm1103_vm11 = vcmp.eq.f32.partialorder %v6315_v21, %v6360_v50  ;;  %v6510_v57 = vadd.s32 %v6257_v19, %v559_v59  ;;  %v543_v59 = vadd.s32 32, %v6251_v41 }
  0xbe   : > { %vm1590_vm2 = vmor %vm822_vm13, %vm1398_vm15  ;;  %5483 = vmatpush3.bf16.msra.mxu0 %v5689_v43  ;;  %v5690_v43 = vld [vmem:[%s5987_s10 + $0xe0] sm:$0xff]   ;;  %vm1295_vm13 = vcmp.lt.s32.totalorder %v6254_v1, %v6367_v40  ;;  %vm1109_vm15 = vcmp.eq.f32.partialorder %v6315_v21, %v6370_v48 }
  0xbf   : > { %vm5061_vm5 = vmpackc.low %vm1590_vm2, %vm6453_vm12  ;;  %5369 = vmatpush3.bf16.msra.mxu1 %v5683_v32  ;;  %5484 = vmatprep.subr.bf16.mxu0 %v5692_v63  ;;  %v6499_v63 = vpop.permute.xlu0 %745  ;;  %vm1301_vm12 = vcmp.lt.s32.totalorder %v6254_v1, %v6377_v36  ;;  %vm917_vm2 = vcmp.gt.f32.partialorder %v6315_v21, %v6370_v48  ;;  %v5701_v32 = vld [vmem:[%s5987_s10 + $0x130] sm:$0xff]  }
  0xc0   : > { %5062 = vmatprep.mubr.msk.bf16.mxu0 %vm5061_vm5, %v9467_v42  ;;  %vm1391_vm8 = vmand %vm1007_vm0, %vm1199_vm1  ;;  %5370 = vmatprep.subr.bf16.mxu1 %v5686_v26  ;;  %v5697_v26 = vld [vmem:[%s5987_s10 + $0x128] sm:$0xff]   ;;  %vm911_vm1 = vcmp.gt.f32.partialorder %v6315_v21, %v6360_v50  ;;  %v544_v42 = vadd.s32 40, %v6251_v41 }
  0xc1   : > { %vm1397_vm9 = vmand %vm1013_vm3, %vm1205_vm4 }
  0xc2   : > { %vm6490_vm10 = vmor %vm815_vm6, %vm1391_vm8  ;;  %5485 = vmatpush3.bf16.msra.mxu0 %v5693_v4  ;;  %v5700_v4 = vld [vmem:[%s5987_s10 + $0x170] sm:$0xff]   ;;  %vm1116_vm6 = vcmp.eq.f32.partialorder %v6277_v55, %v6499_v63 }
  0xc3   : > { %vm6501_vm14 = vmor %vm821_vm7, %vm1397_vm9  ;;  %5371 = vmatpush3.bf16.msra.mxu1 %v5687_v2  ;;  %5486 = vmatprep.subr.bf16.mxu0 %v5696_v31  ;;  %v5694_v2 = vld [vmem:[%s5987_s10 + $0xe8] sm:$0xff]   ;;  %v9636_v31 = vmov 1.0|1.0   ;;  %vm1308_vm7 = vcmp.lt.s32.totalorder %v6263_v58, %v6510_v57  ;;  %vm1122_vm9 = vcmp.eq.f32.partialorder %v6277_v55, %v6514_v29 }
  0xc4   : > { %vm5063_vm0 = vmpackc.low %vm6501_vm14, %vm6490_vm10  ;;  %5372 = vmatprep.subr.bf16.mxu1 %v5690_v43  ;;  %v5695_v43 = vld [vmem:[%s5987_s10 + $0xa8] sm:$0xff]   ;;  %vm1314_vm10 = vcmp.lt.s32.totalorder %v6263_v58, %v6523_v22  ;;  %vm930_vm14 = vcmp.gt.f32.partialorder %v6277_v55, %v6514_v29 }
  0xc5   : > { %5064 = vmatmul.mubr.msk.bf16.gmra.mrb[4].mxu0 %vm5063_vm0, %v9636_v31  ;;  %vm1487_vm3 = vmand %vm1103_vm11, %vm1295_vm13  ;;  %vm924_vm13 = vcmp.gt.f32.partialorder %v6277_v55, %v6499_v63 }
  0xc6   : > { %vm1493_vm4 = vmand %vm1109_vm15, %vm1301_vm12  ;;  %5487 = vmatpush3.bf16.msra.mxu0 %v5697_v26  ;;  %v6558_v26 = vadd.s32 %v6257_v19, %v543_v59  ;;  %v6572_v59 = vpop.permute.xlu1 %670 }
  0xc7   : > { %vm6543_vm5 = vmor %vm911_vm1, %vm1487_vm3  ;;  %5373 = vmatpush3.bf16.msra.mxu1 %v5691_v3  ;;  %5488 = vmatprep.subr.bf16.mxu0 %v5700_v4  ;;  %v6564_v3 = vpop.permute.xlu0 %665  ;;  %v6569_v4 = vadd.s32 %v6257_v19, %v544_v42  ;;  %v5702_v42 = vld [vmem:[%s5987_s10 + $0xf8] sm:$0xff]  }
  0xc8   : > { %vm1685_vm8 = vmor %vm917_vm2, %vm1493_vm4  ;;  %5374 = vmatprep.subr.bf16.mxu1 %v5694_v2  ;;  %v5699_v2 = vld [vmem:[%s5987_s10 + $0xb0] sm:$0xff]   ;;  %vm1020_vm1 = vcmp.eq.f32.partialorder %v6277_v55, %v6564_v3  ;;  %vm1212_vm2 = vcmp.lt.s32.totalorder %v6263_v58, %v6558_v26  ;;  %vm1026_vm4 = vcmp.eq.f32.partialorder %v6277_v55, %v6572_v59 }
  0xc9   : > { %vm5095_vm11 = vmpackc.low %vm1685_vm8, %vm6543_vm5  ;;  %vm1218_vm5 = vcmp.lt.s32.totalorder %v6263_v58, %v6569_v4  ;;  %vm834_vm8 = vcmp.gt.f32.partialorder %v6277_v55, %v6572_v59 }
  0xca   : > { %5096 = vmatmul.mubr.msk.bf16.gmra.mrb[4].mxu1 %vm5095_vm11, %v9636_v31  ;;  %vm1500_vm15 = vmand %vm1116_vm6, %vm1308_vm7  ;;  %5489 = vmatpush3.bf16.msra.mxu0 %v5701_v32  ;;  %vm828_vm7 = vcmp.gt.f32.partialorder %v6277_v55, %v6564_v3 }
  0xcb   : > { %vm1506_vm12 = vmand %vm1122_vm9, %vm1314_vm10  ;;  %5375 = vmatpush3.bf16.msra.mxu1 %v5695_v43  ;;  %5490 = vmatprep.subr.bf16.mxu0 %v5704_v14  ;;  %v5703_v14 = vld [vmem:[%s5987_s10 + $0xb8] sm:$0xff]   ;;  %v562_v43 = vadd.s32 184, %v6251_v41  ;;  %v6618_v32 = vpop.permute.xlu0 %755 }
  0xcc   : > { %vm1692_vm0 = vmor %vm924_vm13, %vm1500_vm15  ;;  %5376 = vmatprep.subr.bf16.mxu1 %v5698_v16  ;;  %vm1019_vm13 = vcmp.eq.f32.partialorder %v6315_v21, %v6564_v3  ;;  %v561_v16 = vadd.s32 176, %v6251_v41 }
  0xcd   : > { %vm1698_vm3 = vmor %vm930_vm14, %vm1506_vm12  ;;  %vm1211_vm14 = vcmp.lt.s32.totalorder %v6254_v1, %v6558_v26  ;;  %vm1025_vm12 = vcmp.eq.f32.partialorder %v6315_v21, %v6572_v59 }
  0xce   : > { %vm5097_vm6 = vmpackc.low %vm1698_vm3, %vm1692_vm0  ;;  %5491 = vmatpush3.bf16.msra.mxu0 %v5705_v7  ;;  %vm1217_vm0 = vcmp.lt.s32.totalorder %v6254_v1, %v6569_v4  ;;  %vm833_vm3 = vcmp.gt.f32.partialorder %v6315_v21, %v6572_v59  ;;  %v6632_v7 = vadd.s32 %v6257_v19, %v562_v43 }
  0xcf   : > { %5098 = vmatprep.mubr.msk.bf16.mxu1 %vm5097_vm6, %v9636_v31  ;;  %vm1404_vm9 = vmand %vm1020_vm1, %vm1212_vm2  ;;  %5377 = vmatpush3.bf16.msra.mxu1 %v5699_v2  ;;  %vm827_vm2 = vcmp.gt.f32.partialorder %v6315_v21, %v6564_v3  ;;  %v6625_v2 = vadd.s32 %v6257_v19, %v561_v16  ;;  %v546_v16 = vadd.s32 56, %v6251_v41  ;;  %v6650_v49 = vpop.permute.xlu0 %675 }
  0xd0   : > { %vm1410_vm10 = vmand %vm1026_vm4, %vm1218_vm5  ;;  %5378 = vmatprep.subr.bf16.mxu1 %v5702_v42  ;;  %v6627_v42 = vpop.permute.xlu1 %760 }
  0xd1   : > { %vm1596_vm11 = vmor %vm828_vm7, %vm1404_vm9  ;;  %vm1115_vm7 = vcmp.eq.f32.partialorder %v6315_v21, %v6499_v63  ;;  %v6655_v44 = vadd.s32 %v6257_v19, %v546_v16  ;;  %v564_v16 = vadd.s32 200, %v6251_v41 }
  0xd2   : > { %vm1602_vm15 = vmor %vm834_vm8, %vm1410_vm10  ;;  %vm1307_vm8 = vcmp.lt.s32.totalorder %v6254_v1, %v6510_v57  ;;  %vm1121_vm10 = vcmp.eq.f32.partialorder %v6315_v21, %v6514_v29 }
  0xd3   : > { %vm5065_vm1 = vmpackc.low %vm1602_vm15, %vm1596_vm11  ;;  %5379 = vmatpush3.bf16.msra.mxu1 %v5703_v14  ;;  %vm1313_vm11 = vcmp.lt.s32.totalorder %v6254_v1, %v6523_v22  ;;  %v545_v14 = vadd.s32 48, %v6251_v41  ;;  %vm929_vm15 = vcmp.gt.f32.partialorder %v6315_v21, %v6514_v29  ;;  %v6690_v0 = vpop.permute.xlu0 %765  ;;  %v6709_v18 = vadd.s32 %v6257_v19, %v564_v16 }
  0xd4   : > { %5066 = vmatprep.mubr.msk.bf16.mxu0 %vm5065_vm1, %v9636_v31  ;;  %vm1403_vm4 = vmand %vm1019_vm13, %vm1211_vm14  ;;  %vm923_vm14 = vcmp.gt.f32.partialorder %v6315_v21, %v6499_v63  ;;  %v6658_v5 = vpop.permute.xlu1 %680 }
  0xd5   : > { %vm1409_vm5 = vmand %vm1025_vm12, %vm1217_vm0  ;;  %v6648_v43 = vadd.s32 %v6257_v19, %v545_v14  ;;  %v563_v14 = vadd.s32 192, %v6251_v41  ;;  %9640 = vst [vmem:[#allocation35_spill] sm:$0xff] %v6709_v18 }
  0xd6   : > { %vm1595_vm6 = vmor %vm827_vm2, %vm1403_vm4  ;;  %vm1128_vm2 = vcmp.eq.f32.partialorder %v6277_v55, %v6618_v32 }
  0xd7   : > { %vm1601_vm9 = vmor %vm833_vm3, %vm1409_vm5  ;;  %vm1320_vm3 = vcmp.lt.s32.totalorder %v6263_v58, %v6625_v2  ;;  %vm1134_vm5 = vcmp.eq.f32.partialorder %v6277_v55, %v6627_v42  ;;  %v6701_v39 = vadd.s32 %v6257_v19, %v563_v14  ;;  %v548_v14 = vadd.s32 72, %v6251_v41  ;;  %v6722_v16 = vpop.permute.xlu0 %685 }
  0xd8   : > { %vm5067_vm13 = vmpackc.low %vm1601_vm9, %vm1595_vm6  ;;  %vm1326_vm6 = vcmp.lt.s32.totalorder %v6263_v58, %v6632_v7  ;;  %vm942_vm9 = vcmp.gt.f32.partialorder %v6277_v55, %v6627_v42  ;;  %v6704_v28 = vpop.permute.xlu1 %770 }
  0xd9   : > { %5068 = vmatmul.mubr.msk.bf16.gmra.mrb[8].mxu0 %vm5067_vm13, %v9636_v31  ;;  %vm1499_vm12 = vmand %vm1115_vm7, %vm1307_vm8  ;;  %vm936_vm8 = vcmp.gt.f32.partialorder %v6277_v55, %v6618_v32  ;;  %9639 = vst [vmem:[#allocation34_spill] sm:$0xff] %v6704_v28  ;;  %v6731_v13 = vadd.s32 %v6257_v19, %v548_v14  ;;  %v9645_v14 = vsub.s32 2, %v6251_v41 }
  0xda   : > { %vm1505_vm0 = vmand %vm1121_vm10, %vm1313_vm11 }
  0xdb   : > { %vm1691_vm1 = vmor %vm923_vm14, %vm1499_vm12  ;;  %vm1032_vm14 = vcmp.eq.f32.partialorder %v6277_v55, %v6650_v49  ;;  %v3122_v17 = vrot.slane %v6245_v56, %v9645_v14 }
  0xdc   : > { %vm1697_vm4 = vmor %vm929_vm15, %vm1505_vm0  ;;  %vm1224_vm15 = vcmp.lt.s32.totalorder %v6263_v58, %v6648_v43  ;;  %vm1038_vm0 = vcmp.eq.f32.partialorder %v6277_v55, %v6658_v5  ;;  %v6736_v46 = vpop.permute.xlu1 %690 }
  0xdd   : > { %vm5099_vm7 = vmpackc.low %vm1697_vm4, %vm1691_vm1  ;;  %vm1230_vm1 = vcmp.lt.s32.totalorder %v6263_v58, %v6655_v44 }
  0xde   : > { %5100 = vmatmul.mubr.msk.bf16.gmra.mrb[8].mxu1 %vm5099_vm7, %v9636_v31  ;;  %vm1512_vm10 = vmand %vm1128_vm2, %vm1320_vm3  ;;  %vm840_vm7 = vcmp.gt.f32.partialorder %v6277_v55, %v6650_v49  ;;  %vm846_vm2 = vcmp.gt.f32.partialorder %v6277_v55, %v6658_v5 }
  0xdf   : > { %vm1518_vm11 = vmand %vm1134_vm5, %vm1326_vm6 }
  0xe0   : > { %vm1704_vm13 = vmor %vm936_vm8, %vm1512_vm10  ;;  %vm1031_vm8 = vcmp.eq.f32.partialorder %v6315_v21, %v6650_v49 }
  0xe1   : > { %vm1710_vm12 = vmor %vm942_vm9, %vm1518_vm11  ;;  %vm1223_vm9 = vcmp.lt.s32.totalorder %v6254_v1, %v6648_v43  ;;  %vm1037_vm11 = vcmp.eq.f32.partialorder %v6315_v21, %v6658_v5 }
  0xe2   : > { %vm5101_vm4 = vmpackc.low %vm1710_vm12, %vm1704_vm13  ;;  %vm1229_vm13 = vcmp.lt.s32.totalorder %v6254_v1, %v6655_v44 }
  0xe3   : > { %5102 = vmatprep.mubr.msk.bf16.mxu1 %vm5101_vm4, %v9636_v31  ;;  %vm1416_vm3 = vmand %vm1032_vm14, %vm1224_vm15  ;;  %vm839_vm4 = vcmp.gt.f32.partialorder %v6315_v21, %v6650_v49  ;;  %vm845_vm14 = vcmp.gt.f32.partialorder %v6315_v21, %v6658_v5 }
  0xe4   : > { %vm1422_vm5 = vmand %vm1038_vm0, %vm1230_vm1 }
  0xe5   : > { %vm1608_vm6 = vmor %vm840_vm7, %vm1416_vm3  ;;  %vm1127_vm7 = vcmp.eq.f32.partialorder %v6315_v21, %v6618_v32 }
  0xe6   : > { %vm1614_vm10 = vmor %vm846_vm2, %vm1422_vm5  ;;  %vm1319_vm2 = vcmp.lt.s32.totalorder %v6254_v1, %v6625_v2  ;;  %vm1133_vm5 = vcmp.eq.f32.partialorder %v6315_v21, %v6627_v42 }
  0xe7   : > { %vm5069_vm12 = vmpackc.low %vm1614_vm10, %vm1608_vm6  ;;  %vm1325_vm6 = vcmp.lt.s32.totalorder %v6254_v1, %v6632_v7  ;;  %vm941_vm10 = vcmp.gt.f32.partialorder %v6315_v21, %v6627_v42 }
  0xe8   : > { %5070 = vmatprep.mubr.msk.bf16.mxu0 %vm5069_vm12, %v9636_v31  ;;  %vm1415_vm15 = vmand %vm1031_vm8, %vm1223_vm9  ;;  %vm935_vm9 = vcmp.gt.f32.partialorder %v6315_v21, %v6618_v32 }
  0xe9   : > { %vm1421_vm0 = vmand %vm1037_vm11, %vm1229_vm13 }
  0xea   : > { %vm1607_vm1 = vmor %vm839_vm4, %vm1415_vm15  ;;  %vm1140_vm4 = vcmp.eq.f32.partialorder %v6277_v55, %v6690_v0 }
  0xeb   : > { %vm1613_vm3 = vmor %vm845_vm14, %vm1421_vm0  ;;  %vm1332_vm14 = vcmp.lt.s32.totalorder %v6263_v58, %v6701_v39  ;;  %vm1146_vm0 = vcmp.eq.f32.partialorder %v6277_v55, %v6704_v28 }
  0xec   : > { %vm5071_vm8 = vmpackc.low %vm1613_vm3, %vm1607_vm1  ;;  %vm1338_vm1 = vcmp.lt.s32.totalorder %v6263_v58, %v6709_v18  ;;  %vm954_vm3 = vcmp.gt.f32.partialorder %v6277_v55, %v6704_v28 }
  0xed   : > { %5072 = vmatmul.mubr.msk.bf16.gmra.mrb[12].mxu0 %vm5071_vm8, %v9636_v31  ;;  %vm1511_vm11 = vmand %vm1127_vm7, %vm1319_vm2  ;;  %vm948_vm2 = vcmp.gt.f32.partialorder %v6277_v55, %v6690_v0  ;;  %vm1044_vm8 = vcmp.eq.f32.partialorder %v6277_v55, %v6722_v16 }
  0xee   : > { %vm1517_vm13 = vmand %vm1133_vm5, %vm1325_vm6 }
  0xef   : > { %vm1703_vm12 = vmor %vm935_vm9, %vm1511_vm11  ;;  %vm1236_vm9 = vcmp.lt.s32.totalorder %v6263_v58, %v6720_v30 }
  0xf0   : > { %vm1709_vm15 = vmor %vm941_vm10, %vm1517_vm13  ;;  %vm852_vm13 = vcmp.gt.f32.partialorder %v6277_v55, %v6722_v16 }
  0xf1   : > { %vm5103_vm7 = vmpackc.low %vm1709_vm15, %vm1703_vm12  ;;  %vm1050_vm12 = vcmp.eq.f32.partialorder %v6277_v55, %v6736_v46 }
  0xf2   : > { %5104 = vmatmul.mubr.msk.bf16.gmra.mrb[12].mxu1 %vm5103_vm7, %v9636_v31  ;;  %vm1524_vm5 = vmand %vm1140_vm4, %vm1332_vm14  ;;  %vm1242_vm4 = vcmp.lt.s32.totalorder %v6263_v58, %v6731_v13  ;;  %vm3141_vm14 = vcmask 1040384  }
  0xf3   : > { %vm1530_vm6 = vmand %vm1146_vm0, %vm1338_vm1  ;;  %v3142_v11 = vsel %vm3141_vm14, %v3114_v37, 0.0  ;;  %v3143_v14 = vsel %vm3141_vm14, %v3118_v53, 0.0  ;;  %v3145_v20 = vsel %vm3141_vm14, %v3122_v17, 0.0  ;;  %vm858_vm0 = vcmp.gt.f32.partialorder %v6277_v55, %v6736_v46 }
  0xf4   : > { %vm6749_vm10 = vmor %vm948_vm2, %vm1524_vm5  ;;  %v3144_v34 = vadd.f32 %v3143_v14, %v3142_v11  ;;  %v9648_v37 = vsub.s32 5, %v6251_v41  ;;  %v3147_v17 = vsel %vm3141_vm14, %v3126_v60, 0.0  ;;  %vm1235_vm5 = vcmp.lt.s32.totalorder %v6254_v1, %v6720_v30 }
  0xf5   : > { %vm1722_vm11 = vmor %vm954_vm3, %vm1530_vm6  ;;  %vm1043_vm3 = vcmp.eq.f32.partialorder %v6315_v21, %v6722_v16  ;;  %v3149_v60 = vsel %vm3141_vm14, %v3130_v25, 0.0  ;;  %v6816_v25 = vpop.permute.xlu0 %775 }
  0xf6   : > { %vm5105_vm15 = vmpackc.low %vm1722_vm11, %vm6749_vm10  ;;  %v3134_v53 = vrot.slane %v6245_v56, %v9648_v37  ;;  %v3146_v52 = vadd.f32 %v3145_v20, %v3144_v34  ;;  %vm851_vm11 = vcmp.gt.f32.partialorder %v6315_v21, %v6722_v16  ;;  %v565_v56 = vadd.s32 208, %v6251_v41  ;;  %9649 = vst [vmem:[#allocation36_spill] sm:$0xff] %v6816_v25 }
  0xf7   : > { %5106 = vmatprep.mubr.msk.bf16.mxu1 %vm5105_vm15, %v9636_v31  ;;  %vm1428_vm1 = vmand %vm1044_vm8, %vm1236_vm9  ;;  %vm1049_vm8 = vcmp.eq.f32.partialorder %v6315_v21, %v6736_v46  ;;  %vm1241_vm9 = vcmp.lt.s32.totalorder %v6254_v1, %v6731_v13  ;;  %v566_v20 = vadd.s32 216, %v6251_v41 }
  0xf8   : > { %vm1434_vm7 = vmand %vm1050_vm12, %vm1242_vm4  ;;  %v3148_v11 = vadd.f32 %v3147_v17, %v3146_v52  ;;  %v3151_v14 = vsel %vm3141_vm14, %v3134_v53, 0.0  ;;  %v6823_v37 = vadd.s32 %v6257_v19, %v565_v56  ;;  %v6825_v17 = vpop.permute.xlu1 %780  ;;  %v550_v56 = vadd.s32 88, %v6251_v41 }
  0xf9   : > { %vm1620_vm2 = vmor %vm852_vm13, %vm1428_vm1  ;;  %vm857_vm13 = vcmp.gt.f32.partialorder %v6315_v21, %v6736_v46  ;;  %vm1331_vm1 = vcmp.lt.s32.totalorder %v6254_v1, %v6701_v39  ;;  %9651 = vst [vmem:[#allocation38_spill] sm:$0xff] %v6825_v17  ;;  %v6830_v52 = vadd.s32 %v6257_v19, %v566_v20  ;;  %v6851_v20 = vpop.permute.xlu0 %695 }
  0xfa   : > { %vm1626_vm6 = vmor %vm858_vm0, %vm1434_vm7  ;;  %v3150_v34 = vadd.f32 %v3149_v60, %v3148_v11  ;;  %vm1139_vm0 = vcmp.eq.f32.partialorder %v6315_v21, %v6690_v0  ;;  %9650 = vst [vmem:[#allocation37_spill] sm:$0xff] %v6823_v37  ;;  %v549_v60 = vadd.s32 80, %v6251_v41 }
  0xfb   : > { %vm5073_vm10 = vmpackc.low %vm1626_vm6, %vm1620_vm2  ;;  %vm1145_vm2 = vcmp.eq.f32.partialorder %v6315_v21, %v6704_v28  ;;  %9652 = vst [vmem:[#allocation39_spill] sm:$0xff] %v6830_v52  ;;  %vm953_vm6 = vcmp.gt.f32.partialorder %v6315_v21, %v6704_v28  ;;  %v553_v28 = vadd.s32 112, %v6251_v41 }
  0xfc   : > { %5074 = vmatprep.mubr.msk.bf16.mxu0 %vm5073_vm10, %v9636_v31  ;;  %vm1427_vm12 = vmand %vm1043_vm3, %vm1235_vm5  ;;  %vm1337_vm3 = vcmp.lt.s32.totalorder %v6254_v1, %v6709_v18  ;;  %v3152_v53 = vadd.f32 %v3151_v14, %v3150_v34  ;;  %vm947_vm5 = vcmp.gt.f32.partialorder %v6315_v21, %v6690_v0  ;;  %v6849_v11 = vadd.s32 %v6257_v19, %v549_v60  ;;  %v6859_v34 = vpop.permute.xlu1 %700 }
  0xfd   : > { %vm1433_vm4 = vmand %vm1049_vm8, %vm1241_vm9  ;;  %v6856_v14 = vadd.s32 %v6257_v19, %v550_v56  ;;  %v568_v60 = vadd.s32 232, %v6251_v41  ;;  %v6895_v56 = vpop.permute.xlu0 %785 }
  0xfe   : > { %vm1619_vm15 = vmor %vm851_vm11, %vm1427_vm12  ;;  %3153 = vadd.xlane.f32.xlu0 %v3152_v53  ;;  %vm1152_vm11 = vcmp.eq.f32.partialorder %v6277_v55, %v6816_v25  ;;  %v567_v53 = vadd.s32 224, %v6251_v41  ;;  %9653 = vst [vmem:[#allocation40_spill] sm:$0xff] %v6895_v56 }
  0xff   : > { %vm1625_vm7 = vmor %vm857_vm13, %vm1433_vm4  ;;  %vm1344_vm13 = vcmp.lt.s32.totalorder %v6263_v58, %v6823_v37  ;;  %vm1158_vm4 = vcmp.eq.f32.partialorder %v6277_v55, %v6825_v17  ;;  %v6909_v47 = vadd.s32 %v6257_v19, %v568_v60  ;;  %v6925_v60 = vadd.s32 %v6257_v19, %v551_v33 }
 0x100   : > { %vm5075_vm14 = vmpackc.low %vm1625_vm7, %vm1619_vm15  ;;  %vm1350_vm15 = vcmp.lt.s32.totalorder %v6263_v58, %v6830_v52  ;;  %vm966_vm7 = vcmp.gt.f32.partialorder %v6277_v55, %v6825_v17  ;;  %v6902_v10 = vadd.s32 %v6257_v19, %v567_v53  ;;  %v6904_v61 = vpop.permute.xlu1 %790  ;;  %v552_v53 = vadd.s32 104, %v6251_v41 }
 0x101   : > { %5076 = vmatmul.mubr.msk.bf16.gmra.mrb[16].mxu0 %vm5075_vm14, %v9636_v31  ;;  %vm1523_vm8 = vmand %vm1139_vm0, %vm1331_vm1  ;;  %vm960_vm1 = vcmp.gt.f32.partialorder %v6277_v55, %v6816_v25  ;;  %9655 = vst [vmem:[#allocation42_spill] sm:$0xff] %v6904_v61  ;;  %v6927_v24 = vpop.permute.xlu0 %705  ;;  %v569_v33 = vadd.s32 240, %v6251_v41 }
 0x102   : > { %vm1529_vm9 = vmand %vm1145_vm2, %vm1337_vm3  ;;  %9654 = vst [vmem:[#allocation41_spill] sm:$0xff] %v6902_v10 }
 0x103   : > { %vm1715_vm10 = vmor %vm947_vm5, %vm1523_vm8  ;;  %vm1056_vm5 = vcmp.eq.f32.partialorder %v6277_v55, %v6851_v20  ;;  %9656 = vst [vmem:[#allocation43_spill] sm:$0xff] %v6909_v47 }
 0x104   : > { %vm1721_vm12 = vmor %vm953_vm6, %vm1529_vm9  ;;  %vm1248_vm6 = vcmp.lt.s32.totalorder %v6263_v58, %v6849_v11  ;;  %vm1062_vm9 = vcmp.eq.f32.partialorder %v6277_v55, %v6859_v34 }
 0x105   : > { %vm5107_vm0 = vmpackc.low %vm1721_vm12, %vm1715_vm10  ;;  %vm1254_vm10 = vcmp.lt.s32.totalorder %v6263_v58, %v6856_v14 }
 0x106   : > { %5108 = vmatmul.mubr.msk.bf16.gmra.mrb[16].mxu1 %vm5107_vm0, %v9636_v31  ;;  %vm1536_vm2 = vmand %vm1152_vm11, %vm1344_vm13  ;;  %vm864_vm0 = vcmp.gt.f32.partialorder %v6277_v55, %v6851_v20  ;;  %vm870_vm11 = vcmp.gt.f32.partialorder %v6277_v55, %v6859_v34 }
 0x107   : > { %vm1542_vm3 = vmand %vm1158_vm4, %vm1350_vm15 }
 0x108   : > { %vm1728_vm14 = vmor %vm960_vm1, %vm1536_vm2  ;;  %vm1055_vm1 = vcmp.eq.f32.partialorder %v6315_v21, %v6851_v20 }
 0x109   : > { %vm1734_vm8 = vmor %vm966_vm7, %vm1542_vm3  ;;  %vm1247_vm7 = vcmp.lt.s32.totalorder %v6254_v1, %v6849_v11  ;;  %vm1061_vm3 = vcmp.eq.f32.partialorder %v6315_v21, %v6859_v34 }
 0x10a   : > { %vm5109_vm12 = vmpackc.low %vm1734_vm8, %vm1728_vm14  ;;  %vm1253_vm14 = vcmp.lt.s32.totalorder %v6254_v1, %v6856_v14 }
 0x10b   : > { %5110 = vmatprep.mubr.msk.bf16.mxu1 %vm5109_vm12, %v9636_v31  ;;  %vm1440_vm13 = vmand %vm1056_vm5, %vm1248_vm6  ;;  %vm863_vm12 = vcmp.gt.f32.partialorder %v6315_v21, %v6851_v20  ;;  %vm869_vm5 = vcmp.gt.f32.partialorder %v6315_v21, %v6859_v34 }
 0x10c   : > { %vm1446_vm4 = vmand %vm1062_vm9, %vm1254_vm10 }
 0x10d   : > { %vm1632_vm15 = vmor %vm864_vm0, %vm1440_vm13  ;;  %vm1151_vm0 = vcmp.eq.f32.partialorder %v6315_v21, %v6816_v25 }
 0x10e   : > { %vm1638_vm2 = vmor %vm870_vm11, %vm1446_vm4  ;;  %vm1343_vm11 = vcmp.lt.s32.totalorder %v6254_v1, %v6823_v37  ;;  %vm1157_vm4 = vcmp.eq.f32.partialorder %v6315_v21, %v6825_v17  ;;  %v6971_v37 = vpop.permute.xlu0 %795 }
 0x10f   : > { %vm5077_vm8 = vmpackc.low %vm1638_vm2, %vm1632_vm15  ;;  %vm1349_vm15 = vcmp.lt.s32.totalorder %v6254_v1, %v6830_v52  ;;  %vm965_vm2 = vcmp.gt.f32.partialorder %v6315_v21, %v6825_v17  ;;  %v6932_v52 = vadd.s32 %v6257_v19, %v552_v53  ;;  %v6935_v17 = vpop.permute.xlu1 %710  ;;  %v570_v53 = vadd.s32 248, %v6251_v41 }
 0x110   : > { %5078 = vmatprep.mubr.msk.bf16.mxu0 %vm5077_vm8, %v9636_v31  ;;  %vm1439_vm6 = vmand %vm1055_vm1, %vm1247_vm7  ;;  %vm959_vm7 = vcmp.gt.f32.partialorder %v6315_v21, %v6816_v25  ;;  %v6978_v25 = vadd.s32 %v6257_v19, %v569_v33  ;;  %v554_v33 = vadd.s32 120, %v6251_v41 }
 0x111   : > { %vm1445_vm9 = vmand %vm1061_vm3, %vm1253_vm14 }
 0x112   : > { %vm1631_vm10 = vmor %vm863_vm12, %vm1439_vm6  ;;  %vm1164_vm12 = vcmp.eq.f32.partialorder %v6277_v55, %v6895_v56  ;;  %9657 = vst [vmem:[#allocation44_spill] sm:$0xff] %v6978_v25 }
 0x113   : > { %vm1637_vm13 = vmor %vm869_vm5, %vm1445_vm9  ;;  %vm1356_vm5 = vcmp.lt.s32.totalorder %v6263_v58, %v6902_v10  ;;  %vm1170_vm9 = vcmp.eq.f32.partialorder %v6277_v55, %v6904_v61  ;;  %v6980_v18 = vpop.permute.xlu1 %800 }
 0x114   : > { %vm5079_vm1 = vmpackc.low %vm1637_vm13, %vm1631_vm10  ;;  %vm1362_vm10 = vcmp.lt.s32.totalorder %v6263_v58, %v6909_v47  ;;  %vm978_vm13 = vcmp.gt.f32.partialorder %v6277_v55, %v6904_v61  ;;  %9658 = vst [vmem:[#allocation45_spill] sm:$0xff] %v6980_v18 }
 0x115   : > { %5080 = vmatmul.mubr.msk.bf16.gmra.mrb[20].mxu0 %vm5079_vm1, %v9636_v31  ;;  %vm1535_vm3 = vmand %vm1151_vm0, %vm1343_vm11  ;;  %vm972_vm11 = vcmp.gt.f32.partialorder %v6277_v55, %v6895_v56 }
 0x116   : > { %vm1541_vm14 = vmand %vm1157_vm4, %vm1349_vm15 }
 0x117   : > { %vm1727_vm8 = vmor %vm959_vm7, %vm1535_vm3  ;;  %vm1068_vm7 = vcmp.eq.f32.partialorder %v6277_v55, %v6927_v24 }
 0x118   : > { %vm1733_vm6 = vmor %vm965_vm2, %vm1541_vm14  ;;  %vm1260_vm2 = vcmp.lt.s32.totalorder %v6263_v58, %v6925_v60  ;;  %vm1074_vm14 = vcmp.eq.f32.partialorder %v6277_v55, %v6935_v17 }
 0x119   : > { %vm5111_vm0 = vmpackc.low %vm1733_vm6, %vm1727_vm8  ;;  %vm1266_vm8 = vcmp.lt.s32.totalorder %v6263_v58, %v6932_v52 }
 0x11a   : > { %5112 = vmatmul.mubr.msk.bf16.gmra.mrb[20].mxu1 %vm5111_vm0, %v9636_v31  ;;  %vm1548_vm4 = vmand %vm1164_vm12, %vm1356_vm5  ;;  %vm876_vm0 = vcmp.gt.f32.partialorder %v6277_v55, %v6927_v24  ;;  %vm882_vm12 = vcmp.gt.f32.partialorder %v6277_v55, %v6935_v17 }
 0x11b   : > { %vm1554_vm15 = vmand %vm1170_vm9, %vm1362_vm10 }
 0x11c   : > { %vm1740_vm1 = vmor %vm972_vm11, %vm1548_vm4  ;;  %vm1067_vm11 = vcmp.eq.f32.partialorder %v6315_v21, %v6927_v24 }
 0x11d   : > { %vm1746_vm3 = vmor %vm978_vm13, %vm1554_vm15  ;;  %vm1259_vm13 = vcmp.lt.s32.totalorder %v6254_v1, %v6925_v60  ;;  %vm1073_vm15 = vcmp.eq.f32.partialorder %v6315_v21, %v6935_v17 }
 0x11e   : > { %vm5113_vm6 = vmpackc.low %vm1746_vm3, %vm1740_vm1  ;;  %vm1265_vm1 = vcmp.lt.s32.totalorder %v6254_v1, %v6932_v52 }
 0x11f   : > { %5114 = vmatprep.mubr.msk.bf16.mxu1 %vm5113_vm6, %v9636_v31  ;;  %vm1452_vm5 = vmand %vm1068_vm7, %vm1260_vm2  ;;  %vm875_vm6 = vcmp.gt.f32.partialorder %v6315_v21, %v6927_v24  ;;  %vm881_vm7 = vcmp.gt.f32.partialorder %v6315_v21, %v6935_v17 }
 0x120   : > { %vm1458_vm9 = vmand %vm1074_vm14, %vm1266_vm8 }
 0x121   : > { %vm1644_vm10 = vmor %vm876_vm0, %vm1452_vm5  ;;  %vm1163_vm0 = vcmp.eq.f32.partialorder %v6315_v21, %v6895_v56 }
 0x122   : > { %vm1650_vm4 = vmor %vm882_vm12, %vm1458_vm9  ;;  %vm1355_vm12 = vcmp.lt.s32.totalorder %v6254_v1, %v6902_v10  ;;  %vm1169_vm9 = vcmp.eq.f32.partialorder %v6315_v21, %v6904_v61  ;;  %v6985_v10 = vadd.s32 %v6257_v19, %v570_v53  ;;  %v7001_v53 = vadd.s32 %v6257_v19, %v553_v28 }
 0x123   : > { %vm5081_vm3 = vmpackc.low %vm1650_vm4, %vm1644_vm10  ;;  %vm1361_vm10 = vcmp.lt.s32.totalorder %v6254_v1, %v6909_v47  ;;  %vm977_vm4 = vcmp.gt.f32.partialorder %v6315_v21, %v6904_v61  ;;  %v7003_v47 = vpop.permute.xlu0 %715  ;;  %v7008_v61 = vadd.s32 %v6257_v19, %v554_v33  ;;  %v9660_v28 = vsub.s32 3, %v6251_v41 }
 0x124   : > { %5082 = vmatprep.mubr.msk.bf16.mxu0 %vm5081_vm3, %v9636_v31  ;;  %vm1451_vm2 = vmand %vm1067_vm11, %vm1259_vm13  ;;  %vm971_vm13 = vcmp.gt.f32.partialorder %v6315_v21, %v6895_v56  ;;  %9659 = vst [vmem:[#allocation46_spill] sm:$0xff] %v6985_v10  ;;  %v7011_v56 = vpop.permute.xlu1 %720  ;;  %v7055_v19 = vadd.s32 384, %v6254_v1 }
 0x125   : > { %vm1457_vm14 = vmand %vm1073_vm15, %vm1265_vm1 }
 0x126   : > { %vm1643_vm8 = vmor %vm875_vm6, %vm1451_vm2  ;;  %vm1176_vm6 = vcmp.eq.f32.partialorder %v6277_v55, %v6971_v37 }
 0x127   : > { %vm1649_vm5 = vmor %vm881_vm7, %vm1457_vm14  ;;  %vm1368_vm7 = vcmp.lt.s32.totalorder %v6263_v58, %v6978_v25  ;;  %vm1182_vm14 = vcmp.eq.f32.partialorder %v6277_v55, %v6980_v18 }
 0x128   : > { %vm5083_vm11 = vmpackc.low %vm1649_vm5, %vm1643_vm8  ;;  %vm1374_vm8 = vcmp.lt.s32.totalorder %v6263_v58, %v6985_v10  ;;  %vm990_vm5 = vcmp.gt.f32.partialorder %v6277_v55, %v6980_v18 }
 0x129   : > { %5084 = vmatmul.mubr.msk.bf16.gmra.mrb[24].mxu0 %vm5083_vm11, %v9636_v31  ;;  %vm1547_vm15 = vmand %vm1163_vm0, %vm1355_vm12  ;;  %vm984_vm12 = vcmp.gt.f32.partialorder %v6277_v55, %v6971_v37 }
 0x12a   : > { %vm1553_vm1 = vmand %vm1169_vm9, %vm1361_vm10 }
 0x12b   : > { %vm1739_vm3 = vmor %vm971_vm13, %vm1547_vm15  ;;  %vm1080_vm13 = vcmp.eq.f32.partialorder %v6277_v55, %v7003_v47 }
 0x12c   : > { %vm1745_vm2 = vmor %vm977_vm4, %vm1553_vm1  ;;  %vm1272_vm4 = vcmp.lt.s32.totalorder %v6263_v58, %v7001_v53  ;;  %vm1086_vm1 = vcmp.eq.f32.partialorder %v6277_v55, %v7011_v56 }
 0x12d   : > { %vm5115_vm0 = vmpackc.low %vm1745_vm2, %vm1739_vm3  ;;  %vm1278_vm3 = vcmp.lt.s32.totalorder %v6263_v58, %v7008_v61  ;;  %v7048_v58 = vrot.slane %v6260_v15, %v9660_v28  ;;  %v9662_v28 = vsub.s32 2, %v6251_v41 }
 0x12e   : > { %5116 = vmatmul.mubr.msk.bf16.gmra.mrb[24].mxu1 %vm5115_vm0, %v9636_v31  ;;  %vm1560_vm9 = vmand %vm1176_vm6, %vm1368_vm7  ;;  %vm888_vm0 = vcmp.gt.f32.partialorder %v6277_v55, %v7003_v47  ;;  %vm894_vm6 = vcmp.gt.f32.partialorder %v6277_v55, %v7011_v56  ;;  %v9661_v55 = vsub.s32 5, %v6251_v41 }
 0x12f   : > { %vm1566_vm10 = vmand %vm1182_vm14, %vm1374_vm8 }
 0x130   : > { %vm1752_vm11 = vmor %vm984_vm12, %vm1560_vm9  ;;  %vm1079_vm12 = vcmp.eq.f32.partialorder %v6315_v21, %v7003_v47  ;;  %v7069_v33 = vrot.slane %v6260_v15, %v9661_v55  ;;  %v7090_v55 = vrot.slane %v6260_v15, %v9662_v28  ;;  %v9663_v28 = vsub.s32 4, %v6251_v41 }
 0x131   : > { %vm1758_vm15 = vmor %vm990_vm5, %vm1566_vm10  ;;  %vm1271_vm5 = vcmp.lt.s32.totalorder %v6254_v1, %v7001_v53  ;;  %vm1085_vm10 = vcmp.eq.f32.partialorder %v6315_v21, %v7011_v56 }
 0x132   : > { %vm5117_vm2 = vmpackc.low %vm1758_vm15, %vm1752_vm11  ;;  %vm1277_vm11 = vcmp.lt.s32.totalorder %v6254_v1, %v7008_v61 }
 0x133   : > { %5118 = vmatprep.mubr.msk.bf16.mxu1 %vm5117_vm2, %v9636_v31  ;;  %vm1464_vm7 = vmand %vm1080_vm13, %vm1272_vm4  ;;  %vm887_vm2 = vcmp.gt.f32.partialorder %v6315_v21, %v7003_v47  ;;  %vm893_vm13 = vcmp.gt.f32.partialorder %v6315_v21, %v7011_v56 }
 0x134   : > { %vm1470_vm14 = vmand %vm1086_vm1, %vm1278_vm3 }
 0x135   : > { %vm1656_vm8 = vmor %vm888_vm0, %vm1464_vm7  ;;  %vm1175_vm0 = vcmp.eq.f32.partialorder %v6315_v21, %v6971_v37 }
 0x136   : > { %vm1662_vm9 = vmor %vm894_vm6, %vm1470_vm14  ;;  %vm1367_vm6 = vcmp.lt.s32.totalorder %v6254_v1, %v6978_v25  ;;  %vm1181_vm14 = vcmp.eq.f32.partialorder %v6315_v21, %v6980_v18  ;;  %v7118_v25 = vadd.s32 512, %v6254_v1 }
 0x137   : > { %vm5085_vm15 = vmpackc.low %vm1662_vm9, %vm1656_vm8  ;;  %vm1373_vm8 = vcmp.lt.s32.totalorder %v6254_v1, %v6985_v10  ;;  %vm989_vm9 = vcmp.gt.f32.partialorder %v6315_v21, %v6980_v18  ;;  %v7097_v10 = vadd.s32 256, %v6254_v1  ;;  %v7111_v18 = vrot.slane %v6260_v15, %v9663_v28 }
 0x138   : > { %5086 = vmatprep.mubr.msk.bf16.mxu0 %vm5085_vm15, %v9636_v31  ;;  %vm1463_vm4 = vmand %vm1079_vm12, %vm1271_vm5  ;;  %vm983_vm5 = vcmp.gt.f32.partialorder %v6315_v21, %v6971_v37  ;;  %v7076_v21 = vadd.s32 640, %v6254_v1 }
 0x139   : > { %vm1469_vm1 = vmand %vm1085_vm10, %vm1277_vm11 }
 0x13a   : > { %vm1655_vm3 = vmor %vm887_vm2, %vm1463_vm4  ;;  %vm998_vm2 = vcmp.eq.f32.partialorder %v7048_v58, %v6292_v9 }
 0x13b   : > { %vm1661_vm7 = vmor %vm893_vm13, %vm1469_vm1  ;;  %vm1190_vm13 = vcmp.lt.s32.totalorder %v7055_v19, %v6272_v38  ;;  %vm1004_vm1 = vcmp.eq.f32.partialorder %v7048_v58, %v6317_v51 }
 0x13c   : > { %vm5087_vm12 = vmpackc.low %vm1661_vm7, %vm1655_vm3  ;;  %vm1196_vm3 = vcmp.lt.s32.totalorder %v7055_v19, %v6287_v12  ;;  %vm812_vm7 = vcmp.gt.f32.partialorder %v7048_v58, %v6317_v51 }
 0x13d   : > { %5088 = vmatmul.mubr.msk.bf16.gmra.mrb[28].mxu0 %vm5087_vm12, %v9636_v31  ;;  %vm1559_vm10 = vmand %vm1175_vm0, %vm1367_vm6  ;;  %vm806_vm6 = vcmp.gt.f32.partialorder %v7048_v58, %v6292_v9 }
 0x13e   : > { %vm1565_vm11 = vmand %vm1181_vm14, %vm1373_vm8 }
 0x13f   : > { %vm1751_vm15 = vmor %vm983_vm5, %vm1559_vm10  ;;  %vm1000_vm5 = vcmp.eq.f32.partialorder %v7069_v33, %v6292_v9 }
 0x140   : > { %vm1757_vm4 = vmor %vm989_vm9, %vm1565_vm11  ;;  %vm1192_vm9 = vcmp.lt.s32.totalorder %v7076_v21, %v6272_v38  ;;  %vm1006_vm11 = vcmp.eq.f32.partialorder %v7069_v33, %v6317_v51 }
 0x141   : > { %vm5119_vm0 = vmpackc.low %vm1757_vm4, %vm1751_vm15  ;;  %vm1198_vm15 = vcmp.lt.s32.totalorder %v7076_v21, %v6287_v12  ;;  %vm814_vm4 = vcmp.gt.f32.partialorder %v7069_v33, %v6317_v51 }
 0x142   : > { %5120 = vmatmul.mubr.msk.bf16.gmra.mrb[28].mxu1 %vm5119_vm0, %v9636_v31  ;;  %vm1382_vm14 = vmand %vm998_vm2, %vm1190_vm13  ;;  %vm808_vm13 = vcmp.gt.f32.partialorder %v7069_v33, %v6292_v9 }
 0x143   : > { %vm1388_vm8 = vmand %vm1004_vm1, %vm1196_vm3 }
 0x144   : > { %vm1574_vm12 = vmor %vm806_vm6, %vm1382_vm14  ;;  %vm997_vm6 = vcmp.eq.f32.partialorder %v7090_v55, %v6292_v9 }
 0x145   : > { %vm1580_vm10 = vmor %vm812_vm7, %vm1388_vm8  ;;  %vm1189_vm7 = vcmp.lt.s32.totalorder %v7097_v10, %v6272_v38  ;;  %vm1003_vm8 = vcmp.eq.f32.partialorder %v7090_v55, %v6317_v51 }
 0x146   : > { %vm5121_vm2 = vmpackc.low %vm1580_vm10, %vm1574_vm12  ;;  %vm1195_vm12 = vcmp.lt.s32.totalorder %v7097_v10, %v6287_v12  ;;  %vm811_vm10 = vcmp.gt.f32.partialorder %v7090_v55, %v6317_v51 }
 0x147   : > { %5122 = vmatprep.mubr.msk.bf16.mxu1 %vm5121_vm2, %v9636_v31  ;;  %vm1384_vm1 = vmand %vm1000_vm5, %vm1192_vm9  ;;  %vm805_vm9 = vcmp.gt.f32.partialorder %v7090_v55, %v6292_v9 }
 0x148   : > { %vm1390_vm3 = vmand %vm1006_vm11, %vm1198_vm15 }
 0x149   : > { %vm1576_vm0 = vmor %vm808_vm13, %vm1384_vm1  ;;  %vm999_vm13 = vcmp.eq.f32.partialorder %v7111_v18, %v6292_v9 }
 0x14a   : > { %vm1582_vm14 = vmor %vm814_vm4, %vm1390_vm3  ;;  %vm1191_vm4 = vcmp.lt.s32.totalorder %v7118_v25, %v6272_v38  ;;  %vm1005_vm3 = vcmp.eq.f32.partialorder %v7111_v18, %v6317_v51 }
 0x14b   : > { %vm5185_vm5 = vmpackc.low %vm1582_vm14, %vm1576_vm0  ;;  %vm1197_vm0 = vcmp.lt.s32.totalorder %v7118_v25, %v6287_v12 }
 0x14c   : > { %5186 = vmatprep.mubr.msk.bf16.mxu0 %vm5185_vm5, %v9636_v31  ;;  %vm1381_vm11 = vmand %vm997_vm6, %vm1189_vm7  ;;  %vm807_vm5 = vcmp.gt.f32.partialorder %v7111_v18, %v6292_v9  ;;  %vm813_vm6 = vcmp.gt.f32.partialorder %v7111_v18, %v6317_v51 }
 0x14d   : > { %vm1387_vm15 = vmand %vm1003_vm8, %vm1195_vm12 }
 0x14e   : > { %vm1573_vm2 = vmor %vm805_vm9, %vm1381_vm11  ;;  %vm1010_vm9 = vcmp.eq.f32.partialorder %v7048_v58, %v6411_v8 }
 0x14f   : > { %vm1579_vm1 = vmor %vm811_vm10, %vm1387_vm15  ;;  %vm1202_vm10 = vcmp.lt.s32.totalorder %v7055_v19, %v6406_v54  ;;  %vm1016_vm15 = vcmp.eq.f32.partialorder %v7048_v58, %v6419_v27 }
 0x150   : > { %vm5123_vm14 = vmpackc.low %vm1579_vm1, %vm1573_vm2  ;;  %vm1208_vm2 = vcmp.lt.s32.totalorder %v7055_v19, %v6416_v23 }
 0x151   : > { %5124 = vmatmul.mubr.msk.bf16.vlgmr.msra.gmra.mrb[32].mxu1 %vm5123_vm14, %v9636_v31  ;;  %vm1383_vm7 = vmand %vm999_vm13, %vm1191_vm4  ;;  %vm818_vm14 = vcmp.gt.f32.partialorder %v7048_v58, %v6411_v8  ;;  %vm824_vm13 = vcmp.gt.f32.partialorder %v7048_v58, %v6419_v27 }
 0x152   : > { %vm1389_vm8 = vmand %vm1005_vm3, %vm1197_vm0 }
 0x153   : > { %vm1575_vm12 = vmor %vm807_vm5, %vm1383_vm7  ;;  %vm1012_vm5 = vcmp.eq.f32.partialorder %v7069_v33, %v6411_v8 }
 0x154   : > { %vm1581_vm11 = vmor %vm813_vm6, %vm1389_vm8  ;;  %vm1204_vm6 = vcmp.lt.s32.totalorder %v7076_v21, %v6406_v54  ;;  %vm1018_vm8 = vcmp.eq.f32.partialorder %v7069_v33, %v6419_v27 }
 0x155   : > { %vm5187_vm1 = vmpackc.low %vm1581_vm11, %vm1575_vm12  ;;  %vm1210_vm12 = vcmp.lt.s32.totalorder %v7076_v21, %v6416_v23 }
 0x156   : > { %5188 = vmatmul.mubr.msk.bf16.vlgmr.msra.gmra.mrb[32].mxu0 %vm5187_vm1, %v9636_v31  ;;  %vm1394_vm4 = vmand %vm1010_vm9, %vm1202_vm10  ;;  %vm820_vm1 = vcmp.gt.f32.partialorder %v7069_v33, %v6411_v8  ;;  %vm826_vm9 = vcmp.gt.f32.partialorder %v7069_v33, %v6419_v27 }
 0x157   : > { %vm1400_vm3 = vmand %vm1016_vm15, %vm1208_vm2 }
 0x158   : > { %vm1586_vm0 = vmor %vm818_vm14, %vm1394_vm4  ;;  %vm1009_vm14 = vcmp.eq.f32.partialorder %v7090_v55, %v6411_v8 }
 0x159   : > { %vm1592_vm7 = vmor %vm824_vm13, %vm1400_vm3  ;;  %vm1201_vm13 = vcmp.lt.s32.totalorder %v7097_v10, %v6406_v54  ;;  %vm1015_vm3 = vcmp.eq.f32.partialorder %v7090_v55, %v6419_v27 }
 0x15a   : > { %vm5125_vm11 = vmpackc.low %vm1592_vm7, %vm1586_vm0  ;;  %vm1207_vm0 = vcmp.lt.s32.totalorder %v7097_v10, %v6416_v23 }
 0x15b   : > { %5126 = vmatprep.mubr.msk.bf16.mxu1 %vm5125_vm11, %v9636_v31  ;;  %vm1396_vm10 = vmand %vm1012_vm5, %vm1204_vm6  ;;  %vm817_vm11 = vcmp.gt.f32.partialorder %v7090_v55, %v6411_v8  ;;  %vm823_vm5 = vcmp.gt.f32.partialorder %v7090_v55, %v6419_v27 }
 0x15c   : > { %vm1402_vm15 = vmand %vm1018_vm8, %vm1210_vm12 }
 0x15d   : > { %vm1588_vm2 = vmor %vm820_vm1, %vm1396_vm10  ;;  %vm1011_vm1 = vcmp.eq.f32.partialorder %v7111_v18, %v6411_v8 }
 0x15e   : > { %vm1594_vm4 = vmor %vm826_vm9, %vm1402_vm15  ;;  %vm1203_vm9 = vcmp.lt.s32.totalorder %v7118_v25, %v6406_v54  ;;  %vm1017_vm15 = vcmp.eq.f32.partialorder %v7111_v18, %v6419_v27 }
 0x15f   : > { %vm5189_vm7 = vmpackc.low %vm1594_vm4, %vm1588_vm2  ;;  %vm1209_vm2 = vcmp.lt.s32.totalorder %v7118_v25, %v6416_v23 }
 0x160   : > { %5190 = vmatprep.mubr.msk.bf16.mxu0 %vm5189_vm7, %v9636_v31  ;;  %vm1393_vm6 = vmand %vm1009_vm14, %vm1201_vm13  ;;  %vm819_vm7 = vcmp.gt.f32.partialorder %v7111_v18, %v6411_v8  ;;  %vm825_vm14 = vcmp.gt.f32.partialorder %v7111_v18, %v6419_v27 }
 0x161   : > { %vm1399_vm8 = vmand %vm1015_vm3, %vm1207_vm0 }
 0x162   : > { %vm1585_vm12 = vmor %vm817_vm11, %vm1393_vm6  ;;  %vm1022_vm11 = vcmp.eq.f32.partialorder %v7048_v58, %v6564_v3 }
 0x163   : > { %vm1591_vm10 = vmor %vm823_vm5, %vm1399_vm8  ;;  %vm1214_vm5 = vcmp.lt.s32.totalorder %v7055_v19, %v6558_v26  ;;  %vm1028_vm8 = vcmp.eq.f32.partialorder %v7048_v58, %v6572_v59 }
 0x164   : > { %vm5127_vm4 = vmpackc.low %vm1591_vm10, %vm1585_vm12  ;;  %vm1220_vm12 = vcmp.lt.s32.totalorder %v7055_v19, %v6569_v4 }
 0x165   : > { %5128 = vmatmul.mubr.msk.bf16.gmra.mrb[36].mxu1 %vm5127_vm4, %v9636_v31  ;;  %vm1395_vm13 = vmand %vm1011_vm1, %vm1203_vm9  ;;  %vm830_vm4 = vcmp.gt.f32.partialorder %v7048_v58, %v6564_v3  ;;  %vm836_vm1 = vcmp.gt.f32.partialorder %v7048_v58, %v6572_v59 }
 0x166   : > { %vm1401_vm3 = vmand %vm1017_vm15, %vm1209_vm2 }
 0x167   : > { %vm1587_vm0 = vmor %vm819_vm7, %vm1395_vm13  ;;  %vm1024_vm7 = vcmp.eq.f32.partialorder %v7069_v33, %v6564_v3 }
 0x168   : > { %vm1593_vm6 = vmor %vm825_vm14, %vm1401_vm3  ;;  %vm1216_vm14 = vcmp.lt.s32.totalorder %v7076_v21, %v6558_v26  ;;  %vm1030_vm3 = vcmp.eq.f32.partialorder %v7069_v33, %v6572_v59 }
 0x169   : > { %vm5191_vm10 = vmpackc.low %vm1593_vm6, %vm1587_vm0  ;;  %vm1222_vm0 = vcmp.lt.s32.totalorder %v7076_v21, %v6569_v4 }
 0x16a   : > { %5192 = vmatmul.mubr.msk.bf16.gmra.mrb[36].mxu0 %vm5191_vm10, %v9636_v31  ;;  %vm1406_vm9 = vmand %vm1022_vm11, %vm1214_vm5  ;;  %vm832_vm10 = vcmp.gt.f32.partialorder %v7069_v33, %v6564_v3  ;;  %vm838_vm11 = vcmp.gt.f32.partialorder %v7069_v33, %v6572_v59 }
 0x16b   : > { %vm1412_vm15 = vmand %vm1028_vm8, %vm1220_vm12 }
 0x16c   : > { %vm1598_vm2 = vmor %vm830_vm4, %vm1406_vm9  ;;  %vm1021_vm4 = vcmp.eq.f32.partialorder %v7090_v55, %v6564_v3 }
 0x16d   : > { %vm1604_vm13 = vmor %vm836_vm1, %vm1412_vm15  ;;  %vm1213_vm1 = vcmp.lt.s32.totalorder %v7097_v10, %v6558_v26  ;;  %vm1027_vm15 = vcmp.eq.f32.partialorder %v7090_v55, %v6572_v59 }
 0x16e   : > { %vm5129_vm6 = vmpackc.low %vm1604_vm13, %vm1598_vm2  ;;  %vm1219_vm2 = vcmp.lt.s32.totalorder %v7097_v10, %v6569_v4 }
 0x16f   : > { %5130 = vmatprep.mubr.msk.bf16.mxu1 %vm5129_vm6, %v9636_v31  ;;  %vm1408_vm5 = vmand %vm1024_vm7, %vm1216_vm14  ;;  %vm829_vm6 = vcmp.gt.f32.partialorder %v7090_v55, %v6564_v3  ;;  %vm835_vm7 = vcmp.gt.f32.partialorder %v7090_v55, %v6572_v59 }
 0x170   : > { %vm1414_vm8 = vmand %vm1030_vm3, %vm1222_vm0 }
 0x171   : > { %vm1600_vm12 = vmor %vm832_vm10, %vm1408_vm5  ;;  %vm1023_vm10 = vcmp.eq.f32.partialorder %v7111_v18, %v6564_v3 }
 0x172   : > { %vm1606_vm9 = vmor %vm838_vm11, %vm1414_vm8  ;;  %vm1215_vm11 = vcmp.lt.s32.totalorder %v7118_v25, %v6558_v26  ;;  %vm1029_vm8 = vcmp.eq.f32.partialorder %v7111_v18, %v6572_v59 }
 0x173   : > { %vm5193_vm13 = vmpackc.low %vm1606_vm9, %vm1600_vm12  ;;  %vm1221_vm12 = vcmp.lt.s32.totalorder %v7118_v25, %v6569_v4 }
 0x174   : > { %5194 = vmatprep.mubr.msk.bf16.mxu0 %vm5193_vm13, %v9636_v31  ;;  %vm1405_vm14 = vmand %vm1021_vm4, %vm1213_vm1  ;;  %vm831_vm13 = vcmp.gt.f32.partialorder %v7111_v18, %v6564_v3  ;;  %vm837_vm4 = vcmp.gt.f32.partialorder %v7111_v18, %v6572_v59 }
 0x175   : > { %vm1411_vm3 = vmand %vm1027_vm15, %vm1219_vm2 }
 0x176   : > { %vm1597_vm0 = vmor %vm829_vm6, %vm1405_vm14  ;;  %vm1034_vm6 = vcmp.eq.f32.partialorder %v7048_v58, %v6650_v49 }
 0x177   : > { %vm1603_vm5 = vmor %vm835_vm7, %vm1411_vm3  ;;  %vm1226_vm7 = vcmp.lt.s32.totalorder %v7055_v19, %v6648_v43  ;;  %vm1040_vm3 = vcmp.eq.f32.partialorder %v7048_v58, %v6658_v5 }
 0x178   : > { %vm5131_vm9 = vmpackc.low %vm1603_vm5, %vm1597_vm0  ;;  %vm1232_vm0 = vcmp.lt.s32.totalorder %v7055_v19, %v6655_v44 }
 0x179   : > { %5132 = vmatmul.mubr.msk.bf16.gmra.mrb[40].mxu1 %vm5131_vm9, %v9636_v31  ;;  %vm1407_vm1 = vmand %vm1023_vm10, %vm1215_vm11  ;;  %vm842_vm9 = vcmp.gt.f32.partialorder %v7048_v58, %v6650_v49  ;;  %vm848_vm10 = vcmp.gt.f32.partialorder %v7048_v58, %v6658_v5 }
 0x17a   : > { %vm1413_vm15 = vmand %vm1029_vm8, %vm1221_vm12 }
 0x17b   : > { %vm1599_vm2 = vmor %vm831_vm13, %vm1407_vm1  ;;  %vm1036_vm13 = vcmp.eq.f32.partialorder %v7069_v33, %v6650_v49 }
 0x17c   : > { %vm1605_vm14 = vmor %vm837_vm4, %vm1413_vm15  ;;  %vm1228_vm4 = vcmp.lt.s32.totalorder %v7076_v21, %v6648_v43  ;;  %vm1042_vm15 = vcmp.eq.f32.partialorder %v7069_v33, %v6658_v5 }
 0x17d   : > { %vm5195_vm5 = vmpackc.low %vm1605_vm14, %vm1599_vm2  ;;  %vm1234_vm2 = vcmp.lt.s32.totalorder %v7076_v21, %v6655_v44 }
 0x17e   : > { %5196 = vmatmul.mubr.msk.bf16.gmra.mrb[40].mxu0 %vm5195_vm5, %v9636_v31  ;;  %vm1418_vm11 = vmand %vm1034_vm6, %vm1226_vm7  ;;  %vm844_vm5 = vcmp.gt.f32.partialorder %v7069_v33, %v6650_v49  ;;  %vm850_vm6 = vcmp.gt.f32.partialorder %v7069_v33, %v6658_v5 }
 0x17f   : > { %vm1424_vm8 = vmand %vm1040_vm3, %vm1232_vm0 }
 0x180   : > { %vm1610_vm12 = vmor %vm842_vm9, %vm1418_vm11  ;;  %vm1033_vm9 = vcmp.eq.f32.partialorder %v7090_v55, %v6650_v49 }
 0x181   : > { %vm1616_vm1 = vmor %vm848_vm10, %vm1424_vm8  ;;  %vm1225_vm10 = vcmp.lt.s32.totalorder %v7097_v10, %v6648_v43  ;;  %vm1039_vm8 = vcmp.eq.f32.partialorder %v7090_v55, %v6658_v5 }
 0x182   : > { %vm5133_vm14 = vmpackc.low %vm1616_vm1, %vm1610_vm12  ;;  %vm1231_vm12 = vcmp.lt.s32.totalorder %v7097_v10, %v6655_v44 }
 0x183   : > { %5134 = vmatprep.mubr.msk.bf16.mxu1 %vm5133_vm14, %v9636_v31  ;;  %vm1420_vm7 = vmand %vm1036_vm13, %vm1228_vm4  ;;  %vm841_vm14 = vcmp.gt.f32.partialorder %v7090_v55, %v6650_v49  ;;  %vm847_vm13 = vcmp.gt.f32.partialorder %v7090_v55, %v6658_v5 }
 0x184   : > { %vm1426_vm3 = vmand %vm1042_vm15, %vm1234_vm2  ;;  %v5268_v27 = vpop.f32.mrb[0].mxu0 }
 0x185   : > { %vm1612_vm0 = vmor %vm844_vm5, %vm1420_vm7  ;;  %vm1035_vm5 = vcmp.eq.f32.partialorder %v7111_v18, %v6650_v49 }
 0x186   : > { %vm1618_vm11 = vmor %vm850_vm6, %vm1426_vm3  ;;  %vm1227_vm6 = vcmp.lt.s32.totalorder %v7118_v25, %v6648_v43  ;;  %vm1041_vm3 = vcmp.eq.f32.partialorder %v7111_v18, %v6658_v5 }
 0x187   : > { %vm5197_vm1 = vmpackc.low %vm1618_vm11, %vm1612_vm0  ;;  %vm1233_vm0 = vcmp.lt.s32.totalorder %v7118_v25, %v6655_v44 }
 0x188   : > { %5198 = vmatprep.mubr.msk.bf16.mxu0 %vm5197_vm1, %v9636_v31  ;;  %vm1417_vm4 = vmand %vm1033_vm9, %vm1225_vm10  ;;  %vm843_vm1 = vcmp.gt.f32.partialorder %v7111_v18, %v6650_v49  ;;  %vm849_vm9 = vcmp.gt.f32.partialorder %v7111_v18, %v6658_v5 }
 0x189   : > { %vm1423_vm15 = vmand %vm1039_vm8, %vm1231_vm12 }
 0x18a   : > { %vm1609_vm2 = vmor %vm841_vm14, %vm1417_vm4  ;;  %vm1046_vm14 = vcmp.eq.f32.partialorder %v7048_v58, %v6722_v16 }
 0x18b   : > { %vm1615_vm7 = vmor %vm847_vm13, %vm1423_vm15  ;;  %vm1238_vm13 = vcmp.lt.s32.totalorder %v7055_v19, %v6720_v30  ;;  %vm1052_vm15 = vcmp.eq.f32.partialorder %v7048_v58, %v6736_v46  ;;  %v3154_v8 = vpop.xlane.xlu0 %3153 }
 0x18c   : > { %vm5135_vm11 = vmpackc.low %vm1615_vm7, %vm1609_vm2  ;;  %vm1244_vm2 = vcmp.lt.s32.totalorder %v7055_v19, %v6731_v13 }
 0x18d   : > { %5136 = vmatmul.mubr.msk.bf16.gmra.mrb[44].mxu1 %vm5135_vm11, %v9636_v31  ;;  %vm1419_vm10 = vmand %vm1035_vm5, %vm1227_vm6  ;;  %vm854_vm11 = vcmp.gt.f32.partialorder %v7048_v58, %v6722_v16  ;;  %vm860_vm5 = vcmp.gt.f32.partialorder %v7048_v58, %v6736_v46 }
 0x18e   : > { %vm1425_vm8 = vmand %vm1041_vm3, %vm1233_vm0 }
 0x18f   : > { %vm1611_vm12 = vmor %vm843_vm1, %vm1419_vm10  ;;  %vm1048_vm1 = vcmp.eq.f32.partialorder %v7069_v33, %v6722_v16 }
 0x190   : > { %vm1617_vm4 = vmor %vm849_vm9, %vm1425_vm8  ;;  %vm1240_vm9 = vcmp.lt.s32.totalorder %v7076_v21, %v6720_v30  ;;  %vm1054_vm8 = vcmp.eq.f32.partialorder %v7069_v33, %v6736_v46 }
 0x191   : > { %vm5199_vm7 = vmpackc.low %vm1617_vm4, %vm1611_vm12  ;;  %vm1246_vm12 = vcmp.lt.s32.totalorder %v7076_v21, %v6731_v13 }
 0x192   : > { %5200 = vmatmul.mubr.msk.bf16.gmra.mrb[44].mxu0 %vm5199_vm7, %v9636_v31  ;;  %vm1430_vm6 = vmand %vm1046_vm14, %vm1238_vm13  ;;  %vm856_vm7 = vcmp.gt.f32.partialorder %v7069_v33, %v6722_v16  ;;  %vm862_vm14 = vcmp.gt.f32.partialorder %v7069_v33, %v6736_v46 }
 0x193   : > { %vm1436_vm3 = vmand %vm1052_vm15, %vm1244_vm2 }
 0x194   : > { %vm1622_vm0 = vmor %vm854_vm11, %vm1430_vm6  ;;  %vm1045_vm11 = vcmp.eq.f32.partialorder %v7090_v55, %v6722_v16 }
 0x195   : > { %vm1628_vm10 = vmor %vm860_vm5, %vm1436_vm3  ;;  %vm1237_vm5 = vcmp.lt.s32.totalorder %v7097_v10, %v6720_v30  ;;  %vm1051_vm3 = vcmp.eq.f32.partialorder %v7090_v55, %v6736_v46 }
 0x196   : > { %vm5137_vm4 = vmpackc.low %vm1628_vm10, %vm1622_vm0  ;;  %vm1243_vm0 = vcmp.lt.s32.totalorder %v7097_v10, %v6731_v13 }
 0x197   : > { %5138 = vmatprep.mubr.msk.bf16.mxu1 %vm5137_vm4, %v9636_v31  ;;  %vm1432_vm13 = vmand %vm1048_vm1, %vm1240_vm9  ;;  %vm853_vm4 = vcmp.gt.f32.partialorder %v7090_v55, %v6722_v16  ;;  %vm859_vm1 = vcmp.gt.f32.partialorder %v7090_v55, %v6736_v46 }
 0x198   : > { %vm1438_vm15 = vmand %vm1054_vm8, %vm1246_vm12 }
 0x199   : > { %vm1624_vm2 = vmor %vm856_vm7, %vm1432_vm13  ;;  %vm1047_vm7 = vcmp.eq.f32.partialorder %v7111_v18, %v6722_v16 }
 0x19a   : > { %vm1630_vm6 = vmor %vm862_vm14, %vm1438_vm15  ;;  %vm1239_vm14 = vcmp.lt.s32.totalorder %v7118_v25, %v6720_v30  ;;  %vm1053_vm15 = vcmp.eq.f32.partialorder %v7111_v18, %v6736_v46  ;;  %v3155_v30 = vrot.slane %v3154_v8, 4 }
 0x19b   : > { %vm5201_vm10 = vmpackc.low %vm1630_vm6, %vm1624_vm2  ;;  %vm1245_vm2 = vcmp.lt.s32.totalorder %v7118_v25, %v6731_v13 }
 0x19c   : > { %5202 = vmatprep.mubr.msk.bf16.mxu0 %vm5201_vm10, %v9636_v31  ;;  %vm1429_vm9 = vmand %vm1045_vm11, %vm1237_vm5  ;;  %vm855_vm10 = vcmp.gt.f32.partialorder %v7111_v18, %v6722_v16  ;;  %vm861_vm11 = vcmp.gt.f32.partialorder %v7111_v18, %v6736_v46 }
 0x19d   : > { %vm1435_vm8 = vmand %vm1051_vm3, %vm1243_vm0 }
 0x19e   : > { %vm1621_vm12 = vmor %vm853_vm4, %vm1429_vm9  ;;  %vm1058_vm4 = vcmp.eq.f32.partialorder %v7048_v58, %v6851_v20 }
 0x19f   : > { %vm1627_vm13 = vmor %vm859_vm1, %vm1435_vm8  ;;  %vm1250_vm1 = vcmp.lt.s32.totalorder %v7055_v19, %v6849_v11  ;;  %vm1064_vm8 = vcmp.eq.f32.partialorder %v7048_v58, %v6859_v34 }
 0x1a0   : > { %vm5139_vm6 = vmpackc.low %vm1627_vm13, %vm1621_vm12  ;;  %vm1256_vm12 = vcmp.lt.s32.totalorder %v7055_v19, %v6856_v14 }
 0x1a1   : > { %5140 = vmatmul.mubr.msk.bf16.gmra.mrb[48].mxu1 %vm5139_vm6, %v9636_v31  ;;  %vm1431_vm5 = vmand %vm1047_vm7, %vm1239_vm14  ;;  %vm866_vm6 = vcmp.gt.f32.partialorder %v7048_v58, %v6851_v20  ;;  %vm872_vm7 = vcmp.gt.f32.partialorder %v7048_v58, %v6859_v34 }
 0x1a2   : > { %vm1437_vm3 = vmand %vm1053_vm15, %vm1245_vm2 }
 0x1a3   : > { %vm1623_vm0 = vmor %vm855_vm10, %vm1431_vm5  ;;  %vm1060_vm10 = vcmp.eq.f32.partialorder %v7069_v33, %v6851_v20 }
 0x1a4   : > { %vm1629_vm9 = vmor %vm861_vm11, %vm1437_vm3  ;;  %vm1252_vm11 = vcmp.lt.s32.totalorder %v7076_v21, %v6849_v11  ;;  %vm1066_vm3 = vcmp.eq.f32.partialorder %v7069_v33, %v6859_v34 }
 0x1a5   : > { %vm5203_vm13 = vmpackc.low %vm1629_vm9, %vm1623_vm0  ;;  %vm1258_vm0 = vcmp.lt.s32.totalorder %v7076_v21, %v6856_v14 }
 0x1a6   : > { %5204 = vmatmul.mubr.msk.bf16.gmra.mrb[48].mxu0 %vm5203_vm13, %v9636_v31  ;;  %vm1442_vm14 = vmand %vm1058_vm4, %vm1250_vm1  ;;  %vm868_vm13 = vcmp.gt.f32.partialorder %v7069_v33, %v6851_v20  ;;  %vm874_vm4 = vcmp.gt.f32.partialorder %v7069_v33, %v6859_v34 }
 0x1a7   : > { %vm1448_vm15 = vmand %vm1064_vm8, %vm1256_vm12 }
 0x1a8   : > { %vm1634_vm2 = vmor %vm866_vm6, %vm1442_vm14  ;;  %vm1057_vm6 = vcmp.eq.f32.partialorder %v7090_v55, %v6851_v20 }
 0x1a9   : > { %vm1640_vm5 = vmor %vm872_vm7, %vm1448_vm15  ;;  %vm1249_vm7 = vcmp.lt.s32.totalorder %v7097_v10, %v6849_v11  ;;  %vm1063_vm15 = vcmp.eq.f32.partialorder %v7090_v55, %v6859_v34 }
 0x1aa   : > { %vm5141_vm9 = vmpackc.low %vm1640_vm5, %vm1634_vm2  ;;  %vm1255_vm2 = vcmp.lt.s32.totalorder %v7097_v10, %v6856_v14 }
 0x1ab   : > { %5142 = vmatprep.mubr.msk.bf16.mxu1 %vm5141_vm9, %v9636_v31  ;;  %vm1444_vm1 = vmand %vm1060_vm10, %vm1252_vm11  ;;  %vm865_vm9 = vcmp.gt.f32.partialorder %v7090_v55, %v6851_v20  ;;  %vm871_vm10 = vcmp.gt.f32.partialorder %v7090_v55, %v6859_v34 }
 0x1ac   : > { %vm1450_vm8 = vmand %vm1066_vm3, %vm1258_vm0 }
 0x1ad   : > { %vm1636_vm12 = vmor %vm868_vm13, %vm1444_vm1  ;;  %vm1059_vm13 = vcmp.eq.f32.partialorder %v7111_v18, %v6851_v20 }
 0x1ae   : > { %vm1642_vm14 = vmor %vm874_vm4, %vm1450_vm8  ;;  %vm1251_vm4 = vcmp.lt.s32.totalorder %v7118_v25, %v6849_v11  ;;  %vm1065_vm8 = vcmp.eq.f32.partialorder %v7111_v18, %v6859_v34 }
 0x1af   : > { %vm5205_vm5 = vmpackc.low %vm1642_vm14, %vm1636_vm12  ;;  %vm1257_vm12 = vcmp.lt.s32.totalorder %v7118_v25, %v6856_v14 }
 0x1b0   : > { %5206 = vmatprep.mubr.msk.bf16.mxu0 %vm5205_vm5, %v9636_v31  ;;  %vm1441_vm11 = vmand %vm1057_vm6, %vm1249_vm7  ;;  %vm867_vm5 = vcmp.gt.f32.partialorder %v7111_v18, %v6851_v20  ;;  %vm873_vm6 = vcmp.gt.f32.partialorder %v7111_v18, %v6859_v34 }
 0x1b1   : > { %vm1447_vm3 = vmand %vm1063_vm15, %vm1255_vm2 }
 0x1b2   : > { %vm1633_vm0 = vmor %vm865_vm9, %vm1441_vm11  ;;  %vm1070_vm9 = vcmp.eq.f32.partialorder %v7048_v58, %v6927_v24 }
 0x1b3   : > { %vm1639_vm1 = vmor %vm871_vm10, %vm1447_vm3  ;;  %vm1262_vm10 = vcmp.lt.s32.totalorder %v7055_v19, %v6925_v60  ;;  %vm1076_vm3 = vcmp.eq.f32.partialorder %v7048_v58, %v6935_v17 }
 0x1b4   : > { %vm5143_vm14 = vmpackc.low %vm1639_vm1, %vm1633_vm0  ;;  %vm1268_vm0 = vcmp.lt.s32.totalorder %v7055_v19, %v6932_v52 }
 0x1b5   : > { %5144 = vmatmul.mubr.msk.bf16.gmra.mrb[52].mxu1 %vm5143_vm14, %v9636_v31  ;;  %vm1443_vm7 = vmand %vm1059_vm13, %vm1251_vm4  ;;  %vm878_vm14 = vcmp.gt.f32.partialorder %v7048_v58, %v6927_v24  ;;  %vm884_vm13 = vcmp.gt.f32.partialorder %v7048_v58, %v6935_v17 }
 0x1b6   : > { %vm1449_vm15 = vmand %vm1065_vm8, %vm1257_vm12 }
 0x1b7   : > { %vm1635_vm2 = vmor %vm867_vm5, %vm1443_vm7  ;;  %vm1072_vm5 = vcmp.eq.f32.partialorder %v7069_v33, %v6927_v24 }
 0x1b8   : > { %vm1641_vm11 = vmor %vm873_vm6, %vm1449_vm15  ;;  %vm1264_vm6 = vcmp.lt.s32.totalorder %v7076_v21, %v6925_v60  ;;  %vm1078_vm15 = vcmp.eq.f32.partialorder %v7069_v33, %v6935_v17 }
 0x1b9   : > { %vm5207_vm1 = vmpackc.low %vm1641_vm11, %vm1635_vm2  ;;  %vm1270_vm2 = vcmp.lt.s32.totalorder %v7076_v21, %v6932_v52 }
 0x1ba   : > { %5208 = vmatmul.mubr.msk.bf16.gmra.mrb[52].mxu0 %vm5207_vm1, %v9636_v31  ;;  %vm1454_vm4 = vmand %vm1070_vm9, %vm1262_vm10  ;;  %vm880_vm1 = vcmp.gt.f32.partialorder %v7069_v33, %v6927_v24  ;;  %vm886_vm9 = vcmp.gt.f32.partialorder %v7069_v33, %v6935_v17 }
 0x1bb   : > { %vm1460_vm8 = vmand %vm1076_vm3, %vm1268_vm0 }
 0x1bc   : > { %vm1646_vm12 = vmor %vm878_vm14, %vm1454_vm4  ;;  %vm1069_vm14 = vcmp.eq.f32.partialorder %v7090_v55, %v6927_v24 }
 0x1bd   : > { %vm1652_vm7 = vmor %vm884_vm13, %vm1460_vm8  ;;  %vm1261_vm13 = vcmp.lt.s32.totalorder %v7097_v10, %v6925_v60  ;;  %vm1075_vm8 = vcmp.eq.f32.partialorder %v7090_v55, %v6935_v17 }
 0x1be   : > { %vm5145_vm11 = vmpackc.low %vm1652_vm7, %vm1646_vm12  ;;  %vm1267_vm12 = vcmp.lt.s32.totalorder %v7097_v10, %v6932_v52 }
 0x1bf   : > { %5146 = vmatprep.mubr.msk.bf16.mxu1 %vm5145_vm11, %v9636_v31  ;;  %vm1456_vm10 = vmand %vm1072_vm5, %vm1264_vm6  ;;  %vm877_vm11 = vcmp.gt.f32.partialorder %v7090_v55, %v6927_v24  ;;  %vm883_vm5 = vcmp.gt.f32.partialorder %v7090_v55, %v6935_v17 }
 0x1c0   : > { %vm1462_vm3 = vmand %vm1078_vm15, %vm1270_vm2 }
 0x1c1   : > { %vm1648_vm0 = vmor %vm880_vm1, %vm1456_vm10  ;;  %vm1071_vm1 = vcmp.eq.f32.partialorder %v7111_v18, %v6927_v24 }
 0x1c2   : > { %vm1654_vm4 = vmor %vm886_vm9, %vm1462_vm3  ;;  %vm1263_vm9 = vcmp.lt.s32.totalorder %v7118_v25, %v6925_v60  ;;  %vm1077_vm3 = vcmp.eq.f32.partialorder %v7111_v18, %v6935_v17 }
 0x1c3   : > { %vm5209_vm7 = vmpackc.low %vm1654_vm4, %vm1648_vm0  ;;  %vm1269_vm0 = vcmp.lt.s32.totalorder %v7118_v25, %v6932_v52 }
 0x1c4   : > { %5210 = vmatprep.mubr.msk.bf16.mxu0 %vm5209_vm7, %v9636_v31  ;;  %vm1453_vm6 = vmand %vm1069_vm14, %vm1261_vm13  ;;  %vm879_vm7 = vcmp.gt.f32.partialorder %v7111_v18, %v6927_v24  ;;  %vm885_vm14 = vcmp.gt.f32.partialorder %v7111_v18, %v6935_v17 }
 0x1c5   : > { %vm1459_vm15 = vmand %vm1075_vm8, %vm1267_vm12 }
 0x1c6   : > { %vm1645_vm2 = vmor %vm877_vm11, %vm1453_vm6  ;;  %vm1082_vm11 = vcmp.eq.f32.partialorder %v7048_v58, %v7003_v47 }
 0x1c7   : > { %vm1651_vm10 = vmor %vm883_vm5, %vm1459_vm15  ;;  %vm1274_vm5 = vcmp.lt.s32.totalorder %v7055_v19, %v7001_v53  ;;  %vm1088_vm15 = vcmp.eq.f32.partialorder %v7048_v58, %v7011_v56 }
 0x1c8   : > { %vm5147_vm4 = vmpackc.low %vm1651_vm10, %vm1645_vm2  ;;  %vm1280_vm2 = vcmp.lt.s32.totalorder %v7055_v19, %v7008_v61 }
 0x1c9   : > { %5148 = vmatmul.mubr.msk.bf16.gmra.mrb[56].mxu1 %vm5147_vm4, %v9636_v31  ;;  %vm1455_vm13 = vmand %vm1071_vm1, %vm1263_vm9  ;;  %vm890_vm4 = vcmp.gt.f32.partialorder %v7048_v58, %v7003_v47  ;;  %vm896_vm1 = vcmp.gt.f32.partialorder %v7048_v58, %v7011_v56 }
 0x1ca   : > { %vm1461_vm8 = vmand %vm1077_vm3, %vm1269_vm0 }
 0x1cb   : > { %vm1647_vm12 = vmor %vm879_vm7, %vm1455_vm13  ;;  %vm1084_vm7 = vcmp.eq.f32.partialorder %v7069_v33, %v7003_v47 }
 0x1cc   : > { %vm1653_vm6 = vmor %vm885_vm14, %vm1461_vm8  ;;  %vm1276_vm14 = vcmp.lt.s32.totalorder %v7076_v21, %v7001_v53  ;;  %vm1090_vm8 = vcmp.eq.f32.partialorder %v7069_v33, %v7011_v56 }
 0x1cd   : > { %vm5211_vm10 = vmpackc.low %vm1653_vm6, %vm1647_vm12  ;;  %vm1282_vm12 = vcmp.lt.s32.totalorder %v7076_v21, %v7008_v61 }
 0x1ce   : > { %5212 = vmatmul.mubr.msk.bf16.gmra.mrb[56].mxu0 %vm5211_vm10, %v9636_v31  ;;  %vm1466_vm9 = vmand %vm1082_vm11, %vm1274_vm5  ;;  %vm892_vm10 = vcmp.gt.f32.partialorder %v7069_v33, %v7003_v47  ;;  %vm898_vm11 = vcmp.gt.f32.partialorder %v7069_v33, %v7011_v56 }
 0x1cf   : > { %vm1472_vm3 = vmand %vm1088_vm15, %vm1280_vm2 }
 0x1d0   : > { %vm1658_vm0 = vmor %vm890_vm4, %vm1466_vm9  ;;  %vm1081_vm4 = vcmp.eq.f32.partialorder %v7090_v55, %v7003_v47 }
 0x1d1   : > { %vm1664_vm13 = vmor %vm896_vm1, %vm1472_vm3  ;;  %vm1273_vm1 = vcmp.lt.s32.totalorder %v7097_v10, %v7001_v53  ;;  %vm1087_vm3 = vcmp.eq.f32.partialorder %v7090_v55, %v7011_v56 }
 0x1d2   : > { %vm5149_vm6 = vmpackc.low %vm1664_vm13, %vm1658_vm0  ;;  %vm1279_vm0 = vcmp.lt.s32.totalorder %v7097_v10, %v7008_v61 }
 0x1d3   : > { %5150 = vmatprep.mubr.msk.bf16.mxu1 %vm5149_vm6, %v9636_v31  ;;  %vm1468_vm5 = vmand %vm1084_vm7, %vm1276_vm14  ;;  %vm889_vm6 = vcmp.gt.f32.partialorder %v7090_v55, %v7003_v47  ;;  %vm895_vm7 = vcmp.gt.f32.partialorder %v7090_v55, %v7011_v56 }
 0x1d4   : > { %vm1474_vm15 = vmand %vm1090_vm8, %vm1282_vm12 }
 0x1d5   : > { %vm1660_vm2 = vmor %vm892_vm10, %vm1468_vm5  ;;  %vm1083_vm10 = vcmp.eq.f32.partialorder %v7111_v18, %v7003_v47 }
 0x1d6   : > { %vm1666_vm9 = vmor %vm898_vm11, %vm1474_vm15  ;;  %vm1275_vm11 = vcmp.lt.s32.totalorder %v7118_v25, %v7001_v53  ;;  %vm1089_vm15 = vcmp.eq.f32.partialorder %v7111_v18, %v7011_v56 }
 0x1d7   : > { %vm5213_vm13 = vmpackc.low %vm1666_vm9, %vm1660_vm2  ;;  %vm1281_vm2 = vcmp.lt.s32.totalorder %v7118_v25, %v7008_v61 }
 0x1d8   : > { %5214 = vmatprep.mubr.msk.bf16.mxu0 %vm5213_vm13, %v9636_v31  ;;  %vm1465_vm14 = vmand %vm1081_vm4, %vm1273_vm1  ;;  %vm891_vm13 = vcmp.gt.f32.partialorder %v7111_v18, %v7003_v47  ;;  %vm897_vm4 = vcmp.gt.f32.partialorder %v7111_v18, %v7011_v56 }
 0x1d9   : > { %vm1471_vm8 = vmand %vm1087_vm3, %vm1279_vm0 }
 0x1da   : > { %vm1657_vm12 = vmor %vm889_vm6, %vm1465_vm14  ;;  %vm1094_vm6 = vcmp.eq.f32.partialorder %v7048_v58, %v6284_v35 }
 0x1db   : > { %vm1663_vm5 = vmor %vm895_vm7, %vm1471_vm8  ;;  %vm1286_vm7 = vcmp.lt.s32.totalorder %v7055_v19, %v6267_v45  ;;  %vm1100_vm8 = vcmp.eq.f32.partialorder %v7048_v58, %v6304_v6 }
 0x1dc   : > { %vm5151_vm9 = vmpackc.low %vm1663_vm5, %vm1657_vm12  ;;  %vm1292_vm12 = vcmp.lt.s32.totalorder %v7055_v19, %v6280_v62 }
 0x1dd   : > { %5152 = vmatmul.mubr.msk.bf16.gmra.mrb[60].mxu1 %vm5151_vm9, %v9636_v31  ;;  %vm1467_vm1 = vmand %vm1083_vm10, %vm1275_vm11  ;;  %vm902_vm9 = vcmp.gt.f32.partialorder %v7048_v58, %v6284_v35  ;;  %vm908_vm10 = vcmp.gt.f32.partialorder %v7048_v58, %v6304_v6 }
 0x1de   : > { %vm1473_vm3 = vmand %vm1089_vm15, %vm1281_vm2 }
 0x1df   : > { %vm1659_vm0 = vmor %vm891_vm13, %vm1467_vm1  ;;  %vm1096_vm13 = vcmp.eq.f32.partialorder %v7069_v33, %v6284_v35 }
 0x1e0   : > { %vm1665_vm14 = vmor %vm897_vm4, %vm1473_vm3  ;;  %vm1288_vm4 = vcmp.lt.s32.totalorder %v7076_v21, %v6267_v45  ;;  %vm1102_vm3 = vcmp.eq.f32.partialorder %v7069_v33, %v6304_v6 }
 0x1e1   : > { %vm5215_vm5 = vmpackc.low %vm1665_vm14, %vm1659_vm0  ;;  %vm1294_vm0 = vcmp.lt.s32.totalorder %v7076_v21, %v6280_v62 }
 0x1e2   : > { %5216 = vmatmul.mubr.msk.bf16.gmra.mrb[60].mxu0 %vm5215_vm5, %v9636_v31  ;;  %vm1478_vm11 = vmand %vm1094_vm6, %vm1286_vm7  ;;  %vm904_vm5 = vcmp.gt.f32.partialorder %v7069_v33, %v6284_v35  ;;  %vm910_vm6 = vcmp.gt.f32.partialorder %v7069_v33, %v6304_v6 }
 0x1e3   : > { %vm1484_vm15 = vmand %vm1100_vm8, %vm1292_vm12 }
 0x1e4   : > { %vm1670_vm2 = vmor %vm902_vm9, %vm1478_vm11  ;;  %vm1093_vm9 = vcmp.eq.f32.partialorder %v7090_v55, %v6284_v35 }
 0x1e5   : > { %vm1676_vm1 = vmor %vm908_vm10, %vm1484_vm15  ;;  %vm1285_vm10 = vcmp.lt.s32.totalorder %v7097_v10, %v6267_v45  ;;  %vm1099_vm15 = vcmp.eq.f32.partialorder %v7090_v55, %v6304_v6 }
 0x1e6   : > { %vm5153_vm14 = vmpackc.low %vm1676_vm1, %vm1670_vm2  ;;  %vm1291_vm2 = vcmp.lt.s32.totalorder %v7097_v10, %v6280_v62 }
 0x1e7   : > { %5154 = vmatprep.mubr.msk.bf16.mxu1 %vm5153_vm14, %v9636_v31  ;;  %vm1480_vm7 = vmand %vm1096_vm13, %vm1288_vm4  ;;  %vm901_vm14 = vcmp.gt.f32.partialorder %v7090_v55, %v6284_v35  ;;  %vm907_vm13 = vcmp.gt.f32.partialorder %v7090_v55, %v6304_v6 }
 0x1e8   : > { %vm1486_vm8 = vmand %vm1102_vm3, %vm1294_vm0 }
 0x1e9   : > { %vm1672_vm12 = vmor %vm904_vm5, %vm1480_vm7  ;;  %vm1095_vm5 = vcmp.eq.f32.partialorder %v7111_v18, %v6284_v35 }
 0x1ea   : > { %vm1678_vm11 = vmor %vm910_vm6, %vm1486_vm8  ;;  %vm1287_vm6 = vcmp.lt.s32.totalorder %v7118_v25, %v6267_v45  ;;  %vm1101_vm8 = vcmp.eq.f32.partialorder %v7111_v18, %v6304_v6  ;;  %v5269_v45 = vpop.f32.mrb[1].mxu0 }
 0x1eb   : > { %vm5217_vm1 = vmpackc.low %vm1678_vm11, %vm1672_vm12  ;;  %vm1293_vm12 = vcmp.lt.s32.totalorder %v7118_v25, %v6280_v62  ;;  %v7609_v61 = vadd.f32 %v5269_v45, %v5268_v27  ;;  %v5271_v44 = vpop.f32.mrb[2].mxu0  ;;  %v3156_v62 = vadd.f32 %v3155_v30, %v3154_v8 }
 0x1ec   : > { %5218 = vmatprep.mubr.msk.bf16.mxu0 %vm5217_vm1, %v9636_v31  ;;  %vm1477_vm4 = vmand %vm1093_vm9, %vm1285_vm10  ;;  %vm903_vm1 = vcmp.gt.f32.partialorder %v7111_v18, %v6284_v35  ;;  %vm909_vm9 = vcmp.gt.f32.partialorder %v7111_v18, %v6304_v6  ;;  %v5316_v35 = vpop.f32.mrb[0].mxu1 }
 0x1ed   : > { %vm1483_vm3 = vmand %vm1099_vm15, %vm1291_vm2  ;;  %v5317_v47 = vpop.f32.mrb[1].mxu1  ;;  %v3157_v43 = vrot.slane %v3156_v62, 2 }
 0x1ee   : > { %vm1669_vm0 = vmor %vm901_vm14, %vm1477_vm4  ;;  %vm1106_vm14 = vcmp.eq.f32.partialorder %v7048_v58, %v6360_v50  ;;  %v7611_v5 = vadd.f32 %v5317_v47, %v5316_v35  ;;  %v5319_v49 = vpop.f32.mrb[2].mxu1 }
 0x1ef   : > { %vm1675_vm7 = vmor %vm907_vm13, %vm1483_vm3  ;;  %vm1298_vm13 = vcmp.lt.s32.totalorder %v7055_v19, %v6367_v40  ;;  %vm1112_vm3 = vcmp.eq.f32.partialorder %v7048_v58, %v6370_v48  ;;  %v5320_v46 = vpop.f32.mrb[3].mxu1  ;;  %v3158_v56 = vadd.f32 %v3157_v43, %v3156_v62 }
 0x1f0   : > { %vm5155_vm11 = vmpackc.low %vm1675_vm7, %vm1669_vm0  ;;  %vm1304_vm0 = vcmp.lt.s32.totalorder %v7055_v19, %v6377_v36  ;;  %v7627_v51 = vadd.f32 %v5320_v46, %v5319_v49  ;;  %v5322_v9 = vpop.f32.mrb[4].mxu1 }
 0x1f1   : > { %5156 = vmatmul.mubr.msk.bf16.gmra.mrb[64].mxu1 %vm5155_vm11, %v9636_v31  ;;  %vm1479_vm10 = vmand %vm1095_vm5, %vm1287_vm6  ;;  %vm914_vm11 = vcmp.gt.f32.partialorder %v7048_v58, %v6360_v50  ;;  %vm920_vm5 = vcmp.gt.f32.partialorder %v7048_v58, %v6370_v48  ;;  %v5323_v1 = vpop.f32.mrb[5].mxu1  ;;  %v3159_v27 = vrot.slane %v3158_v56, 1 }
 0x1f2   : > { %vm1485_vm15 = vmand %vm1101_vm8, %vm1293_vm12  ;;  %v7653_v12 = vadd.f32 %v5323_v1, %v5322_v9 }
 0x1f3   : > { %vm1671_vm2 = vmor %vm903_vm1, %vm1479_vm10  ;;  %vm1108_vm1 = vcmp.eq.f32.partialorder %v7069_v33, %v6360_v50  ;;  %v3160_v46 = vadd.f32 %v3159_v27, %v3158_v56 }
 0x1f4   : > { %vm1677_vm4 = vmor %vm909_vm9, %vm1485_vm15  ;;  %vm1300_vm9 = vcmp.lt.s32.totalorder %v7076_v21, %v6367_v40  ;;  %vm1114_vm15 = vcmp.eq.f32.partialorder %v7069_v33, %v6370_v48 }
 0x1f5   : > { %vm5219_vm7 = vmpackc.low %vm1677_vm4, %vm1671_vm2  ;;  %vm1306_vm2 = vcmp.lt.s32.totalorder %v7076_v21, %v6377_v36  ;;  %5607 = vpush %v3160_v46 }
 0x1f6   : > { %5220 = vmatmul.mubr.msk.bf16.gmra.mrb[64].mxu0 %vm5219_vm7, %v9636_v31  ;;  %vm1490_vm6 = vmand %vm1106_vm14, %vm1298_vm13  ;;  %vm916_vm7 = vcmp.gt.f32.partialorder %v7069_v33, %v6360_v50  ;;  %vm922_vm14 = vcmp.gt.f32.partialorder %v7069_v33, %v6370_v48 }
 0x1f7   : > { %vm1496_vm8 = vmand %vm1112_vm3, %vm1304_vm0 }
 0x1f8   : > { %vm1682_vm12 = vmor %vm914_vm11, %vm1490_vm6  ;;  %vm1105_vm11 = vcmp.eq.f32.partialorder %v7090_v55, %v6360_v50 }
 0x1f9   : > { %vm1688_vm10 = vmor %vm920_vm5, %vm1496_vm8  ;;  %vm1297_vm5 = vcmp.lt.s32.totalorder %v7097_v10, %v6367_v40  ;;  %vm1111_vm8 = vcmp.eq.f32.partialorder %v7090_v55, %v6370_v48 }
 0x1fa   : > { %vm5157_vm4 = vmpackc.low %vm1688_vm10, %vm1682_vm12  ;;  %vm1303_vm12 = vcmp.lt.s32.totalorder %v7097_v10, %v6377_v36 }
 0x1fb   : > { %5158 = vmatprep.mubr.msk.bf16.mxu1 %vm5157_vm4, %v9636_v31  ;;  %vm1492_vm13 = vmand %vm1108_vm1, %vm1300_vm9  ;;  %vm913_vm4 = vcmp.gt.f32.partialorder %v7090_v55, %v6360_v50  ;;  %vm919_vm1 = vcmp.gt.f32.partialorder %v7090_v55, %v6370_v48 }
 0x1fc   : > { %vm1498_vm3 = vmand %vm1114_vm15, %vm1306_vm2 }
 0x1fd   : > { %vm1684_vm0 = vmor %vm916_vm7, %vm1492_vm13  ;;  %vm1107_vm7 = vcmp.eq.f32.partialorder %v7111_v18, %v6360_v50 }
 0x1fe   : > { %vm1690_vm6 = vmor %vm922_vm14, %vm1498_vm3  ;;  %vm1299_vm14 = vcmp.lt.s32.totalorder %v7118_v25, %v6367_v40  ;;  %vm1113_vm3 = vcmp.eq.f32.partialorder %v7111_v18, %v6370_v48 }
 0x1ff   : > { %vm5221_vm10 = vmpackc.low %vm1690_vm6, %vm1684_vm0  ;;  %vm1305_vm0 = vcmp.lt.s32.totalorder %v7118_v25, %v6377_v36  ;;  %vm921_vm6 = vcmp.gt.f32.partialorder %v7111_v18, %v6370_v48  ;;  %v5272_v36 = vpop.f32.mrb[3].mxu0  ;;  %v5325_v48 = vpop.f32.mrb[6].mxu1 }
 0x200   : > { %5222 = vmatprep.mubr.msk.bf16.mxu0 %vm5221_vm10, %v9636_v31  ;;  %vm1489_vm9 = vmand %vm1105_vm11, %vm1297_vm5  ;;  %vm915_vm5 = vcmp.gt.f32.partialorder %v7111_v18, %v6360_v50  ;;  %v7625_v15 = vadd.f32 %v5272_v36, %v5271_v44  ;;  %v5274_v13 = vpop.f32.mrb[4].mxu0  ;;  %v5326_v23 = vpop.f32.mrb[7].mxu1 }
 0x201   : > { %vm1495_vm15 = vmand %vm1111_vm8, %vm1303_vm12  ;;  %v5275_v41 = vpop.f32.mrb[5].mxu0  ;;  %v7672_v3 = vadd.f32 %v5326_v23, %v5325_v48  ;;  %v5328_v4 = vpop.f32.mrb[8].mxu1 }
 0x202   : > { %vm7593_vm2 = vmor %vm913_vm4, %vm1489_vm9  ;;  %vm1118_vm4 = vcmp.eq.f32.partialorder %v7048_v58, %v6499_v63  ;;  %v7647_v50 = vadd.f32 %v5275_v41, %v5274_v13  ;;  %v5277_v38 = vpop.f32.mrb[6].mxu0  ;;  %v5329_v52 = vpop.f32.mrb[9].mxu1 }
 0x203   : > { %vm1687_vm13 = vmor %vm919_vm1, %vm1495_vm15  ;;  %vm1310_vm1 = vcmp.lt.s32.totalorder %v7055_v19, %v6510_v57  ;;  %vm1124_vm15 = vcmp.eq.f32.partialorder %v7048_v58, %v6514_v29  ;;  %v5278_v6 = vpop.f32.mrb[7].mxu0  ;;  %v7694_v20 = vadd.f32 %v5329_v52, %v5328_v4  ;;  %v5331_v14 = vpop.f32.mrb[10].mxu1 }
 0x204   : > { %vm5159_vm11 = vmpackc.low %vm1687_vm13, %vm7593_vm2  ;;  %vm1316_vm2 = vcmp.lt.s32.totalorder %v7055_v19, %v6523_v22  ;;  %vm932_vm13 = vcmp.gt.f32.partialorder %v7048_v58, %v6514_v29  ;;  %v7664_v54 = vadd.f32 %v5278_v6, %v5277_v38  ;;  %v5280_v26 = vpop.f32.mrb[8].mxu0  ;;  %v5332_v53 = vpop.f32.mrb[11].mxu1 }
 0x205   : > { %5160 = vmatmul.mubr.msk.bf16.gmra.mrb[68].mxu1 %vm5159_vm11, %v9636_v31  ;;  %vm1491_vm8 = vmand %vm1107_vm7, %vm1299_vm14  ;;  %vm926_vm14 = vcmp.gt.f32.partialorder %v7048_v58, %v6499_v63  ;;  %v5281_v59 = vpop.f32.mrb[9].mxu0  ;;  %v7711_v24 = vadd.f32 %v5332_v53, %v5331_v14  ;;  %v5334_v35 = vpop.f32.mrb[12].mxu1 }
 0x206   : > { %vm1497_vm12 = vmand %vm1113_vm3, %vm1305_vm0  ;;  %v7685_v17 = vadd.f32 %v5281_v59, %v5280_v26  ;;  %v5283_v11 = vpop.f32.mrb[10].mxu0  ;;  %v5335_v44 = vpop.f32.mrb[13].mxu1 }
 0x207   : > { %vm7632_vm10 = vmor %vm915_vm5, %vm1491_vm8  ;;  %vm1120_vm5 = vcmp.eq.f32.partialorder %v7069_v33, %v6499_v63  ;;  %v5284_v34 = vpop.f32.mrb[11].mxu0  ;;  %v7732_v8 = vadd.f32 %v5335_v44, %v5334_v35  ;;  %v5337_v13 = vpop.f32.mrb[14].mxu1 }
 0x208   : > { %vm1689_vm9 = vmor %vm921_vm6, %vm1497_vm12  ;;  %vm1312_vm6 = vcmp.lt.s32.totalorder %v7076_v21, %v6510_v57  ;;  %vm1126_vm12 = vcmp.eq.f32.partialorder %v7069_v33, %v6514_v29  ;;  %v7700_v60 = vadd.f32 %v5284_v34, %v5283_v11  ;;  %v5286_v28 = vpop.f32.mrb[12].mxu0  ;;  %v5338_v9 = vpop.f32.mrb[15].mxu1 }
 0x209   : > { %vm5223_vm7 = vmpackc.low %vm1689_vm9, %vm7632_vm10  ;;  %vm1318_vm10 = vcmp.lt.s32.totalorder %v7076_v21, %v6523_v22  ;;  %vm934_vm9 = vcmp.gt.f32.partialorder %v7069_v33, %v6514_v29  ;;  %v5287_v45 = vpop.f32.mrb[13].mxu0  ;;  %v7747_v1 = vadd.f32 %v5338_v9, %v5337_v13  ;;  %v5340_v38 = vpop.f32.mrb[16].mxu1 }
 0x20a   : > { %5224 = vmatmul.mubr.msk.bf16.gmra.mrb[68].mxu0 %vm5223_vm7, %v9636_v31  ;;  %vm1502_vm3 = vmand %vm1118_vm4, %vm1310_vm1  ;;  %vm928_vm1 = vcmp.gt.f32.partialorder %v7069_v33, %v6499_v63  ;;  %v7719_v47 = vadd.f32 %v5287_v45, %v5286_v28  ;;  %v5289_v49 = vpop.f32.mrb[14].mxu0  ;;  %v5341_v6 = vpop.f32.mrb[17].mxu1 }
 0x20b   : > { %vm1508_vm0 = vmand %vm1124_vm15, %vm1316_vm2  ;;  %v5290_v40 = vpop.f32.mrb[15].mxu0  ;;  %v7766_v26 = vadd.f32 %v5341_v6, %v5340_v38  ;;  %v5343_v4 = vpop.f32.mrb[18].mxu1 }
 0x20c   : > { %vm7677_vm11 = vmor %vm926_vm14, %vm1502_vm3  ;;  %vm1117_vm14 = vcmp.eq.f32.partialorder %v7090_v55, %v6499_v63  ;;  %v7741_v30 = vadd.f32 %v5290_v40, %v5289_v49  ;;  %v5292_v41 = vpop.f32.mrb[16].mxu0  ;;  %v5344_v52 = vpop.f32.mrb[19].mxu1 }
 0x20d   : > { %vm1700_vm8 = vmor %vm932_vm13, %vm1508_vm0  ;;  %vm1309_vm13 = vcmp.lt.s32.totalorder %v7097_v10, %v6510_v57  ;;  %vm1123_vm0 = vcmp.eq.f32.partialorder %v7090_v55, %v6514_v29  ;;  %v5293_v62 = vpop.f32.mrb[17].mxu0  ;;  %v7788_v14 = vadd.f32 %v5344_v52, %v5343_v4  ;;  %v5346_v34 = vpop.f32.mrb[20].mxu1 }
 0x20e   : > { %vm5161_vm4 = vmpackc.low %vm1700_vm8, %vm7677_vm11  ;;  %vm1315_vm11 = vcmp.lt.s32.totalorder %v7097_v10, %v6523_v22  ;;  %vm931_vm8 = vcmp.gt.f32.partialorder %v7090_v55, %v6514_v29  ;;  %v7758_v48 = vadd.f32 %v5293_v62, %v5292_v41  ;;  %v5295_v23 = vpop.f32.mrb[18].mxu0  ;;  %v5347_v28 = vpop.f32.mrb[21].mxu1 }
 0x20f   : > { %5162 = vmatprep.mubr.msk.bf16.mxu1 %vm5161_vm4, %v9636_v31  ;;  %vm1504_vm15 = vmand %vm1120_vm5, %vm1312_vm6  ;;  %vm925_vm6 = vcmp.gt.f32.partialorder %v7090_v55, %v6499_v63  ;;  %v5296_v59 = vpop.f32.mrb[19].mxu0  ;;  %v7805_v35 = vadd.f32 %v5347_v28, %v5346_v34  ;;  %v5349_v45 = vpop.f32.mrb[22].mxu1 }
 0x210   : > { %vm1510_vm2 = vmand %vm1126_vm12, %vm1318_vm10  ;;  %v7779_v16 = vadd.f32 %v5296_v59, %v5295_v23  ;;  %v5298_v11 = vpop.f32.mrb[20].mxu0  ;;  %v5350_v36 = vpop.f32.mrb[23].mxu1 }
 0x211   : > { %vm7724_vm7 = vmor %vm928_vm1, %vm1504_vm15  ;;  %vm1119_vm1 = vcmp.eq.f32.partialorder %v7111_v18, %v6499_v63  ;;  %v5299_v56 = vpop.f32.mrb[21].mxu0 }
 0x212   : > { %vm1702_vm3 = vmor %vm934_vm9, %vm1510_vm2  ;;  %vm1311_vm9 = vcmp.lt.s32.totalorder %v7118_v25, %v6510_v57  ;;  %vm1125_vm2 = vcmp.eq.f32.partialorder %v7111_v18, %v6514_v29  ;;  %v7794_v53 = vadd.f32 %v5299_v56, %v5298_v11  ;;  %v5301_v27 = vpop.f32.mrb[22].mxu0 }
 0x213   : > { %vm5225_vm5 = vmpackc.low %vm1702_vm3, %vm7724_vm7  ;;  %vm1317_vm7 = vcmp.lt.s32.totalorder %v7118_v25, %v6523_v22  ;;  %vm933_vm3 = vcmp.gt.f32.partialorder %v7111_v18, %v6514_v29  ;;  %v5302_v44 = vpop.f32.mrb[23].mxu0  ;;  %v5352_v22 = vpop.f32.mrb[24].mxu1 }
 0x214   : > { %5226 = vmatprep.mubr.msk.bf16.mxu0 %vm5225_vm5, %v9636_v31  ;;  %vm1501_vm12 = vmand %vm1117_vm14, %vm1309_vm13  ;;  %vm927_vm13 = vcmp.gt.f32.partialorder %v7111_v18, %v6499_v63  ;;  %v7813_v49 = vadd.f32 %v5302_v44, %v5301_v27  ;;  %v5304_v46 = vpop.f32.mrb[24].mxu0  ;;  %v7823_v63 = vadd.f32 %v5350_v36, %v5349_v45  ;;  %v5353_v9 = vpop.f32.mrb[25].mxu1 }
 0x215   : > { %vm1507_vm10 = vmand %vm1123_vm0, %vm1315_vm11  ;;  %v5305_v13 = vpop.f32.mrb[25].mxu0  ;;  %v7838_v38 = vadd.f32 %v5353_v9, %v5352_v22  ;;  %v5355_v29 = vpop.f32.mrb[26].mxu1 }
 0x216   : > { %vm7771_vm4 = vmor %vm925_vm6, %vm1501_vm12  ;;  %vm1130_vm6 = vcmp.eq.f32.partialorder %v7048_v58, %v6618_v32  ;;  %v7832_v40 = vadd.f32 %v5305_v13, %v5304_v46  ;;  %v5307_v41 = vpop.f32.mrb[26].mxu0  ;;  %v5356_v23 = vpop.f32.mrb[27].mxu1 }
 0x217   : > { %vm1699_vm15 = vmor %vm931_vm8, %vm1507_vm10  ;;  %vm1322_vm8 = vcmp.lt.s32.totalorder %v7055_v19, %v6625_v2  ;;  %vm1136_vm10 = vcmp.eq.f32.partialorder %v7048_v58, %v6627_v42  ;;  %v5308_v62 = vpop.f32.mrb[27].mxu0  ;;  %v7857_v59 = vadd.f32 %v5356_v23, %v5355_v29  ;;  %v5358_v43 = vpop.f32.mrb[28].mxu1 }
 0x218   : > { %vm5163_vm14 = vmpackc.low %vm1699_vm15, %vm7771_vm4  ;;  %vm1328_vm4 = vcmp.lt.s32.totalorder %v7055_v19, %v6632_v7  ;;  %vm944_vm15 = vcmp.gt.f32.partialorder %v7048_v58, %v6627_v42  ;;  %v7849_v6 = vadd.f32 %v5308_v62, %v5307_v41  ;;  %v5310_v4 = vpop.f32.mrb[28].mxu0  ;;  %v5359_v56 = vpop.f32.mrb[29].mxu1 }
 0x219   : > { %5164 = vmatmul.mubr.msk.bf16.gmra.mrb[72].mxu1 %vm5163_vm14, %v9636_v31  ;;  %vm1503_vm0 = vmand %vm1119_vm1, %vm1311_vm9  ;;  %vm938_vm9 = vcmp.gt.f32.partialorder %v7048_v58, %v6618_v32  ;;  %v5311_v52 = vpop.f32.mrb[29].mxu0  ;;  %v7876_v27 = vadd.f32 %v5359_v56, %v5358_v43  ;;  %v5361_v45 = vpop.f32.mrb[30].mxu1 }
 0x21a   : > { %vm1509_vm11 = vmand %vm1125_vm2, %vm1317_vm7  ;;  %v7867_v34 = vadd.f32 %v5311_v52, %v5310_v4  ;;  %v5313_v28 = vpop.f32.mrb[30].mxu0  ;;  %v5362_v46 = vpop.f32.mrb[31].mxu1 }
 0x21b   : > { %vm7815_vm5 = vmor %vm927_vm13, %vm1503_vm0  ;;  %vm1132_vm13 = vcmp.eq.f32.partialorder %v7069_v33, %v6618_v32  ;;  %v5314_v44 = vpop.f32.mrb[31].mxu0  ;;  %v7893_v57 = vadd.f32 %v5362_v46, %v5361_v45  ;;  %v9680_v45 = vld [vmem:[#allocation35_spill] sm:$0xff] }
 0x21c   : > { %vm1701_vm12 = vmor %vm933_vm3, %vm1509_vm11  ;;  %vm1324_vm3 = vcmp.lt.s32.totalorder %v7076_v21, %v6625_v2  ;;  %vm1138_vm11 = vcmp.eq.f32.partialorder %v7069_v33, %v6627_v42  ;;  %v7882_v36 = vadd.f32 %v5314_v44, %v5313_v28  ;;  %v9679_v28 = vld [vmem:[#allocation34_spill] sm:$0xff]  ;;  %v5835_v44 = vld [vmem:[%s5997_s16 + $0x8] sm:$0xff] }
 0x21d   : > { %vm5227_vm1 = vmpackc.low %vm1701_vm12, %vm7815_vm5  ;;  %vm1330_vm5 = vcmp.lt.s32.totalorder %v7076_v21, %v6632_v7  ;;  %vm946_vm12 = vcmp.gt.f32.partialorder %v7069_v33, %v6627_v42 }
 0x21e   : > { %5228 = vmatmul.mubr.msk.bf16.gmra.mrb[72].mxu0 %vm5227_vm1, %v9636_v31  ;;  %vm1514_vm2 = vmand %vm1130_vm6, %vm1322_vm8  ;;  %vm940_vm8 = vcmp.gt.f32.partialorder %v7069_v33, %v6618_v32 }
 0x21f   : > { %vm1520_vm7 = vmand %vm1136_vm10, %vm1328_vm4 }
 0x220   : > { %vm7859_vm14 = vmor %vm938_vm9, %vm1514_vm2  ;;  %vm1129_vm9 = vcmp.eq.f32.partialorder %v7090_v55, %v6618_v32 }
 0x221   : > { %vm1712_vm0 = vmor %vm944_vm15, %vm1520_vm7  ;;  %vm1321_vm15 = vcmp.lt.s32.totalorder %v7097_v10, %v6625_v2  ;;  %vm1135_vm7 = vcmp.eq.f32.partialorder %v7090_v55, %v6627_v42 }
 0x222   : > { %vm5165_vm6 = vmpackc.low %vm1712_vm0, %vm7859_vm14  ;;  %vm1327_vm14 = vcmp.lt.s32.totalorder %v7097_v10, %v6632_v7  ;;  %vm943_vm0 = vcmp.gt.f32.partialorder %v7090_v55, %v6627_v42 }
 0x223   : > { %5166 = vmatprep.mubr.msk.bf16.mxu1 %vm5165_vm6, %v9636_v31  ;;  %vm1516_vm10 = vmand %vm1132_vm13, %vm1324_vm3  ;;  %vm937_vm3 = vcmp.gt.f32.partialorder %v7090_v55, %v6618_v32 }
 0x224   : > { %vm1522_vm4 = vmand %vm1138_vm11, %vm1330_vm5  ;;  %v5380_v22 = vpop.f32.mrb[32].mxu1 }
 0x225   : > { %vm1708_vm1 = vmor %vm940_vm8, %vm1516_vm10  ;;  %v5381_v13 = vpop.f32.mrb[33].mxu1  ;;  %vm1131_vm8 = vcmp.eq.f32.partialorder %v7111_v18, %v6618_v32 }
 0x226   : > { %vm1714_vm2 = vmor %vm946_vm12, %vm1522_vm4  ;;  %v5382_v9 = vadd.f32 %v5381_v13, %v5380_v22  ;;  %v5383_v41 = vpop.f32.mrb[34].mxu1  ;;  %vm1323_vm12 = vcmp.lt.s32.totalorder %v7118_v25, %v6625_v2  ;;  %vm1137_vm4 = vcmp.eq.f32.partialorder %v7111_v18, %v6627_v42  ;;  %s5608_s8 = spop %5607 }
 0x227   : > { %vm5229_vm13 = vmpackc.low %vm1714_vm2, %vm1708_vm1  ;;  %v5384_v29 = vpop.f32.mrb[35].mxu1  ;;  %vm1329_vm1 = vcmp.lt.s32.totalorder %v7118_v25, %v6632_v7  ;;  %vm945_vm2 = vcmp.gt.f32.partialorder %v7111_v18, %v6627_v42 }
 0x228   : > { %5230 = vmatprep.mubr.msk.bf16.mxu0 %vm5229_vm13, %v9636_v31  ;;  %vm1513_vm11 = vmand %vm1129_vm9, %vm1321_vm15  ;;  %v2823_v62 = vadd.f32 %v5382_v9, %v7609_v61  ;;  %v5385_v23 = vadd.f32 %v5384_v29, %v5383_v41  ;;  %vm939_vm15 = vcmp.gt.f32.partialorder %v7111_v18, %v6618_v32  ;;  %v5834_v32 = vld [vmem:[%s5997_s16] sm:$0xff] }
 0x229   : > { %vm1519_vm5 = vmand %vm1135_vm7, %vm1327_vm14  ;;  %v5492_v4 = vpop.f32.mrb[32].mxu0 }
 0x22a   : > { %vm1705_vm6 = vmor %vm937_vm3, %vm1513_vm11  ;;  %v5493_v43 = vpop.f32.mrb[33].mxu0  ;;  %v2826_v52 = vadd.f32 %v5385_v23, %v7625_v15  ;;  %vm1142_vm3 = vcmp.eq.f32.partialorder %v7048_v58, %v6690_v0 }
 0x22b   : > { %vm1711_vm10 = vmor %vm943_vm0, %vm1519_vm5  ;;  %v5494_v61 = vadd.f32 %v5493_v43, %v5492_v4  ;;  %v5495_v11 = vpop.f32.mrb[34].mxu0  ;;  %vm1334_vm0 = vcmp.lt.s32.totalorder %v7055_v19, %v6701_v39  ;;  %vm1148_vm5 = vcmp.eq.f32.partialorder %v7048_v58, %v9679_v28 }
 0x22c   : > { %vm5167_vm9 = vmpackc.low %vm1711_vm10, %vm1705_vm6  ;;  %v5496_v56 = vpop.f32.mrb[35].mxu0  ;;  %vm1340_vm6 = vcmp.lt.s32.totalorder %v7055_v19, %v9680_v45  ;;  %vm956_vm10 = vcmp.gt.f32.partialorder %v7048_v58, %v9679_v28 }
 0x22d   : > { %5168 = vmatmul.mubr.msk.bf16.gmra.mrb[76].mxu1 %vm5167_vm9, %v9636_v31  ;;  %vm1515_vm7 = vmand %vm1131_vm8, %vm1323_vm12  ;;  %v7923_v2 = vadd.f32 %v5494_v61, %v2823_v62  ;;  %v5497_v15 = vadd.f32 %v5496_v56, %v5495_v11  ;;  %vm950_vm12 = vcmp.gt.f32.partialorder %v7048_v58, %v6690_v0  ;;  %v9682_v56 = vld [vmem:[#allocation36_spill] sm:$0xff] }
 0x22e   : > { %vm1521_vm14 = vmand %vm1137_vm4, %vm1329_vm1 }
 0x22f   : > { %vm1707_vm13 = vmor %vm939_vm15, %vm1515_vm7  ;;  %v7929_v7 = vadd.f32 %v5497_v15, %v2826_v52  ;;  %3707 = vrot.lane.b32.xlu1 %v7923_v2, %s5908_s19  ;;  %v7935_v42 = vadd.f32 %v5834_v32, %v7923_v2  ;;  %vm1144_vm15 = vcmp.eq.f32.partialorder %v7069_v33, %v6690_v0  ;;  %v9683_v15 = vld [vmem:[#allocation37_spill] sm:$0xff] }
 0x230   : > { %vm1713_vm11 = vmor %vm945_vm2, %vm1521_vm14  ;;  %vm1336_vm2 = vcmp.lt.s32.totalorder %v7076_v21, %v6701_v39  ;;  %vm1150_vm14 = vcmp.eq.f32.partialorder %v7069_v33, %v9679_v28 }
 0x231   : > { %9678 = vst [vmem:[#allocation47_spill] sm:$0xff] %v7935_v42  ;;  %vm5231_vm8 = vmpackc.low %vm1713_vm11, %vm1707_vm13  ;;  %3258 = vrot.lane.b32.xlu0 %v7935_v42, %s5908_s19  ;;  %vm1342_vm13 = vcmp.lt.s32.totalorder %v7076_v21, %v9680_v45  ;;  %v7963_v46 = vadd.f32 %v5835_v44, %v7929_v7  ;;  %vm958_vm11 = vcmp.gt.f32.partialorder %v7069_v33, %v9679_v28 }
 0x232   : > { %5232 = vmatmul.mubr.msk.bf16.gmra.mrb[76].mxu0 %vm5231_vm8, %v9636_v31  ;;  %vm1526_vm4 = vmand %vm1142_vm3, %vm1334_vm0  ;;  %vm952_vm0 = vcmp.gt.f32.partialorder %v7069_v33, %v6690_v0 }
 0x233   : > { %vm1532_vm1 = vmand %vm1148_vm5, %vm1340_vm6  ;;  %3709 = vrot.lane.b32.xlu1 %v7929_v7, %s5908_s19  ;;  %9681 = vst [vmem:[#allocation34_spill] sm:$0xff] %v7963_v46 }
 0x234   : > { %vm1718_vm9 = vmor %vm950_vm12, %vm1526_vm4  ;;  %vm1141_vm12 = vcmp.eq.f32.partialorder %v7090_v55, %v6690_v0 }
 0x235   : > { %vm1724_vm7 = vmor %vm956_vm10, %vm1532_vm1  ;;  %vm1333_vm10 = vcmp.lt.s32.totalorder %v7097_v10, %v6701_v39  ;;  %vm1147_vm1 = vcmp.eq.f32.partialorder %v7090_v55, %v9679_v28 }
 0x236   : > { %vm5169_vm3 = vmpackc.low %vm1724_vm7, %vm1718_vm9  ;;  %vm1339_vm9 = vcmp.lt.s32.totalorder %v7097_v10, %v9680_v45  ;;  %vm955_vm7 = vcmp.gt.f32.partialorder %v7090_v55, %v9679_v28 }
 0x237   : > { %5170 = vmatprep.mubr.msk.bf16.mxu1 %vm5169_vm3, %v9636_v31  ;;  %vm1528_vm5 = vmand %vm1144_vm15, %vm1336_vm2  ;;  %3260 = vrot.lane.b32.xlu1 %v7963_v46, %s5908_s19  ;;  %vm949_vm2 = vcmp.gt.f32.partialorder %v7090_v55, %v6690_v0 }
 0x238   : > { %vm1534_vm6 = vmand %vm1150_vm14, %vm1342_vm13  ;;  %v5386_v22 = vpop.f32.mrb[36].mxu1 }
 0x239   : > { %vm1720_vm8 = vmor %vm952_vm0, %vm1528_vm5  ;;  %v5387_v13 = vpop.f32.mrb[37].mxu1  ;;  %vm1143_vm0 = vcmp.eq.f32.partialorder %v7111_v18, %v6690_v0 }
 0x23a   : > { %vm1726_vm4 = vmor %vm958_vm11, %vm1534_vm6  ;;  %v5388_v9 = vadd.f32 %v5387_v13, %v5386_v22  ;;  %v5389_v41 = vpop.f32.mrb[38].mxu1  ;;  %vm1335_vm11 = vcmp.lt.s32.totalorder %v7118_v25, %v6701_v39  ;;  %vm1149_vm6 = vcmp.eq.f32.partialorder %v7111_v18, %v9679_v28 }
 0x23b   : > { %vm5233_vm15 = vmpackc.low %vm1726_vm4, %vm1720_vm8  ;;  %v5390_v29 = vpop.f32.mrb[39].mxu1  ;;  %vm1341_vm8 = vcmp.lt.s32.totalorder %v7118_v25, %v9680_v45  ;;  %vm957_vm4 = vcmp.gt.f32.partialorder %v7111_v18, %v9679_v28  ;;  %v9685_v28 = vld [vmem:[#allocation39_spill] sm:$0xff]  ;;  %v5836_v45 = vld [vmem:[%s5997_s16 + $0x10] sm:$0xff] }
 0x23c   : > { %5234 = vmatprep.mubr.msk.bf16.mxu0 %vm5233_vm15, %v9636_v31  ;;  %vm1525_vm14 = vmand %vm1141_vm12, %vm1333_vm10  ;;  %v2831_v62 = vadd.f32 %v5388_v9, %v7647_v50  ;;  %v5391_v23 = vadd.f32 %v5390_v29, %v5389_v41  ;;  %vm951_vm10 = vcmp.gt.f32.partialorder %v7111_v18, %v6690_v0  ;;  %v9684_v0 = vld [vmem:[#allocation38_spill] sm:$0xff]  ;;  %v5837_v41 = vld [vmem:[%s5997_s16 + $0x18] sm:$0xff] }
 0x23d   : > { %vm1531_vm13 = vmand %vm1147_vm1, %vm1339_vm9  ;;  %v5498_v4 = vpop.f32.mrb[36].mxu0 }
 0x23e   : > { %vm1717_vm3 = vmor %vm949_vm2, %vm1525_vm14  ;;  %v5499_v43 = vpop.f32.mrb[37].mxu0  ;;  %v2834_v52 = vadd.f32 %v5391_v23, %v7664_v54  ;;  %vm1154_vm2 = vcmp.eq.f32.partialorder %v7048_v58, %v9682_v56 }
 0x23f   : > { %vm1723_vm5 = vmor %vm955_vm7, %vm1531_vm13  ;;  %v5500_v50 = vadd.f32 %v5499_v43, %v5498_v4  ;;  %v5501_v61 = vpop.f32.mrb[38].mxu0  ;;  %vm1346_vm7 = vcmp.lt.s32.totalorder %v7055_v19, %v9683_v15  ;;  %vm1160_vm13 = vcmp.eq.f32.partialorder %v7048_v58, %v9684_v0 }
 0x240   : > { %vm5171_vm12 = vmpackc.low %vm1723_vm5, %vm1717_vm3  ;;  %v5502_v11 = vpop.f32.mrb[39].mxu0  ;;  %vm1352_vm3 = vcmp.lt.s32.totalorder %v7055_v19, %v9685_v28  ;;  %vm968_vm5 = vcmp.gt.f32.partialorder %v7048_v58, %v9684_v0 }
 0x241   : > { %5172 = vmatmul.mubr.msk.bf16.gmra.mrb[80].mxu1 %vm5171_vm12, %v9636_v31  ;;  %vm1527_vm1 = vmand %vm1143_vm0, %vm1335_vm11  ;;  %v8000_v39 = vadd.f32 %v5500_v50, %v2831_v62  ;;  %v5503_v54 = vadd.f32 %v5502_v11, %v5501_v61  ;;  %vm962_vm11 = vcmp.gt.f32.partialorder %v7048_v58, %v9682_v56 }
 0x242   : > { %vm1533_vm9 = vmand %vm1149_vm6, %vm1341_vm8 }
 0x243   : > { %vm1719_vm15 = vmor %vm951_vm10, %vm1527_vm1  ;;  %v8006_v32 = vadd.f32 %v5503_v54, %v2834_v52  ;;  %3711 = vrot.lane.b32.xlu1 %v8000_v39, %s5908_s19  ;;  %vm1156_vm10 = vcmp.eq.f32.partialorder %v7069_v33, %v9682_v56  ;;  %v8031_v44 = vadd.f32 %v5836_v45, %v8000_v39 }
 0x244   : > { %vm1725_vm14 = vmor %vm957_vm4, %vm1533_vm9  ;;  %vm1348_vm4 = vcmp.lt.s32.totalorder %v7076_v21, %v9683_v15  ;;  %vm1162_vm9 = vcmp.eq.f32.partialorder %v7069_v33, %v9684_v0 }
 0x245   : > { %vm5235_vm0 = vmpackc.low %vm1725_vm14, %vm1719_vm15  ;;  %vm1354_vm15 = vcmp.lt.s32.totalorder %v7076_v21, %v9685_v28  ;;  %9686 = vst [vmem:[#allocation35_spill] sm:$0xff] %v8031_v44  ;;  %vm970_vm14 = vcmp.gt.f32.partialorder %v7069_v33, %v9684_v0  ;;  %v8050_v29 = vadd.f32 %v5837_v41, %v8006_v32 }
 0x246   : > { %5236 = vmatmul.mubr.msk.bf16.gmra.mrb[80].mxu0 %vm5235_vm0, %v9636_v31  ;;  %vm1538_vm6 = vmand %vm1154_vm2, %vm1346_vm7  ;;  %vm964_vm7 = vcmp.gt.f32.partialorder %v7069_v33, %v9682_v56 }
 0x247   : > { %vm1544_vm8 = vmand %vm1160_vm13, %vm1352_vm3  ;;  %3713 = vrot.lane.b32.xlu1 %v8006_v32, %s5908_s19  ;;  %9689 = vst [vmem:[#allocation36_spill] sm:$0xff] %v8050_v29 }
 0x248   : > { %vm1730_vm12 = vmor %vm962_vm11, %vm1538_vm6  ;;  %vm1153_vm11 = vcmp.eq.f32.partialorder %v7090_v55, %v9682_v56 }
 0x249   : > { %vm1736_vm1 = vmor %vm968_vm5, %vm1544_vm8  ;;  %vm1345_vm5 = vcmp.lt.s32.totalorder %v7097_v10, %v9683_v15  ;;  %vm1159_vm8 = vcmp.eq.f32.partialorder %v7090_v55, %v9684_v0 }
 0x24a   : > { %vm5173_vm2 = vmpackc.low %vm1736_vm1, %vm1730_vm12  ;;  %vm1351_vm12 = vcmp.lt.s32.totalorder %v7097_v10, %v9685_v28  ;;  %vm967_vm1 = vcmp.gt.f32.partialorder %v7090_v55, %v9684_v0 }
 0x24b   : > { %5174 = vmatprep.mubr.msk.bf16.mxu1 %vm5173_vm2, %v9636_v31  ;;  %vm1540_vm13 = vmand %vm1156_vm10, %vm1348_vm4  ;;  %3262 = vrot.lane.b32.xlu1 %v8031_v44, %s5908_s19  ;;  %vm961_vm4 = vcmp.gt.f32.partialorder %v7090_v55, %v9682_v56 }
 0x24c   : > { %vm1546_vm3 = vmand %vm1162_vm9, %vm1354_vm15  ;;  %v5392_v22 = vpop.f32.mrb[40].mxu1 }
 0x24d   : > { %vm8040_vm0 = vmor %vm964_vm7, %vm1540_vm13  ;;  %v5393_v9 = vpop.f32.mrb[41].mxu1  ;;  %vm1155_vm7 = vcmp.eq.f32.partialorder %v7111_v18, %v9682_v56 }
 0x24e   : > { %vm1738_vm6 = vmor %vm970_vm14, %vm1546_vm3  ;;  %v5394_v62 = vadd.f32 %v5393_v9, %v5392_v22  ;;  %v5395_v23 = vpop.f32.mrb[42].mxu1  ;;  %vm1347_vm14 = vcmp.lt.s32.totalorder %v7118_v25, %v9683_v15  ;;  %vm1161_vm3 = vcmp.eq.f32.partialorder %v7111_v18, %v9684_v0  ;;  %v9690_v22 = vld [vmem:[#allocation40_spill] sm:$0xff]  ;;  %v5838_v9 = vld [vmem:[%s5997_s16 + $0x20] sm:$0xff] }
 0x24f   : > { %vm5237_vm10 = vmpackc.low %vm1738_vm6, %vm8040_vm0  ;;  %v5396_v4 = vpop.f32.mrb[43].mxu1  ;;  %3264 = vrot.lane.b32.xlu1 %v8050_v29, %s5908_s19  ;;  %vm1353_vm0 = vcmp.lt.s32.totalorder %v7118_v25, %v9685_v28  ;;  %vm969_vm6 = vcmp.gt.f32.partialorder %v7111_v18, %v9684_v0  ;;  %v9691_v28 = vld [vmem:[#allocation41_spill] sm:$0xff]  ;;  %v9693_v0 = vld [vmem:[#allocation43_spill] sm:$0xff] }
 0x250   : > { %5238 = vmatprep.mubr.msk.bf16.mxu0 %vm5237_vm10, %v9636_v31  ;;  %vm1537_vm9 = vmand %vm1153_vm11, %vm1345_vm5  ;;  %v2839_v43 = vadd.f32 %v5394_v62, %v7685_v17  ;;  %v5397_v52 = vadd.f32 %v5396_v4, %v5395_v23  ;;  %vm963_vm5 = vcmp.gt.f32.partialorder %v7111_v18, %v9682_v56  ;;  %v9692_v56 = vld [vmem:[#allocation42_spill] sm:$0xff] }
 0x251   : > { %vm1543_vm15 = vmand %vm1159_vm8, %vm1351_vm12  ;;  %v5504_v50 = vpop.f32.mrb[40].mxu0 }
 0x252   : > { %vm1729_vm2 = vmor %vm961_vm4, %vm1537_vm9  ;;  %v5505_v61 = vpop.f32.mrb[41].mxu0  ;;  %v2842_v11 = vadd.f32 %v5397_v52, %v7700_v60  ;;  %vm1166_vm4 = vcmp.eq.f32.partialorder %v7048_v58, %v9690_v22 }
 0x253   : > { %vm1735_vm13 = vmor %vm967_vm1, %vm1543_vm15  ;;  %v5506_v17 = vadd.f32 %v5505_v61, %v5504_v50  ;;  %v5507_v54 = vpop.f32.mrb[42].mxu0  ;;  %vm1358_vm1 = vcmp.lt.s32.totalorder %v7055_v19, %v9691_v28  ;;  %vm1172_vm15 = vcmp.eq.f32.partialorder %v7048_v58, %v9692_v56 }
 0x254   : > { %vm5175_vm11 = vmpackc.low %vm1735_vm13, %vm1729_vm2  ;;  %v5508_v45 = vpop.f32.mrb[43].mxu0  ;;  %vm1364_vm2 = vcmp.lt.s32.totalorder %v7055_v19, %v9693_v0  ;;  %vm980_vm13 = vcmp.gt.f32.partialorder %v7048_v58, %v9692_v56 }
 0x255   : > { %5176 = vmatmul.mubr.msk.bf16.gmra.mrb[84].mxu1 %vm5175_vm11, %v9636_v31  ;;  %vm1539_vm8 = vmand %vm1155_vm7, %vm1347_vm14  ;;  %v8086_v60 = vadd.f32 %v5506_v17, %v2839_v43  ;;  %v5509_v15 = vadd.f32 %v5508_v45, %v5507_v54  ;;  %vm974_vm14 = vcmp.gt.f32.partialorder %v7048_v58, %v9690_v22  ;;  %v5839_v43 = vld [vmem:[%s5997_s16 + $0x28] sm:$0xff] }
 0x256   : > { %vm1545_vm12 = vmand %vm1161_vm3, %vm1353_vm0 }
 0x257   : > { %vm1731_vm10 = vmor %vm963_vm5, %vm1539_vm8  ;;  %v8092_v13 = vadd.f32 %v5509_v15, %v2842_v11  ;;  %3715 = vrot.lane.b32.xlu1 %v8086_v60, %s5908_s19  ;;  %vm1168_vm5 = vcmp.eq.f32.partialorder %v7069_v33, %v9690_v22  ;;  %v8117_v41 = vadd.f32 %v5838_v9, %v8086_v60 }
 0x258   : > { %vm1737_vm9 = vmor %vm969_vm6, %vm1545_vm12  ;;  %vm1360_vm6 = vcmp.lt.s32.totalorder %v7076_v21, %v9691_v28  ;;  %vm1174_vm12 = vcmp.eq.f32.partialorder %v7069_v33, %v9692_v56 }
 0x259   : > { %vm5239_vm7 = vmpackc.low %vm1737_vm9, %vm1731_vm10  ;;  %vm1366_vm10 = vcmp.lt.s32.totalorder %v7076_v21, %v9693_v0  ;;  %9694 = vst [vmem:[#allocation37_spill] sm:$0xff] %v8117_v41  ;;  %vm982_vm9 = vcmp.gt.f32.partialorder %v7069_v33, %v9692_v56  ;;  %v8136_v52 = vadd.f32 %v5839_v43, %v8092_v13 }
 0x25a   : > { %5240 = vmatmul.mubr.msk.bf16.gmra.mrb[84].mxu0 %vm5239_vm7, %v9636_v31  ;;  %vm1550_vm3 = vmand %vm1166_vm4, %vm1358_vm1  ;;  %vm976_vm1 = vcmp.gt.f32.partialorder %v7069_v33, %v9690_v22 }
 0x25b   : > { %vm1556_vm0 = vmand %vm1172_vm15, %vm1364_vm2  ;;  %3717 = vrot.lane.b32.xlu1 %v8092_v13, %s5908_s19  ;;  %9697 = vst [vmem:[#allocation38_spill] sm:$0xff] %v8136_v52 }
 0x25c   : > { %vm1742_vm11 = vmor %vm974_vm14, %vm1550_vm3  ;;  %vm1165_vm14 = vcmp.eq.f32.partialorder %v7090_v55, %v9690_v22 }
 0x25d   : > { %vm1748_vm8 = vmor %vm980_vm13, %vm1556_vm0  ;;  %vm1357_vm13 = vcmp.lt.s32.totalorder %v7097_v10, %v9691_v28  ;;  %vm1171_vm0 = vcmp.eq.f32.partialorder %v7090_v55, %v9692_v56 }
 0x25e   : > { %vm5177_vm4 = vmpackc.low %vm1748_vm8, %vm1742_vm11  ;;  %vm1363_vm11 = vcmp.lt.s32.totalorder %v7097_v10, %v9693_v0  ;;  %vm979_vm8 = vcmp.gt.f32.partialorder %v7090_v55, %v9692_v56 }
 0x25f   : > { %5178 = vmatprep.mubr.msk.bf16.mxu1 %vm5177_vm4, %v9636_v31  ;;  %vm1552_vm15 = vmand %vm1168_vm5, %vm1360_vm6  ;;  %3266 = vrot.lane.b32.xlu1 %v8117_v41, %s5908_s19  ;;  %vm973_vm6 = vcmp.gt.f32.partialorder %v7090_v55, %v9690_v22 }
 0x260   : > { %vm1558_vm2 = vmand %vm1174_vm12, %vm1366_vm10  ;;  %v5398_v62 = vpop.f32.mrb[44].mxu1 }
 0x261   : > { %vm8126_vm7 = vmor %vm976_vm1, %vm1552_vm15  ;;  %v5399_v4 = vpop.f32.mrb[45].mxu1  ;;  %vm1167_vm1 = vcmp.eq.f32.partialorder %v7111_v18, %v9690_v22 }
 0x262   : > { %vm1750_vm3 = vmor %vm982_vm9, %vm1558_vm2  ;;  %v5400_v50 = vadd.f32 %v5399_v4, %v5398_v62  ;;  %v5401_v61 = vpop.f32.mrb[46].mxu1  ;;  %vm1359_vm9 = vcmp.lt.s32.totalorder %v7118_v25, %v9691_v28  ;;  %vm1173_vm2 = vcmp.eq.f32.partialorder %v7111_v18, %v9692_v56 }
 0x263   : > { %vm5241_vm5 = vmpackc.low %vm1750_vm3, %vm8126_vm7  ;;  %v5402_v11 = vpop.f32.mrb[47].mxu1  ;;  %3268 = vrot.lane.b32.xlu1 %v8136_v52, %s5908_s19  ;;  %vm1365_vm7 = vcmp.lt.s32.totalorder %v7118_v25, %v9693_v0  ;;  %vm981_vm3 = vcmp.gt.f32.partialorder %v7111_v18, %v9692_v56  ;;  %v9698_v0 = vld [vmem:[#allocation44_spill] sm:$0xff]  ;;  %v9700_v56 = vld [vmem:[#allocation46_spill] sm:$0xff] }
 0x264   : > { %5242 = vmatprep.mubr.msk.bf16.mxu0 %vm5241_vm5, %v9636_v31  ;;  %vm1549_vm12 = vmand %vm1165_vm14, %vm1357_vm13  ;;  %v2847_v17 = vadd.f32 %v5400_v50, %v7719_v47  ;;  %v5403_v54 = vadd.f32 %v5402_v11, %v5401_v61  ;;  %vm975_vm13 = vcmp.gt.f32.partialorder %v7111_v18, %v9690_v22  ;;  %v9699_v22 = vld [vmem:[#allocation45_spill] sm:$0xff] }
 0x265   : > { %vm1555_vm10 = vmand %vm1171_vm0, %vm1363_vm11  ;;  %v5510_v45 = vpop.f32.mrb[44].mxu0  ;;  %v5841_v61 = vld [vmem:[%s5997_s16 + $0x38] sm:$0xff] }
 0x266   : > { %vm1741_vm4 = vmor %vm973_vm6, %vm1549_vm12  ;;  %v5511_v15 = vpop.f32.mrb[45].mxu0  ;;  %v2850_v9 = vadd.f32 %v5403_v54, %v7741_v30  ;;  %vm1178_vm6 = vcmp.eq.f32.partialorder %v7048_v58, %v6971_v37 }
 0x267   : > { %vm1747_vm15 = vmor %vm979_vm8, %vm1555_vm10  ;;  %v5512_v47 = vadd.f32 %v5511_v15, %v5510_v45  ;;  %v5513_v62 = vpop.f32.mrb[46].mxu0  ;;  %vm1370_vm8 = vcmp.lt.s32.totalorder %v7055_v19, %v9698_v0  ;;  %vm1184_vm10 = vcmp.eq.f32.partialorder %v7048_v58, %v9699_v22 }
 0x268   : > { %vm5179_vm14 = vmpackc.low %vm1747_vm15, %vm1741_vm4  ;;  %v5514_v23 = vpop.f32.mrb[47].mxu0  ;;  %vm1376_vm4 = vcmp.lt.s32.totalorder %v7055_v19, %v9700_v56  ;;  %vm992_vm15 = vcmp.gt.f32.partialorder %v7048_v58, %v9699_v22 }
 0x269   : > { %5180 = vmatmul.mubr.msk.bf16.gmra.mrb[88].mxu1 %vm5179_vm14, %v9636_v31  ;;  %vm1551_vm0 = vmand %vm1167_vm1, %vm1359_vm9  ;;  %v8172_v30 = vadd.f32 %v5512_v47, %v2847_v17  ;;  %v5515_v28 = vadd.f32 %v5514_v23, %v5513_v62  ;;  %vm986_vm9 = vcmp.gt.f32.partialorder %v7048_v58, %v6971_v37  ;;  %v5840_v58 = vld [vmem:[%s5997_s16 + $0x30] sm:$0xff] }
 0x26a   : > { %vm1557_vm11 = vmand %vm1173_vm2, %vm1365_vm7 }
 0x26b   : > { %vm1743_vm5 = vmor %vm975_vm13, %vm1551_vm0  ;;  %v8178_v4 = vadd.f32 %v5515_v28, %v2850_v9  ;;  %3719 = vrot.lane.b32.xlu1 %v8172_v30, %s5908_s19  ;;  %vm1180_vm13 = vcmp.eq.f32.partialorder %v7069_v33, %v6971_v37  ;;  %v8203_v19 = vadd.f32 %v5840_v58, %v8172_v30  ;;  %v5843_v28 = vld [vmem:[%s5997_s16 + $0x48] sm:$0xff] }
 0x26c   : > { %vm1749_vm12 = vmor %vm981_vm3, %vm1557_vm11  ;;  %vm1372_vm3 = vcmp.lt.s32.totalorder %v7076_v21, %v9698_v0  ;;  %vm1186_vm11 = vcmp.eq.f32.partialorder %v7069_v33, %v9699_v22 }
 0x26d   : > { %vm5243_vm1 = vmpackc.low %vm1749_vm12, %vm1743_vm5  ;;  %vm1378_vm5 = vcmp.lt.s32.totalorder %v7076_v21, %v9700_v56  ;;  %9701 = vst [vmem:[#allocation39_spill] sm:$0xff] %v8203_v19  ;;  %vm994_vm12 = vcmp.gt.f32.partialorder %v7069_v33, %v9699_v22 }
 0x26e   : > { %5244 = vmatmul.mubr.msk.bf16.gmra.mrb[88].mxu0 %vm5243_vm1, %v9636_v31  ;;  %vm1562_vm2 = vmand %vm1178_vm6, %vm1370_vm8  ;;  %vm988_vm8 = vcmp.gt.f32.partialorder %v7069_v33, %v6971_v37  ;;  %v8222_v33 = vadd.f32 %v5841_v61, %v8178_v4 }
 0x26f   : > { %vm1568_vm7 = vmand %vm1184_vm10, %vm1376_vm4  ;;  %3721 = vrot.lane.b32.xlu1 %v8178_v4, %s5908_s19 }
 0x270   : > { %vm1754_vm14 = vmor %vm986_vm9, %vm1562_vm2  ;;  %vm1177_vm9 = vcmp.eq.f32.partialorder %v7090_v55, %v6971_v37  ;;  %9704 = vst [vmem:[#allocation40_spill] sm:$0xff] %v8222_v33 }
 0x271   : > { %vm1760_vm0 = vmor %vm992_vm15, %vm1568_vm7  ;;  %vm1369_vm15 = vcmp.lt.s32.totalorder %v7097_v10, %v9698_v0  ;;  %vm1183_vm7 = vcmp.eq.f32.partialorder %v7090_v55, %v9699_v22 }
 0x272   : > { %vm5181_vm6 = vmpackc.low %vm1760_vm0, %vm1754_vm14  ;;  %vm1375_vm14 = vcmp.lt.s32.totalorder %v7097_v10, %v9700_v56  ;;  %vm991_vm0 = vcmp.gt.f32.partialorder %v7090_v55, %v9699_v22 }
 0x273   : > { %5182 = vmatprep.mubr.msk.bf16.mxu1 %vm5181_vm6, %v9636_v31  ;;  %vm1564_vm10 = vmand %vm1180_vm13, %vm1372_vm3  ;;  %3270 = vrot.lane.b32.xlu1 %v8203_v19, %s5908_s19  ;;  %vm985_vm3 = vcmp.gt.f32.partialorder %v7090_v55, %v6971_v37 }
 0x274   : > { %vm1570_vm4 = vmand %vm1186_vm11, %vm1378_vm5  ;;  %v5404_v43 = vpop.f32.mrb[48].mxu1 }
 0x275   : > { %vm8212_vm1 = vmor %vm988_vm8, %vm1564_vm10  ;;  %v5405_v50 = vpop.f32.mrb[49].mxu1  ;;  %vm1179_vm8 = vcmp.eq.f32.partialorder %v7111_v18, %v6971_v37 }
 0x276   : > { %vm1762_vm2 = vmor %vm994_vm12, %vm1570_vm4  ;;  %v5406_v11 = vadd.f32 %v5405_v50, %v5404_v43  ;;  %v5407_v17 = vpop.f32.mrb[50].mxu1  ;;  %vm1371_vm12 = vcmp.lt.s32.totalorder %v7118_v25, %v9698_v0  ;;  %vm1185_vm4 = vcmp.eq.f32.partialorder %v7111_v18, %v9699_v22 }
 0x277   : > { %vm5245_vm13 = vmpackc.low %vm1762_vm2, %vm8212_vm1  ;;  %v5408_v54 = vpop.f32.mrb[51].mxu1  ;;  %3272 = vrot.lane.b32.xlu1 %v8222_v33, %s5908_s19  ;;  %vm1377_vm1 = vcmp.lt.s32.totalorder %v7118_v25, %v9700_v56  ;;  %vm993_vm2 = vcmp.gt.f32.partialorder %v7111_v18, %v9699_v22 }
 0x278   : > { %5246 = vmatprep.mubr.msk.bf16.mxu0 %vm5245_vm13, %v9636_v31  ;;  %vm1561_vm11 = vmand %vm1177_vm9, %vm1369_vm15  ;;  %v2855_v45 = vadd.f32 %v5406_v11, %v7758_v48  ;;  %v5409_v15 = vadd.f32 %v5408_v54, %v5407_v17  ;;  %vm987_vm15 = vcmp.gt.f32.partialorder %v7111_v18, %v6971_v37  ;;  %v5842_v37 = vld [vmem:[%s5997_s16 + $0x40] sm:$0xff] }
 0x279   : > { %vm1567_vm5 = vmand %vm1183_vm7, %vm1375_vm14  ;;  %v5516_v9 = vpop.f32.mrb[48].mxu0 }
 0x27a   : > { %vm1753_vm6 = vmor %vm985_vm3, %vm1561_vm11  ;;  %v5517_v47 = vpop.f32.mrb[49].mxu0  ;;  %v2858_v62 = vadd.f32 %v5409_v15, %v7779_v16  ;;  %vm3867_vm11 = vcmp.gt.f32.partialorder %v7923_v2, 0.0 }
 0x27b   : > { %vm1759_vm10 = vmor %vm991_vm0, %vm1567_vm5  ;;  %v5518_v10 = vadd.f32 %v5517_v47, %v5516_v9  ;;  %v5519_v55 = vpop.f32.mrb[50].mxu0  ;;  %vm3869_vm5 = vcmp.gt.f32.partialorder %v8000_v39, 0.0 }
 0x27c   : > { %vm5183_vm9 = vmpackc.low %vm1759_vm10, %vm1753_vm6  ;;  %v5520_v48 = vpop.f32.mrb[51].mxu0  ;;  %vm3868_vm6 = vcmp.gt.f32.partialorder %v7929_v7, 0.0  ;;  %vm3872_vm10 = vcmp.gt.f32.partialorder %v8092_v13, 0.0 }
 0x27d   : > { %5184 = vmatmul.mubr.msk.bf16.gmra.mrb[92].mxu1 %vm5183_vm9, %v9636_v31  ;;  %vm1563_vm7 = vmand %vm1179_vm8, %vm1371_vm12  ;;  %v8258_v16 = vadd.f32 %v5518_v10, %v2855_v45  ;;  %v5521_v23 = vadd.f32 %v5520_v48, %v5519_v55  ;;  %v5844_v10 = vld [vmem:[%s5997_s16 + $0x58] sm:$0xff]  ;;  %vm3870_vm8 = vcmp.gt.f32.partialorder %v8006_v32, 0.0  ;;  %vm3871_vm12 = vcmp.gt.f32.partialorder %v8086_v60, 0.0 }
 0x27e   : > { %vm1569_vm14 = vmand %vm1185_vm4, %vm1377_vm1  ;;  %vm3874_vm4 = vcmp.gt.f32.partialorder %v8178_v4, 0.0  ;;  %vm3873_vm9 = vcmp.gt.f32.partialorder %v8172_v30, 0.0 }
 0x27f   : > { %vm1755_vm13 = vmor %vm987_vm15, %vm1563_vm7  ;;  %v8260_v25 = vadd.f32 %v5521_v23, %v2858_v62  ;;  %3723 = vrot.lane.b32.xlu0 %v8258_v16, %s5908_s19  ;;  %v8269_v18 = vadd.f32 %v5842_v37, %v8258_v16 }
 0x280   : > { %vm1761_vm3 = vmor %vm993_vm2, %vm1569_vm14  ;;  %vm3875_vm14 = vcmp.gt.f32.partialorder %v8258_v16, 0.0 }
 0x281   : > { %vm5247_vm0 = vmpackc.low %vm1761_vm3, %vm1755_vm13  ;;  %3725 = vrot.lane.b32.xlu1 %v8260_v25, %s5908_s19  ;;  %9705 = vst [vmem:[#allocation41_spill] sm:$0xff] %v8269_v18  ;;  %v8275_v0 = vadd.f32 %v5843_v28, %v8260_v25  ;;  %vm3876_vm1 = vcmp.gt.f32.partialorder %v8260_v25, 0.0 }
 0x282   : > { %5248 = vmatmul.mubr.msk.bf16.gmra.mrb[92].mxu0 %vm5247_vm0, %v9636_v31 }
 0x283   : > { %9706 = vst [vmem:[#allocation42_spill] sm:$0xff] %v8275_v0 }
 0x285   : > { %3274 = vrot.lane.b32.xlu1 %v8269_v18, %s5908_s19 }
 0x288   : > { %v5410_v22 = vpop.f32.mrb[52].mxu1 }
 0x289   : > { %v5411_v56 = vpop.f32.mrb[53].mxu1  ;;  %3276 = vrot.lane.b32.xlu1 %v8275_v0, %s5908_s19 }
 0x28a   : > { %v5412_v58 = vadd.f32 %v5411_v56, %v5410_v22  ;;  %v5413_v43 = vpop.f32.mrb[54].mxu1 }
 0x28b   : > { %v5414_v31 = vpop.f32.mrb[55].mxu1 }
 0x28c   : > { %v2863_v21 = vadd.f32 %v5412_v58, %v7794_v53  ;;  %v5415_v50 = vadd.f32 %v5414_v31, %v5413_v43 }
 0x28d   : > { %v5522_v61 = vpop.f32.mrb[52].mxu0 }
 0x28e   : > { %v5523_v11 = vpop.f32.mrb[53].mxu0  ;;  %v2866_v17 = vadd.f32 %v5415_v50, %v7813_v49  ;;  %v5845_v49 = vld [vmem:[%s5997_s16 + $0x50] sm:$0xff] }
 0x28f   : > { %v5524_v54 = vadd.f32 %v5523_v11, %v5522_v61  ;;  %v5525_v45 = vpop.f32.mrb[54].mxu0 }
 0x290   : > { %v5526_v15 = vpop.f32.mrb[55].mxu0 }
 0x291   : > { %v8281_v9 = vadd.f32 %v5524_v54, %v2863_v21  ;;  %v5527_v47 = vadd.f32 %v5526_v15, %v5525_v45  ;;  %v5846_v15 = vld [vmem:[%s5997_s16 + $0x60] sm:$0xff] }
 0x293   : > { %9707 = vst [vmem:[#allocation43_spill] sm:$0xff] %v8281_v9  ;;  %v8283_v62 = vadd.f32 %v5527_v47, %v2866_v17  ;;  %3727 = vrot.lane.b32.xlu1 %v8281_v9, %s5908_s19  ;;  %v8297_v55 = vadd.f32 %v5845_v49, %v8281_v9  ;;  %vm3877_vm0 = vcmp.gt.f32.partialorder %v8281_v9, 0.0 }
 0x295   : > { %v8289_v53 = vadd.f32 %v5844_v10, %v8283_v62  ;;  %9709 = vst [vmem:[#allocation45_spill] sm:$0xff] %v8297_v55  ;;  %vm3878_vm15 = vcmp.gt.f32.partialorder %v8283_v62, 0.0 }
 0x297   : > { %9708 = vst [vmem:[#allocation44_spill] sm:$0xff] %v8289_v53  ;;  %3280 = vrot.lane.b32.xlu0 %v8289_v53, %s5908_s19  ;;  %3729 = vrot.lane.b32.xlu1 %v8283_v62, %s5908_s19 }
 0x29b   : > { %3278 = vrot.lane.b32.xlu1 %v8297_v55, %s5908_s19 }
 0x29c   : > { %v5416_v48 = vpop.f32.mrb[56].mxu1 }
 0x29d   : > { %v5417_v23 = vpop.f32.mrb[57].mxu1 }
 0x29e   : > { %v5418_v37 = vadd.f32 %v5417_v23, %v5416_v48  ;;  %v5419_v28 = vpop.f32.mrb[58].mxu1 }
 0x29f   : > { %v5420_v22 = vpop.f32.mrb[59].mxu1 }
 0x2a0   : > { %v2871_v56 = vadd.f32 %v5418_v37, %v7832_v40  ;;  %v5421_v58 = vadd.f32 %v5420_v22, %v5419_v28  ;;  %v5847_v40 = vld [vmem:[%s5997_s16 + $0x68] sm:$0xff] }
 0x2a1   : > { %v5528_v43 = vpop.f32.mrb[56].mxu0 }
 0x2a2   : > { %v5529_v31 = vpop.f32.mrb[57].mxu0  ;;  %v2874_v21 = vadd.f32 %v5421_v58, %v7849_v6 }
 0x2a3   : > { %v5530_v50 = vadd.f32 %v5529_v31, %v5528_v43  ;;  %v5531_v61 = vpop.f32.mrb[58].mxu0 }
 0x2a4   : > { %v5532_v11 = vpop.f32.mrb[59].mxu0 }
 0x2a5   : > { %v8303_v17 = vadd.f32 %v5530_v50, %v2871_v56  ;;  %v5533_v54 = vadd.f32 %v5532_v11, %v5531_v61 }
 0x2a7   : > { %v8305_v45 = vadd.f32 %v5533_v54, %v2874_v21  ;;  %v8309_v47 = vadd.f32 %v5846_v15, %v8303_v17  ;;  %3731 = vrot.lane.b32.xlu1 %v8303_v17, %s5908_s19 }
 0x2a9   : > { %9710 = vst [vmem:[#allocation46_spill] sm:$0xff] %v8309_v47  ;;  %3282 = vrot.lane.b32.xlu0 %v8309_v47, %s5908_s19  ;;  %v8317_v6 = vadd.f32 %v5847_v40, %v8305_v45  ;;  %vm9579_vm2 = vcmp.gt.f32.partialorder %v8305_v45, 0.0 }
 0x2ab   : > { %9711 = vst [vmem:[#allocation48_spill] sm:$0xff] %v8317_v6  ;;  %3733 = vrot.lane.b32.xlu1 %v8305_v45, %s5908_s19 }
 0x2ad   : > { %3284 = vrot.lane.b32.xlu0 %v8317_v6, %s5908_s19 }
 0x2b0   : > { %v5422_v10 = vpop.f32.mrb[60].mxu1 }
 0x2b1   : > { %v5423_v49 = vpop.f32.mrb[61].mxu1 }
 0x2b2   : > { %v5424_v48 = vadd.f32 %v5423_v49, %v5422_v10  ;;  %v5425_v23 = vpop.f32.mrb[62].mxu1 }
 0x2b3   : > { %v5426_v37 = vpop.f32.mrb[63].mxu1 }
 0x2b4   : > { %v2879_v28 = vadd.f32 %v5424_v48, %v7867_v34  ;;  %v5427_v22 = vadd.f32 %v5426_v37, %v5425_v23  ;;  %v5848_v34 = vld [vmem:[%s5997_s16 + $0x70] sm:$0xff] }
 0x2b5   : > { %v5534_v56 = vpop.f32.mrb[60].mxu0 }
 0x2b6   : > { %v5535_v58 = vpop.f32.mrb[61].mxu0  ;;  %v2882_v43 = vadd.f32 %v5427_v22, %v7882_v36  ;;  %v5849_v36 = vld [vmem:[%s5997_s16 + $0x78] sm:$0xff] }
 0x2b7   : > { %v5536_v31 = vadd.f32 %v5535_v58, %v5534_v56  ;;  %v5537_v21 = vpop.f32.mrb[62].mxu0 }
 0x2b8   : > { %v5538_v50 = vpop.f32.mrb[63].mxu0 }
 0x2b9   : > { %v8325_v61 = vadd.f32 %v5536_v31, %v2879_v28  ;;  %v5539_v11 = vadd.f32 %v5538_v50, %v5537_v21 }
 0x2bb   : > { %v8327_v54 = vadd.f32 %v5539_v11, %v2882_v43  ;;  %3735 = vrot.lane.b32.xlu1 %v8325_v61, %s5908_s19  ;;  %v8335_v15 = vadd.f32 %v5848_v34, %v8325_v61 }
 0x2bd   : > { %3737 = vrot.lane.b32.xlu0 %v8327_v54, %s5908_s19  ;;  %9712 = vst [vmem:[#allocation49_spill] sm:$0xff] %v8335_v15  ;;  %v8341_v40 = vadd.f32 %v5849_v36, %v8327_v54  ;;  %vm9575_vm7 = vcmp.gt.f32.partialorder %v8327_v54, 0.0 }
 0x2bf   : > { %9713 = vst [vmem:[#allocation50_spill] sm:$0xff] %v8341_v40 }
 0x2c1   : > { %3286 = vrot.lane.b32.xlu0 %v8335_v15, %s5908_s19 }
 0x2c4   : > { %v5428_v10 = vpop.f32.mrb[64].mxu1 }
 0x2c5   : > { %v5429_v49 = vpop.f32.mrb[65].mxu1  ;;  %3288 = vrot.lane.b32.xlu0 %v8341_v40, %s5908_s19 }
 0x2c6   : > { %v5430_v48 = vadd.f32 %v5429_v49, %v5428_v10  ;;  %v5431_v23 = vpop.f32.mrb[66].mxu1 }
 0x2c7   : > { %v5432_v37 = vpop.f32.mrb[67].mxu1 }
 0x2c8   : > { %v2887_v28 = vadd.f32 %v5430_v48, %v7611_v5  ;;  %v5433_v22 = vadd.f32 %v5432_v37, %v5431_v23  ;;  %v5850_v5 = vld [vmem:[%s5997_s16 + $0x80] sm:$0xff] }
 0x2c9   : > { %v5540_v56 = vpop.f32.mrb[64].mxu0 }
 0x2ca   : > { %v5541_v58 = vpop.f32.mrb[65].mxu0  ;;  %v2890_v43 = vadd.f32 %v5433_v22, %v7627_v51  ;;  %v5851_v51 = vld [vmem:[%s5997_s16 + $0x88] sm:$0xff] }
 0x2cb   : > { %v5542_v31 = vadd.f32 %v5541_v58, %v5540_v56  ;;  %v5543_v21 = vpop.f32.mrb[66].mxu0 }
 0x2cc   : > { %v5544_v50 = vpop.f32.mrb[67].mxu0 }
 0x2cd   : > { %v8347_v11 = vadd.f32 %v5542_v31, %v2887_v28  ;;  %v5545_v34 = vadd.f32 %v5544_v50, %v5543_v21 }
 0x2cf   : > { %9714 = vst [vmem:[#allocation51_spill] sm:$0xff] %v8347_v11  ;;  %v8349_v36 = vadd.f32 %v5545_v34, %v2890_v43  ;;  %3739 = vrot.lane.b32.xlu1 %v8347_v11, %s5908_s19  ;;  %v8357_v10 = vadd.f32 %v5850_v5, %v8347_v11 }
 0x2d1   : > { %3741 = vrot.lane.b32.xlu0 %v8349_v36, %s5908_s19  ;;  %9715 = vst [vmem:[#allocation52_spill] sm:$0xff] %v8357_v10  ;;  %v8363_v49 = vadd.f32 %v5851_v51, %v8349_v36  ;;  %vm9572_vm13 = vcmp.gt.f32.partialorder %v8349_v36, 0.0 }
 0x2d3   : > { %9716 = vst [vmem:[#allocation53_spill] sm:$0xff] %v8363_v49 }
 0x2d5   : > { %3290 = vrot.lane.b32.xlu0 %v8357_v10, %s5908_s19 }
 0x2d8   : > { %v5434_v48 = vpop.f32.mrb[68].mxu1 }
 0x2d9   : > { %v5435_v23 = vpop.f32.mrb[69].mxu1  ;;  %3292 = vrot.lane.b32.xlu0 %v8363_v49, %s5908_s19 }
 0x2da   : > { %v5436_v37 = vadd.f32 %v5435_v23, %v5434_v48  ;;  %v5437_v28 = vpop.f32.mrb[70].mxu1  ;;  %v5852_v48 = vld [vmem:[%s5997_s16 + $0x90] sm:$0xff] }
 0x2db   : > { %v5438_v22 = vpop.f32.mrb[71].mxu1 }
 0x2dc   : > { %v2895_v56 = vadd.f32 %v5436_v37, %v7653_v12  ;;  %v5439_v58 = vadd.f32 %v5438_v22, %v5437_v28  ;;  %v8377_v12 = vpop.permute.xlu1 %3707 }
 0x2dd   : > { %v5546_v43 = vpop.f32.mrb[68].mxu0 }
 0x2de   : > { %v5547_v31 = vpop.f32.mrb[69].mxu0  ;;  %v2898_v21 = vadd.f32 %v5439_v58, %v7672_v3  ;;  %v5853_v3 = vld [vmem:[%s5997_s16 + $0x98] sm:$0xff] }
 0x2df   : > { %v5548_v50 = vadd.f32 %v5547_v31, %v5546_v43  ;;  %v5549_v34 = vpop.f32.mrb[70].mxu0 }
 0x2e0   : > { %v5550_v5 = vpop.f32.mrb[71].mxu0 }
 0x2e1   : > { %v8369_v51 = vadd.f32 %v5548_v50, %v2895_v56  ;;  %v5551_v10 = vadd.f32 %v5550_v5, %v5549_v34 }
 0x2e3   : > { %9717 = vst [vmem:[#allocation54_spill] sm:$0xff] %v8369_v51  ;;  %v8371_v40 = vadd.f32 %v5551_v10, %v2898_v21  ;;  %3743 = vrot.lane.b32.xlu1 %v8369_v51, %s5908_s19  ;;  %v8381_v23 = vadd.f32 %v5852_v48, %v8369_v51  ;;  %v8389_v10 = vpop.permute.xlu1 %3709 }
 0x2e5   : > { %3745 = vrot.lane.b32.xlu0 %v8371_v40, %s5908_s19  ;;  %9718 = vst [vmem:[#allocation55_spill] sm:$0xff] %v8381_v23  ;;  %v8387_v37 = vadd.f32 %v5853_v3, %v8371_v40  ;;  %vm9571_vm3 = vcmp.gt.f32.partialorder %v8371_v40, 0.0 }
 0x2e7   : > { %9719 = vst [vmem:[#allocation56_spill] sm:$0xff] %v8387_v37  ;;  %v8394_v34 = vpop.permute.xlu1 %3260 }
 0x2e9   : > { %3294 = vrot.lane.b32.xlu0 %v8381_v23, %s5908_s19 }
 0x2ec   : > { %v5440_v28 = vpop.f32.mrb[72].mxu1 }
 0x2ed   : > { %v5441_v22 = vpop.f32.mrb[73].mxu1  ;;  %3296 = vrot.lane.b32.xlu0 %v8387_v37, %s5908_s19 }
 0x2ee   : > { %v5442_v56 = vadd.f32 %v5441_v22, %v5440_v28  ;;  %v5443_v58 = vpop.f32.mrb[74].mxu1  ;;  %v5854_v22 = vld [vmem:[%s5997_s16 + $0xa0] sm:$0xff] }
 0x2ef   : > { %v5444_v43 = vpop.f32.mrb[75].mxu1 }
 0x2f0   : > { %v2903_v31 = vadd.f32 %v5442_v56, %v7694_v20  ;;  %v5445_v21 = vadd.f32 %v5444_v43, %v5443_v58  ;;  %v8403_v20 = vpop.permute.xlu1 %3711 }
 0x2f1   : > { %v5552_v50 = vpop.f32.mrb[72].mxu0 }
 0x2f2   : > { %v5553_v5 = vpop.f32.mrb[73].mxu0  ;;  %v2906_v48 = vadd.f32 %v5445_v21, %v7711_v24 }
 0x2f3   : > { %v5554_v3 = vadd.f32 %v5553_v5, %v5552_v50  ;;  %v5555_v23 = vpop.f32.mrb[74].mxu0 }
 0x2f4   : > { %v5556_v49 = vpop.f32.mrb[75].mxu0  ;;  %v8413_v24 = vpop.permute.xlu1 %3713 }
 0x2f5   : > { %v8397_v15 = vadd.f32 %v5554_v3, %v2903_v31  ;;  %v5557_v37 = vadd.f32 %v5556_v49, %v5555_v23  ;;  %v5855_v49 = vld [vmem:[%s5997_s16 + $0xa8] sm:$0xff] }
 0x2f7   : > { %9720 = vst [vmem:[#allocation57_spill] sm:$0xff] %v8397_v15  ;;  %v8399_v28 = vadd.f32 %v5557_v37, %v2906_v48  ;;  %3747 = vrot.lane.b32.xlu1 %v8397_v15, %s5908_s19  ;;  %v8409_v56 = vadd.f32 %v5854_v22, %v8397_v15 }
 0x2f8   : > { %v8421_v50 = vpop.permute.xlu1 %3262 }
 0x2f9   : > { %3749 = vrot.lane.b32.xlu0 %v8399_v28, %s5908_s19  ;;  %9721 = vst [vmem:[#allocation58_spill] sm:$0xff] %v8409_v56  ;;  %v8417_v23 = vadd.f32 %v5855_v49, %v8399_v28 }
 0x2fb   : > { %9722 = vst [vmem:[#allocation59_spill] sm:$0xff] %v8417_v23 }
 0x2fd   : > { %3298 = vrot.lane.b32.xlu0 %v8409_v56, %s5908_s19 }
 0x300   : > { %v5446_v37 = vpop.f32.mrb[76].mxu1 }
 0x301   : > { %v5447_v58 = vpop.f32.mrb[77].mxu1  ;;  %3300 = vrot.lane.b32.xlu0 %v8417_v23, %s5908_s19 }
 0x302   : > { %v5448_v43 = vadd.f32 %v5447_v58, %v5446_v37  ;;  %v5449_v31 = vpop.f32.mrb[78].mxu1  ;;  %v8427_v37 = vpop.permute.xlu1 %3264 }
 0x303   : > { %v5450_v21 = vpop.f32.mrb[79].mxu1 }
 0x304   : > { %v2911_v5 = vadd.f32 %v5448_v43, %v7732_v8  ;;  %v5451_v48 = vadd.f32 %v5450_v21, %v5449_v31  ;;  %v5856_v8 = vld [vmem:[%s5997_s16 + $0xb0] sm:$0xff] }
 0x305   : > { %v5558_v3 = vpop.f32.mrb[76].mxu0 }
 0x306   : > { %v5559_v22 = vpop.f32.mrb[77].mxu0  ;;  %v2914_v49 = vadd.f32 %v5451_v48, %v7747_v1  ;;  %v8439_v1 = vpop.permute.xlu1 %3715 }
 0x307   : > { %v5560_v56 = vadd.f32 %v5559_v22, %v5558_v3  ;;  %v5561_v6 = vpop.f32.mrb[78].mxu0 }
 0x308   : > { %v5562_v47 = vpop.f32.mrb[79].mxu0 }
 0x309   : > { %v8425_v53 = vadd.f32 %v5560_v56, %v2911_v5  ;;  %v5563_v23 = vadd.f32 %v5562_v47, %v5561_v6  ;;  %v5857_v47 = vld [vmem:[%s5997_s16 + $0xb8] sm:$0xff] }
 0x30a   : > { %v8449_v31 = vpop.permute.xlu1 %3717 }
 0x30b   : > { %9723 = vst [vmem:[#allocation60_spill] sm:$0xff] %v8425_v53  ;;  %v8429_v58 = vadd.f32 %v5563_v23, %v2914_v49  ;;  %3751 = vrot.lane.b32.xlu1 %v8425_v53, %s5908_s19  ;;  %v8437_v43 = vadd.f32 %v5856_v8, %v8425_v53 }
 0x30d   : > { %3753 = vrot.lane.b32.xlu0 %v8429_v58, %s5908_s19  ;;  %9724 = vst [vmem:[#allocation61_spill] sm:$0xff] %v8437_v43  ;;  %v8445_v6 = vadd.f32 %v5857_v47, %v8429_v58 }
 0x30e   : > { %v8453_v0 = vpop.permute.xlu1 %3266 }
 0x30f   : > { %9725 = vst [vmem:[#allocation62_spill] sm:$0xff] %v8445_v6 }
 0x311   : > { %3302 = vrot.lane.b32.xlu0 %v8437_v43, %s5908_s19 }
 0x314   : > { %v5452_v56 = vpop.f32.mrb[80].mxu1 }
 0x315   : > { %v5453_v23 = vpop.f32.mrb[81].mxu1  ;;  %3304 = vrot.lane.b32.xlu0 %v8445_v6, %s5908_s19 }
 0x316   : > { %v5454_v21 = vadd.f32 %v5453_v23, %v5452_v56  ;;  %v5455_v5 = vpop.f32.mrb[82].mxu1  ;;  %v5858_v23 = vld [vmem:[%s5997_s16 + $0xc0] sm:$0xff] }
 0x317   : > { %v5456_v48 = vpop.f32.mrb[83].mxu1 }
 0x318   : > { %v2919_v3 = vadd.f32 %v5454_v21, %v7766_v26  ;;  %v5457_v22 = vadd.f32 %v5456_v48, %v5455_v5  ;;  %v8461_v26 = vpop.permute.xlu0 %3258 }
 0x319   : > { %v5564_v49 = vpop.f32.mrb[80].mxu0 }
 0x31a   : > { %v5565_v8 = vpop.f32.mrb[81].mxu0  ;;  %v2922_v43 = vadd.f32 %v5457_v22, %v7788_v14  ;;  %v8465_v14 = vpop.permute.xlu1 %3268 }
 0x31b   : > { %v5566_v47 = vadd.f32 %v5565_v8, %v5564_v49  ;;  %v5567_v55 = vpop.f32.mrb[82].mxu0 }
 0x31c   : > { %v5568_v18 = vpop.f32.mrb[83].mxu0  ;;  %v8471_v5 = vpop.permute.xlu0 %3723 }
 0x31d   : > { %v8455_v6 = vadd.f32 %v5566_v47, %v2919_v3  ;;  %v5569_v33 = vadd.f32 %v5568_v18, %v5567_v55 }
 0x31e   : > { %v8479_v55 = vpop.permute.xlu1 %3719 }
 0x31f   : > { %v8457_v56 = vadd.f32 %v5569_v33, %v2922_v43  ;;  %3755 = vrot.lane.b32.xlu1 %v8455_v6, %s5908_s19  ;;  %v8469_v21 = vadd.f32 %v5858_v23, %v8455_v6  ;;  %v5859_v33 = vld [vmem:[%s5997_s16 + $0xc8] sm:$0xff] }
 0x320   : > { %v8481_v48 = vpop.permute.xlu0 %3280 }
 0x321   : > { %3757 = vrot.lane.b32.xlu0 %v8457_v56, %s5908_s19  ;;  %9726 = vst [vmem:[#allocation63_spill] sm:$0xff] %v8469_v21  ;;  %v8477_v18 = vadd.f32 %v5859_v33, %v8457_v56 }
 0x322   : > { %v8489_v41 = vpop.permute.xlu1 %3721 }
 0x323   : > { %9727 = vst [vmem:[#allocation64_spill] sm:$0xff] %v8477_v18 }
 0x325   : > { %3306 = vrot.lane.b32.xlu0 %v8469_v21, %s5908_s19  ;;  %v8486_v21 = vpop.permute.xlu0 %3282 }
 0x328   : > { %v5458_v43 = vpop.f32.mrb[84].mxu1 }
 0x329   : > { %v5459_v3 = vpop.f32.mrb[85].mxu1  ;;  %3308 = vrot.lane.b32.xlu0 %v8477_v18, %s5908_s19 }
 0x32a   : > { %v5460_v22 = vadd.f32 %v5459_v3, %v5458_v43  ;;  %v5461_v49 = vpop.f32.mrb[86].mxu1  ;;  %v8493_v3 = vpop.permute.xlu0 %3284 }
 0x32b   : > { %v5462_v8 = vpop.f32.mrb[87].mxu1 }
 0x32c   : > { %v2927_v47 = vadd.f32 %v5460_v22, %v7805_v35  ;;  %v5463_v23 = vadd.f32 %v5462_v8, %v5461_v49  ;;  %v8499_v22 = vpop.permute.xlu1 %3270 }
 0x32d   : > { %v5570_v33 = vpop.f32.mrb[84].mxu0 }
 0x32e   : > { %v5571_v19 = vpop.f32.mrb[85].mxu0  ;;  %v2930_v52 = vadd.f32 %v5463_v23, %v7823_v63  ;;  %v5860_v63 = vld [vmem:[%s5997_s16 + $0xd0] sm:$0xff] }
 0x32f   : > { %v5572_v29 = vadd.f32 %v5571_v19, %v5570_v33  ;;  %v5573_v44 = vpop.f32.mrb[86].mxu0  ;;  %v8507_v49 = vpop.permute.xlu0 %3737 }
 0x330   : > { %v5574_v46 = vpop.f32.mrb[87].mxu0 }
 0x331   : > { %v8491_v18 = vadd.f32 %v5572_v29, %v2927_v47  ;;  %v5575_v43 = vadd.f32 %v5574_v46, %v5573_v44  ;;  %v8511_v46 = vpop.permute.xlu1 %3272  ;;  %v5861_v44 = vld [vmem:[%s5997_s16 + $0xd8] sm:$0xff] }
 0x333   : > { %9728 = vst [vmem:[#allocation65_spill] sm:$0xff] %v8491_v18  ;;  %v8495_v35 = vadd.f32 %v5575_v43, %v2930_v52  ;;  %3759 = vrot.lane.b32.xlu1 %v8491_v18, %s5908_s19  ;;  %v8505_v19 = vadd.f32 %v5860_v63, %v8491_v18  ;;  %v8519_v33 = vpop.permute.xlu0 %3286 }
 0x334   : > { %9732 = vst [vmem:[#allocation69_spill] sm:$0xff] %v8519_v33 }
 0x335   : > { %9729 = vst [vmem:[#allocation66_spill] sm:$0xff] %v8495_v35  ;;  %3761 = vrot.lane.b32.xlu0 %v8495_v35, %s5908_s19  ;;  %9730 = vst [vmem:[#allocation67_spill] sm:$0xff] %v8505_v19  ;;  %v8515_v29 = vadd.f32 %v5861_v44, %v8495_v35 }
 0x337   : > { %9731 = vst [vmem:[#allocation68_spill] sm:$0xff] %v8515_v29  ;;  %v8525_v11 = vpop.permute.xlu0 %3288 }
 0x338   : > { %9733 = vst [vmem:[#allocation70_spill] sm:$0xff] %v8525_v11 }
 0x339   : > { %3310 = vrot.lane.b32.xlu0 %v8505_v19, %s5908_s19  ;;  %v8522_v19 = vpop.permute.xlu1 %3725 }
 0x33c   : > { %v5464_v52 = vpop.f32.mrb[88].mxu1 }
 0x33d   : > { %v5465_v8 = vpop.f32.mrb[89].mxu1  ;;  %3312 = vrot.lane.b32.xlu0 %v8515_v29, %s5908_s19  ;;  %v8529_v29 = vpop.permute.xlu1 %3274 }
 0x33e   : > { %v5466_v47 = vadd.f32 %v5465_v8, %v5464_v52  ;;  %v5467_v23 = vpop.f32.mrb[90].mxu1 }
 0x33f   : > { %v5468_v43 = vpop.f32.mrb[91].mxu1 }
 0x340   : > { %v2935_v63 = vadd.f32 %v5466_v47, %v7838_v38  ;;  %v5469_v42 = vadd.f32 %v5468_v43, %v5467_v23  ;;  %v3803_v47 = vsub.f32 %v7923_v2, %v8377_v12  ;;  %v3805_v43 = vsub.f32 %v8000_v39, %v8403_v20 }
 0x341   : > { %v5576_v53 = vpop.f32.mrb[88].mxu0  ;;  %v3194_v20 = vadd.f32 1.0, %v7923_v2 }
 0x342   : > { %v5577_v15 = vpop.f32.mrb[89].mxu0  ;;  %v2938_v44 = vadd.f32 %v5469_v42, %v7857_v59  ;;  %v8539_v59 = vstv %s5608_s8 }
 0x343   : > { %v5578_v51 = vadd.f32 %v5577_v15, %v5576_v53  ;;  %v5579_v35 = vpop.f32.mrb[90].mxu0  ;;  %v8541_v42 = vpop.permute.xlu0 %3741  ;;  %v3835_v53 = vadd.f32 %v3803_v47, %v8539_v59  ;;  %v5862_v15 = vld [vmem:[%s5997_s16 + $0xe0] sm:$0xff] }
 0x344   : > { %v5580_v18 = vpop.f32.mrb[91].mxu0 }
 0x345   : > { %v8527_v52 = vadd.f32 %v5578_v51, %v2935_v63  ;;  %v5581_v8 = vadd.f32 %v5580_v18, %v5579_v35  ;;  %v3195_v18 = vadd.f32 1.0, %v7929_v7  ;;  %v8549_v35 = vpop.permute.xlu1 %3276  ;;  %v3899_v23 = vsel %vm3867_vm11, %v3835_v53, 1.0  ;;  %v5863_v63 = vld [vmem:[%s5997_s16 + $0xe8] sm:$0xff] }
 0x346   : > { %5706 = vrcp.f32 %v3899_v23  ;;  %v3804_v23 = vsub.f32 %v7929_v7, %v8389_v10 }
 0x347   : > { %9734 = vst [vmem:[#allocation71_spill] sm:$0xff] %v8527_v52  ;;  %v8531_v38 = vadd.f32 %v5581_v8, %v2938_v44  ;;  %3763 = vrot.lane.b32.xlu1 %v8527_v52, %s5908_s19  ;;  %v8546_v51 = vadd.f32 %v5862_v15, %v8527_v52  ;;  %v3355_v12 = vsub.f32 %v3195_v18, %v8394_v34  ;;  %v8563_v47 = vpop.permute.xlu0 %3290 }
 0x348   : > { %9738 = vst [vmem:[#allocation75_spill] sm:$0xff] %v8563_v47  ;;  %v3196_v47 = vadd.f32 1.0, %v8000_v39 }
 0x349   : > { %9735 = vst [vmem:[#allocation72_spill] sm:$0xff] %v8531_v38  ;;  %3765 = vrot.lane.b32.xlu0 %v8531_v38, %s5908_s19  ;;  %9736 = vst [vmem:[#allocation73_spill] sm:$0xff] %v8546_v51  ;;  %v8561_v44 = vadd.f32 %v5863_v63, %v8531_v38  ;;  %v3388_v34 = vadd.f32 %v8539_v59, %v3355_v12  ;;  %v8568_v53 = vpop.permute.xlu1 %3727  ;;  %v3837_v63 = vadd.f32 %v3805_v43, %v8539_v59 }
 0x34b   : > { %9737 = vst [vmem:[#allocation74_spill] sm:$0xff] %v8561_v44  ;;  %5708 = vrcp.f32 %v3388_v34  ;;  %v8580_v43 = vpop.permute.xlu0 %3292  ;;  %v3836_v34 = vadd.f32 %v3804_v23, %v8539_v59 }
 0x34d   : > { %3314 = vrot.lane.b32.xlu0 %v8546_v51, %s5908_s19 }
 0x350   : > { %v5470_v8 = vpop.f32.mrb[92].mxu1 }
 0x351   : > { %v5471_v15 = vpop.f32.mrb[93].mxu1  ;;  %3316 = vrot.lane.b32.xlu0 %v8561_v44, %s5908_s19  ;;  %v3354_v44 = vsub.f32 %v3194_v20, %v8461_v26  ;;  %v3197_v26 = vadd.f32 1.0, %v8006_v32  ;;  %v8585_v20 = vpop.permute.xlu1 %3729 }
 0x352   : > { %v5472_v51 = vadd.f32 %v5471_v15, %v5470_v8  ;;  %v5473_v52 = vpop.f32.mrb[94].mxu1  ;;  %v3356_v15 = vsub.f32 %v3196_v47, %v8421_v50  ;;  %v3806_v50 = vsub.f32 %v8006_v32, %v8413_v24  ;;  %v3900_v24 = vsel %vm3868_vm6, %v3836_v34, 1.0 }
 0x353   : > { %v5474_v18 = vpop.f32.mrb[95].mxu1  ;;  %v3357_v47 = vsub.f32 %v3197_v26, %v8427_v37 }
 0x354   : > { %v2943_v38 = vadd.f32 %v5472_v51, %v7876_v27  ;;  %v5475_v11 = vadd.f32 %v5474_v18, %v5473_v52  ;;  %v3901_v51 = vsel %vm3869_vm5, %v3837_v63, 1.0  ;;  %v3838_v37 = vadd.f32 %v3806_v50, %v8539_v59 }
 0x355   : > { %v5582_v33 = vpop.f32.mrb[92].mxu0  ;;  %5710 = vrcp.f32 %v3901_v51  ;;  %v3199_v50 = vadd.f32 1.0, %v8092_v13 }
 0x356   : > { %v5583_v8 = vpop.f32.mrb[93].mxu0  ;;  %v2946_v12 = vadd.f32 %v5475_v11, %v7893_v57  ;;  %v3387_v11 = vadd.f32 %v8539_v59, %v3354_v44  ;;  %v5707_v44 = vpop.eup %5706 }
 0x357   : > { %v5584_v27 = vadd.f32 %v5583_v8, %v5582_v33  ;;  %v5585_v52 = vpop.f32.mrb[94].mxu0  ;;  %v3389_v33 = vadd.f32 %v8539_v59, %v3356_v15  ;;  %v8602_v23 = vpop.permute.xlu0 %3745  ;;  %v3390_v8 = vadd.f32 %v8539_v59, %v3357_v47  ;;  %v5865_v47 = vld [vmem:[%s5997_s16 + $0xf8] sm:$0xff] }
 0x358   : > { %v5586_v18 = vpop.f32.mrb[95].mxu0  ;;  %5712 = vrcp.f32 %v3387_v11  ;;  %v5709_v51 = vpop.eup %5708 }
 0x359   : > { %v8587_v10 = vadd.f32 %v5584_v27, %v2943_v38  ;;  %v5587_v57 = vadd.f32 %v5586_v18, %v5585_v52  ;;  %v3807_v38 = vsub.f32 %v8086_v60, %v8439_v1  ;;  %5714 = vrcp.f32 %v3389_v33  ;;  %v5864_v27 = vld [vmem:[%s5997_s16 + $0xf0] sm:$0xff] }
 0x35a   : > { %v3808_v1 = vsub.f32 %v8092_v13, %v8449_v31  ;;  %v3198_v18 = vadd.f32 1.0, %v8086_v60  ;;  %5716 = vrcp.f32 %v3900_v24  ;;  %v3902_v31 = vsel %vm3870_vm8, %v3838_v37, 1.0 }
 0x35b   : > { %v8595_v63 = vadd.f32 %v5587_v57, %v2946_v12  ;;  %3767 = vrot.lane.b32.xlu1 %v8587_v10, %s5908_s19  ;;  %v8612_v12 = vpop.permute.xlu1 %3278  ;;  %v3839_v15 = vadd.f32 %v3807_v38, %v8539_v59  ;;  %v8618_v52 = vadd.f32 %v5864_v27, %v8587_v10  ;;  %5718 = vrcp.f32 %v3390_v8  ;;  %v8629_v11 = vpop.permute.xlu0 %3294 }
 0x35c   : > { %v3840_v26 = vadd.f32 %v3808_v1, %v8539_v59  ;;  %v3358_v57 = vsub.f32 %v3198_v18, %v8453_v0  ;;  %v3810_v33 = vsub.f32 %v8178_v4, %v8489_v41  ;;  %5720 = vrcp.f32 %v3902_v31 }
 0x35d   : > { %3769 = vrot.lane.b32.xlu0 %v8595_v63, %s5908_s19  ;;  %9739 = vst [vmem:[#allocation76_spill] sm:$0xff] %v8618_v52  ;;  %v3903_v34 = vsel %vm3871_vm12, %v3839_v15, 1.0  ;;  %v8639_v38 = vadd.f32 %v5865_v47, %v8595_v63  ;;  %v3359_v0 = vsub.f32 %v3199_v50, %v8465_v14  ;;  %v3812_v37 = vsub.f32 %v8260_v25, %v8522_v19 }
 0x35e   : > { %5722 = vrcp.f32 %v3903_v34  ;;  %v3904_v41 = vsel %vm3872_vm10, %v3840_v26, 1.0  ;;  %v3391_v8 = vadd.f32 %v8539_v59, %v3358_v57  ;;  %v3809_v15 = vsub.f32 %v8172_v30, %v8479_v55 }
 0x35f   : > { %4027 = vrot.lane.b32.xlu1 %v5707_v44, %s5909_s9  ;;  %9740 = vst [vmem:[#allocation77_spill] sm:$0xff] %v8639_v38  ;;  %v5711_v44 = vpop.eup %5710  ;;  %v8641_v24 = vpop.permute.xlu1 %3731  ;;  %v3842_v14 = vadd.f32 %v3810_v33, %v8539_v59  ;;  %5724 = vrcp.f32 %v3904_v41  ;;  %v3392_v19 = vadd.f32 %v8539_v59, %v3359_v0  ;;  %v3844_v18 = vadd.f32 %v3812_v37, %v8539_v59 }
 0x360   : > { %v3814_v31 = vsub.f32 %v8283_v62, %v8585_v20  ;;  %5726 = vrcp.f32 %v3391_v8  ;;  %v3841_v57 = vadd.f32 %v3809_v15, %v8539_v59  ;;  %v3200_v33 = vadd.f32 1.0, %v8172_v30 }
 0x361   : > { %3318 = vrot.lane.b32.xlu0 %v8618_v52, %s5908_s19  ;;  %v3906_v34 = vsel %vm3874_vm4, %v3842_v14, 1.0  ;;  %5728 = vrcp.f32 %v3392_v19  ;;  %v3908_v20 = vsel %vm3876_vm1, %v3844_v18, 1.0  ;;  %v3201_v15 = vadd.f32 1.0, %v8178_v4 }
 0x362   : > { %v5713_v1 = vpop.eup %5712  ;;  %v3846_v47 = vadd.f32 %v3814_v31, %v8539_v59  ;;  %5730 = vrcp.f32 %v3906_v34  ;;  %v3360_v0 = vsub.f32 %v3200_v33, %v8499_v22  ;;  %v3905_v8 = vsel %vm3873_vm9, %v3841_v57, 1.0 }
 0x363   : > { %3517 = vrot.lane.b32.xlu1 %v5709_v51, %s5909_s9  ;;  %v5715_v27 = vpop.eup %5714  ;;  %v8656_v51 = vpop.permute.xlu0 %3296  ;;  %5732 = vrcp.f32 %v3908_v20  ;;  %v3361_v19 = vsub.f32 %v3201_v15, %v8511_v46  ;;  %v3818_v31 = vsub.f32 %v8327_v54, %v8507_v49  ;;  %v3811_v34 = vsub.f32 %v8258_v16, %v8471_v5 }
 0x364   : > { %v3734_v26 = vpop.permute.xlu1 %3733  ;;  %v5717_v55 = vpop.eup %5716  ;;  %v3910_v14 = vsel %vm3878_vm15, %v3846_v47, 1.0  ;;  %5734 = vrcp.f32 %v3905_v8  ;;  %v3202_v20 = vadd.f32 1.0, %v8258_v16  ;;  %v3820_v47 = vsub.f32 %v8349_v36, %v8541_v42 }
 0x365   : > { %3320 = vrot.lane.b32.xlu0 %v8639_v38, %s5908_s19  ;;  %v5719_v50 = vpop.eup %5718  ;;  %5736 = vrcp.f32 %v3910_v14  ;;  %v3850_v33 = vadd.f32 %v3818_v31, %v8539_v59  ;;  %v3843_v5 = vadd.f32 %v3811_v34, %v8539_v59  ;;  %v3203_v15 = vadd.f32 1.0, %v8260_v25 }
 0x366   : > { %v5721_v41 = vpop.eup %5720  ;;  %v3852_v14 = vadd.f32 %v3820_v47, %v8539_v59 }
 0x367   : > { %4031 = vrot.lane.b32.xlu1 %v5711_v44, %s5909_s9  ;;  %v3816_v44 = vsub.f32 %v8305_v45, %v3734_v26  ;;  %v3914_v42 = vsel %vm9575_vm7, %v3850_v33, 1.0  ;;  %vm9576_vm7 = vcmp.gt.f32.partialorder %v8457_v56, 0.0 }
 0x368   : > { %v8693_v26 = vpop.permute.xlu1 %3735 }
 0x369   : > { %3515 = vrot.lane.b32.xlu0 %v5713_v1, %s5909_s9  ;;  %v5723_v1 = vpop.eup %5722  ;;  %v3848_v22 = vadd.f32 %v3816_v44, %v8539_v59 }
 0x36a   : > { %v5725_v18 = vpop.eup %5724 }
 0x36b   : > { %3519 = vrot.lane.b32.xlu1 %v5715_v27, %s5909_s9  ;;  %v8677_v37 = vpop.permute.xlu0 %3749  ;;  %v3393_v27 = vadd.f32 %v8539_v59, %v3360_v0  ;;  %v3912_v46 = vsel %vm9579_vm2, %v3848_v22, 1.0  ;;  %v3362_v0 = vsub.f32 %v3202_v20, %v8529_v29  ;;  %v3822_v29 = vsub.f32 %v8371_v40, %v8602_v23 }
 0x36c   : > { %v3916_v23 = vsel %vm9572_vm13, %v3852_v14, 1.0  ;;  %vm9573_vm13 = vcmp.gt.f32.partialorder %v8429_v58, 0.0 }
 0x36d   : > { %4029 = vrot.lane.b32.xlu0 %v5717_v55, %s5909_s9  ;;  %v5727_v55 = vpop.eup %5726  ;;  %5738 = vrcp.f32 %v3393_v27  ;;  %v3907_v27 = vsel %vm3875_vm14, %v3843_v5, 1.0  ;;  %v3854_v34 = vadd.f32 %v3822_v29, %v8539_v59 }
 0x36e   : > { %v5729_v49 = vpop.eup %5728  ;;  %5740 = vrcp.f32 %v3912_v46  ;;  %v3824_v46 = vsub.f32 %v8399_v28, %v8677_v37  ;;  %v3204_v37 = vadd.f32 1.0, %v8281_v9 }
 0x36f   : > { %3521 = vrot.lane.b32.xlu1 %v5719_v50, %s5909_s9  ;;  %v8696_v57 = vpop.permute.xlu0 %3298  ;;  %v3394_v50 = vadd.f32 %v8539_v59, %v3361_v19  ;;  %v5731_v44 = vpop.eup %5730  ;;  %v3395_v19 = vadd.f32 %v8539_v59, %v3362_v0  ;;  %v3918_v47 = vsel %vm9571_vm3, %v3854_v34, 1.0  ;;  %vm9574_vm3 = vcmp.gt.f32.partialorder %v8399_v28, 0.0 }
 0x370   : > { %v5733_v8 = vpop.eup %5732 }
 0x371   : > { %4033 = vrot.lane.b32.xlu0 %v5721_v41, %s5909_s9  ;;  %v8712_v41 = vpop.permute.xlu1 %3739  ;;  %5742 = vrcp.f32 %v3394_v50  ;;  %v5735_v22 = vpop.eup %5734 }
 0x372   : > { %v5737_v31 = vpop.eup %5736  ;;  %5744 = vrcp.f32 %v3914_v42 }
 0x373   : > { %4035 = vrot.lane.b32.xlu1 %v5723_v1, %s5909_s9  ;;  %v8715_v1 = vpop.permute.xlu0 %3300  ;;  %5746 = vrcp.f32 %v3907_v27  ;;  %v3205_v27 = vadd.f32 1.0, %v8283_v62 }
 0x374   : > { %5748 = vrcp.f32 %v3395_v19 }
 0x375   : > { %4037 = vrot.lane.b32.xlu0 %v5725_v18, %s5909_s9  ;;  %v3363_v18 = vsub.f32 %v3203_v15, %v8549_v35  ;;  %v8739_v35 = vpop.permute.xlu1 %3743  ;;  %5750 = vrcp.f32 %v3916_v23 }
 0x377   : > { %3523 = vrot.lane.b32.xlu1 %v5727_v55, %s5909_s9  ;;  %v3813_v55 = vsub.f32 %v8281_v9, %v8568_v53  ;;  %v5739_v50 = vpop.eup %5738  ;;  %v3396_v33 = vadd.f32 %v8539_v59, %v3363_v18 }
 0x378   : > { %v5741_v53 = vpop.eup %5740 }
 0x379   : > { %4041 = vrot.lane.b32.xlu0 %v5731_v44, %s5909_s9  ;;  %v3845_v20 = vadd.f32 %v3813_v55, %v8539_v59  ;;  %v3856_v44 = vadd.f32 %v3824_v46, %v8539_v59  ;;  %5752 = vrcp.f32 %v3396_v33  ;;  %v8753_v42 = vpop.permute.xlu1 %3747  ;;  %v3365_v55 = vsub.f32 %v3205_v27, %v8481_v48 }
 0x37a   : > { %5754 = vrcp.f32 %v3918_v47  ;;  %v3206_v47 = vadd.f32 1.0, %v8303_v17 }
 0x37b   : > { %3525 = vrot.lane.b32.xlu1 %v5729_v49, %s5909_s9  ;;  %v5743_v0 = vpop.eup %5742  ;;  %v3909_v15 = vsel %vm3877_vm0, %v3845_v20, 1.0  ;;  %v3920_v14 = vsel %vm9574_vm3, %v3856_v44, 1.0  ;;  %v3398_v48 = vadd.f32 %v8539_v59, %v3365_v55  ;;  %vm9577_vm3 = vcmp.gt.f32.partialorder %v8455_v6, 0.0 }
 0x37c   : > { %5756 = vrcp.f32 %v3909_v15 }
 0x37d   : > { %4045 = vrot.lane.b32.xlu0 %v5733_v8, %s5909_s9  ;;  %v3364_v8 = vsub.f32 %v3204_v37, %v8612_v12  ;;  %v5745_v12 = vpop.eup %5744  ;;  %5758 = vrcp.f32 %v3920_v14  ;;  %v8773_v34 = vpop.permute.xlu1 %3751 }
 0x37e   : > { %v5747_v18 = vpop.eup %5746 }
 0x37f   : > { %4039 = vrot.lane.b32.xlu1 %v5735_v22, %s5909_s9  ;;  %v3754_v49 = vpop.permute.xlu0 %3753  ;;  %v3397_v19 = vadd.f32 %v8539_v59, %v3364_v8  ;;  %v3366_v8 = vsub.f32 %v3206_v47, %v8486_v21 }
 0x380   : > { %v3826_v5 = vsub.f32 %v8429_v58, %v3754_v49 }
 0x381   : > { %4049 = vrot.lane.b32.xlu0 %v5737_v31, %s5909_s9  ;;  %v5749_v31 = vpop.eup %5748  ;;  %5760 = vrcp.f32 %v3397_v19 }
 0x382   : > { %v3858_v29 = vadd.f32 %v3826_v5, %v8539_v59  ;;  %v5751_v46 = vpop.eup %5750 }
 0x383   : > { %3527 = vrot.lane.b32.xlu1 %v5739_v50, %s5909_s9  ;;  %v8763_v22 = vpop.permute.xlu0 %3302  ;;  %v3815_v50 = vsub.f32 %v8303_v17, %v8641_v24  ;;  %v5753_v33 = vpop.eup %5752 }
 0x384   : > { %v3922_v23 = vsel %vm9573_vm13, %v3858_v29, 1.0  ;;  %vm9584_vm13 = vcmp.gt.f32.partialorder %v8303_v17, 0.0 }
 0x385   : > { %4053 = vrot.lane.b32.xlu0 %v5741_v53, %s5909_s9  ;;  %5762 = vrcp.f32 %v3922_v23  ;;  %v5755_v53 = vpop.eup %5754  ;;  %v3847_v20 = vadd.f32 %v3815_v50, %v8539_v59 }
 0x386   : > { %v5757_v44 = vpop.eup %5756  ;;  %5764 = vrcp.f32 %v3398_v48 }
 0x387   : > { %3529 = vrot.lane.b32.xlu1 %v5743_v0, %s5909_s9  ;;  %v8778_v49 = vpop.permute.xlu0 %3304  ;;  %v5759_v0 = vpop.eup %5758  ;;  %v3911_v29 = vsel %vm9584_vm13, %v3847_v20, 1.0  ;;  %v9741_v20 = vld [vmem:[#allocation69_spill] sm:$0xff] }
 0x389   : > { %4057 = vrot.lane.b32.xlu0 %v5745_v12, %s5909_s9  ;;  %v3207_v12 = vadd.f32 1.0, %v8305_v45 }
 0x38b   : > { %4043 = vrot.lane.b32.xlu1 %v5747_v18, %s5909_s9  ;;  %v5761_v19 = vpop.eup %5760  ;;  %v3367_v55 = vsub.f32 %v3207_v12, %v8493_v3 }
 0x38d   : > { %4061 = vrot.lane.b32.xlu0 %v5751_v46, %s5909_s9  ;;  %v3817_v46 = vsub.f32 %v8325_v61, %v8693_v26 }
 0x38f   : > { %3531 = vrot.lane.b32.xlu1 %v5749_v31, %s5909_s9  ;;  %v5763_v18 = vpop.eup %5762  ;;  %v3399_v31 = vadd.f32 %v8539_v59, %v3366_v8  ;;  %v3849_v3 = vadd.f32 %v3817_v46, %v8539_v59  ;;  %v9745_v46 = vld [vmem:[#allocation66_spill] sm:$0xff] }
 0x390   : > { %v5765_v48 = vpop.eup %5764 }
 0x391   : > { %v3756_v37 = vpop.permute.xlu1 %3755  ;;  %4065 = vrot.lane.b32.xlu0 %v5755_v53, %s5909_s9  ;;  %v3208_v53 = vadd.f32 1.0, %v8325_v61 }
 0x392   : > { %v3827_v24 = vsub.f32 %v8455_v6, %v3756_v37 }
 0x393   : > { %3533 = vrot.lane.b32.xlu1 %v5753_v33, %s5909_s9  ;;  %v3758_v5 = vpop.permute.xlu0 %3757  ;;  %v3400_v33 = vadd.f32 %v8539_v59, %v3367_v55  ;;  %v3368_v26 = vsub.f32 %v3208_v53, %v9741_v20 }
 0x394   : > { %v3859_v15 = vadd.f32 %v3827_v24, %v8539_v59  ;;  %v3828_v14 = vsub.f32 %v8457_v56, %v3758_v5  ;;  %v3209_v5 = vadd.f32 1.0, %v8327_v54 }
 0x395   : > { %4069 = vrot.lane.b32.xlu0 %v5759_v0, %s5909_s9  ;;  %v3401_v8 = vadd.f32 %v8539_v59, %v3368_v26  ;;  %v9746_v26 = vld [vmem:[#allocation75_spill] sm:$0xff] }
 0x396   : > { %v3923_v27 = vsel %vm9577_vm3, %v3859_v15, 1.0  ;;  %v3860_v21 = vadd.f32 %v3828_v14, %v8539_v59  ;;  %v9742_v15 = vld [vmem:[#allocation70_spill] sm:$0xff] }
 0x397   : > { %4047 = vrot.lane.b32.xlu1 %v5757_v44, %s5909_s9  ;;  %5766 = vrcp.f32 %v3923_v27  ;;  %v8809_v50 = vpop.permute.xlu0 %3306  ;;  %v3369_v14 = vsub.f32 %v3209_v5, %v9742_v15 }
 0x398   : > { %5768 = vrcp.f32 %v3911_v29  ;;  %v3924_v23 = vsel %vm9576_vm7, %v3860_v21, 1.0  ;;  %vm9578_vm7 = vcmp.gt.f32.partialorder %v8325_v61, 0.0  ;;  %v9743_v29 = vld [vmem:[#allocation51_spill] sm:$0xff] }
 0x399   : > { %5770 = vrcp.f32 %v3924_v23  ;;  %4073 = vrot.lane.b32.xlu0 %v5763_v18, %s5909_s9  ;;  %v3913_v47 = vsel %vm9578_vm7, %v3849_v3, 1.0  ;;  %v3819_v12 = vsub.f32 %v9743_v29, %v8712_v41  ;;  %v3402_v55 = vadd.f32 %v8539_v59, %v3369_v14 }
 0x39a   : > { %5772 = vrcp.f32 %v3399_v31  ;;  %v3210_v3 = vadd.f32 1.0, %v9743_v29  ;;  %vm9580_vm7 = vcmp.gt.f32.partialorder %v9745_v46, 0.0  ;;  %vm9583_vm2 = vcmp.gt.f32.partialorder %v9743_v29, 0.0 }
 0x39b   : > { %3535 = vrot.lane.b32.xlu1 %v5761_v19, %s5909_s9  ;;  %5774 = vrcp.f32 %v3400_v33  ;;  %v8819_v24 = vpop.permute.xlu0 %3308  ;;  %v9744_v19 = vld [vmem:[#allocation65_spill] sm:$0xff] }
 0x39c   : > { %5776 = vrcp.f32 %v3913_v47  ;;  %vm9581_vm3 = vcmp.gt.f32.partialorder %v9744_v19, 0.0 }
 0x39d   : > { %5778 = vrcp.f32 %v3401_v8 }
 0x39f   : > { %3537 = vrot.lane.b32.xlu1 %v5765_v48, %s5909_s9  ;;  %v3851_v48 = vadd.f32 %v3819_v12, %v8539_v59  ;;  %v9747_v12 = vld [vmem:[#allocation54_spill] sm:$0xff] }
 0x3a1   : > { %v5767_v37 = vpop.eup %5766 }
 0x3a2   : > { %v5769_v44 = vpop.eup %5768  ;;  %4075 = vrot.lane.b32.xlu0 %v5767_v37, %s5909_s9  ;;  %v3370_v37 = vsub.f32 %v3210_v3, %v9746_v26 }
 0x3a3   : > { %v5771_v0 = vpop.eup %5770  ;;  %4051 = vrot.lane.b32.xlu1 %v5769_v44, %s5909_s9  ;;  %v3915_v44 = vsel %vm9583_vm2, %v3851_v48, 1.0 }
 0x3a4   : > { %v5773_v21 = vpop.eup %5772  ;;  %v3403_v15 = vadd.f32 %v8539_v59, %v3370_v37  ;;  %v9750_v37 = vld [vmem:[#allocation71_spill] sm:$0xff] }
 0x3a5   : > { %v3760_v27 = vpop.permute.xlu1 %3759  ;;  %v5775_v41 = vpop.eup %5774 }
 0x3a6   : > { %v3829_v18 = vsub.f32 %v9744_v19, %v3760_v27  ;;  %4077 = vrot.lane.b32.xlu0 %v5771_v0, %s5909_s9  ;;  %v5777_v5 = vpop.eup %5776  ;;  %v3211_v0 = vadd.f32 1.0, %v8349_v36  ;;  %v3821_v27 = vsub.f32 %v9747_v12, %v8739_v35 }
 0x3a7   : > { %3539 = vrot.lane.b32.xlu1 %v5773_v21, %s5909_s9  ;;  %v3762_v31 = vpop.permute.xlu0 %3761  ;;  %v5779_v21 = vpop.eup %5778 }
 0x3a8   : > { %v3861_v23 = vadd.f32 %v3829_v18, %v8539_v59  ;;  %v3830_v33 = vsub.f32 %v9745_v46, %v3762_v31  ;;  %v3371_v14 = vsub.f32 %v3211_v0, %v8580_v43  ;;  %v9751_v0 = vld [vmem:[#allocation72_spill] sm:$0xff] }
 0x3a9   : > { %vm9585_vm2 = vcmp.gt.f32.partialorder %v9751_v0, 0.0 }
 0x3aa   : > { %v3925_v53 = vsel %vm9581_vm3, %v3861_v23, 1.0  ;;  %v3862_v20 = vadd.f32 %v3830_v33, %v8539_v59  ;;  %v3404_v18 = vadd.f32 %v8539_v59, %v3371_v14  ;;  %v9748_v23 = vld [vmem:[#allocation57_spill] sm:$0xff] }
 0x3ab   : > { %3541 = vrot.lane.b32.xlu1 %v5775_v41, %s5909_s9  ;;  %5780 = vrcp.f32 %v3925_v53  ;;  %v8850_v8 = vpop.permute.xlu0 %3310  ;;  %v3823_v33 = vsub.f32 %v9748_v23, %v8753_v42  ;;  %v9749_v53 = vld [vmem:[#allocation60_spill] sm:$0xff]  ;;  %vm3887_vm3 = vcmp.gt.f32.partialorder %v9748_v23, 0.0 }
 0x3ac   : > { %5782 = vrcp.f32 %v3402_v55  ;;  %v3926_v47 = vsel %vm9580_vm7, %v3862_v20, 1.0  ;;  %v3853_v55 = vadd.f32 %v3821_v27, %v8539_v59  ;;  %vm9582_vm7 = vcmp.gt.f32.partialorder %v9747_v12, 0.0 }
 0x3ad   : > { %5784 = vrcp.f32 %v3926_v47  ;;  %v3855_v3 = vadd.f32 %v3823_v33, %v8539_v59  ;;  %v3825_v20 = vsub.f32 %v9749_v53, %v8773_v34  ;;  %vm3889_vm13 = vcmp.gt.f32.partialorder %v9749_v53, 0.0 }
 0x3ae   : > { %5786 = vrcp.f32 %v3915_v44  ;;  %v3917_v35 = vsel %vm9582_vm7, %v3853_v55, 1.0  ;;  %vm9586_vm7 = vcmp.gt.f32.partialorder %v9750_v37, 0.0 }
 0x3af   : > { %4055 = vrot.lane.b32.xlu1 %v5777_v5, %s5909_s9  ;;  %5788 = vrcp.f32 %v3403_v15  ;;  %v8861_v48 = vpop.permute.xlu0 %3312  ;;  %v3919_v14 = vsel %vm3887_vm3, %v3855_v3, 1.0  ;;  %v3857_v34 = vadd.f32 %v3825_v20, %v8539_v59 }
 0x3b0   : > { %5790 = vrcp.f32 %v3404_v18 }
 0x3b1   : > { %5792 = vrcp.f32 %v3917_v35  ;;  %v3921_v55 = vsel %vm3889_vm13, %v3857_v34, 1.0 }
 0x3b3   : > { %3543 = vrot.lane.b32.xlu1 %v5779_v21, %s5909_s9 }
 0x3b5   : > { %v5781_v31 = vpop.eup %5780 }
 0x3b6   : > { %v5783_v41 = vpop.eup %5782  ;;  %4079 = vrot.lane.b32.xlu0 %v5781_v31, %s5909_s9 }
 0x3b7   : > { %v5785_v43 = vpop.eup %5784  ;;  %3545 = vrot.lane.b32.xlu1 %v5783_v41, %s5909_s9 }
 0x3b8   : > { %v5787_v26 = vpop.eup %5786 }
 0x3b9   : > { %v3764_v42 = vpop.permute.xlu1 %3763  ;;  %v5789_v27 = vpop.eup %5788 }
 0x3ba   : > { %v3831_v47 = vsub.f32 %v9750_v37, %v3764_v42  ;;  %4081 = vrot.lane.b32.xlu0 %v5785_v43, %s5909_s9  ;;  %v5791_v33 = vpop.eup %5790 }
 0x3bb   : > { %4059 = vrot.lane.b32.xlu1 %v5787_v26, %s5909_s9  ;;  %v3766_v44 = vpop.permute.xlu0 %3765  ;;  %v5793_v43 = vpop.eup %5792 }
 0x3bc   : > { %v3863_v5 = vadd.f32 %v3831_v47, %v8539_v59  ;;  %v3832_v15 = vsub.f32 %v9751_v0, %v3766_v44 }
 0x3be   : > { %v3927_v21 = vsel %vm9586_vm7, %v3863_v5, 1.0  ;;  %v3864_v18 = vadd.f32 %v3832_v15, %v8539_v59  ;;  %vm3898_vm7 = vcmp.gt.f32.partialorder %v8595_v63, 0.0 }
 0x3bf   : > { %5794 = vrcp.f32 %v3927_v21  ;;  %3547 = vrot.lane.b32.xlu1 %v5789_v27, %s5909_s9  ;;  %v8892_v41 = vpop.permute.xlu0 %3314 }
 0x3c0   : > { %5796 = vrcp.f32 %v3919_v14  ;;  %v3928_v31 = vsel %vm9585_vm2, %v3864_v18, 1.0  ;;  %v3931_v14 = vsub.f32 %v8539_v59, %v7923_v2  ;;  %vm3897_vm2 = vcmp.gt.f32.partialorder %v8587_v10, 0.0 }
 0x3c1   : > { %5798 = vrcp.f32 %v3928_v31 }
 0x3c2   : > { %5800 = vrcp.f32 %v3921_v55 }
 0x3c3   : > { %3549 = vrot.lane.b32.xlu1 %v5791_v33, %s5909_s9  ;;  %v8895_v3 = vpop.permute.xlu0 %3316 }
 0x3c7   : > { %4063 = vrot.lane.b32.xlu1 %v5793_v43, %s5909_s9 }
 0x3c9   : > { %v5795_v35 = vpop.eup %5794 }
 0x3ca   : > { %v5797_v20 = vpop.eup %5796  ;;  %4083 = vrot.lane.b32.xlu0 %v5795_v35, %s5909_s9 }
 0x3cb   : > { %v5799_v42 = vpop.eup %5798  ;;  %4067 = vrot.lane.b32.xlu1 %v5797_v20, %s5909_s9 }
 0x3cc   : > { %v5801_v47 = vpop.eup %5800 }
 0x3cd   : > { %v3768_v26 = vpop.permute.xlu1 %3767 }
 0x3ce   : > { %v3833_v44 = vsub.f32 %v8587_v10, %v3768_v26  ;;  %4085 = vrot.lane.b32.xlu0 %v5799_v42, %s5909_s9 }
 0x3cf   : > { %4071 = vrot.lane.b32.xlu1 %v5801_v47, %s5909_s9  ;;  %v3770_v5 = vpop.permute.xlu0 %3769 }
 0x3d0   : > { %v3865_v15 = vadd.f32 %v3833_v44, %v8539_v59  ;;  %v3834_v34 = vsub.f32 %v8595_v63, %v3770_v5  ;;  %v3932_v5 = vsub.f32 %v8539_v59, %v7929_v7 }
 0x3d1   : > { %v4028_v27 = vpop.permute.xlu1 %4027 }
 0x3d2   : > { %v3929_v21 = vsel %vm3897_vm2, %v3865_v15, 1.0  ;;  %v4123_v18 = vmul.f32 %v4028_v27, %v3931_v14  ;;  %v3866_v31 = vadd.f32 %v3834_v34, %v8539_v59  ;;  %v3933_v34 = vsub.f32 %v8539_v59, %v8000_v39 }
 0x3d3   : > { %5802 = vrcp.f32 %v3929_v21  ;;  %v8911_v55 = vpop.permute.xlu0 %3318 }
 0x3d4   : > { %v4155_v33 = vsub.f32 1.0, %v4123_v18  ;;  %v3930_v43 = vsel %vm3898_vm7, %v3866_v31, 1.0 }
 0x3d5   : > { %v8915_v35 = vpop.permute.xlu1 %3517  ;;  %5804 = vrcp.f32 %v3930_v43  ;;  %v3934_v43 = vsub.f32 %v8539_v59, %v8006_v32  ;;  %v3218_v32 = vadd.f32 1.0, %v8455_v6 }
 0x3d6   : > { %9752 = vst [vmem:[#allocation69_spill] sm:$0xff] %v8915_v35  ;;  %4219 = vrot.lane.b32.xlu0 %v4155_v33, %s5908_s19  ;;  %v3935_v35 = vsub.f32 %v8539_v59, %v8086_v60  ;;  %v3219_v60 = vadd.f32 1.0, %v8457_v56 }
 0x3d7   : > { %v8918_v20 = vpop.permute.xlu0 %3320 }
 0x3d8   : > { %9753 = vst [vmem:[#allocation70_spill] sm:$0xff] %v8918_v20 }
 0x3d9   : > { %v4032_v42 = vpop.permute.xlu1 %4031 }
 0x3da   : > { %v4125_v18 = vmul.f32 %v4032_v42, %v3933_v34  ;;  %v3936_v34 = vsub.f32 %v8539_v59, %v8092_v13  ;;  %v3220_v13 = vadd.f32 1.0, %v9744_v19 }
 0x3db   : > { %v8920_v26 = vpop.permute.xlu0 %3515 }
 0x3dc   : > { %9754 = vst [vmem:[#allocation51_spill] sm:$0xff] %v8920_v26  ;;  %v4157_v38 = vsub.f32 1.0, %v4125_v18 }
 0x3dd   : > { %v5803_v47 = vpop.eup %5802  ;;  %v8922_v44 = vpop.permute.xlu1 %3519 }
 0x3de   : > { %9755 = vst [vmem:[#allocation65_spill] sm:$0xff] %v8922_v44  ;;  %4087 = vrot.lane.b32.xlu0 %v5803_v47, %s5909_s9 }
 0x3df   : > { %v5805_v15 = vpop.eup %5804  ;;  %v4030_v14 = vpop.permute.xlu0 %4029 }
 0x3e0   : > { %v4124_v27 = vmul.f32 %v4030_v14, %v3932_v5 }
 0x3e1   : > { %v8929_v21 = vpop.permute.xlu1 %3521 }
 0x3e2   : > { %9756 = vst [vmem:[#allocation66_spill] sm:$0xff] %v8929_v21  ;;  %v4156_v31 = vsub.f32 1.0, %v4124_v27  ;;  %4089 = vrot.lane.b32.xlu0 %v5805_v15, %s5909_s9 }
 0x3e3   : > { %v4034_v33 = vpop.permute.xlu0 %4033 }
 0x3e4   : > { %4221 = vrot.lane.b32.xlu1 %v4156_v31, %s5908_s19  ;;  %v4126_v52 = vmul.f32 %v4034_v33, %v3934_v43  ;;  %v3937_v43 = vsub.f32 %v8539_v59, %v8172_v30  ;;  %v3221_v30 = vadd.f32 1.0, %v9745_v46 }
 0x3e5   : > { %v4036_v47 = vpop.permute.xlu1 %4035 }
 0x3e6   : > { %v4127_v42 = vmul.f32 %v4036_v47, %v3935_v35  ;;  %v4158_v14 = vsub.f32 1.0, %v4126_v52  ;;  %v3938_v47 = vsub.f32 %v8539_v59, %v8178_v4 }
 0x3e7   : > { %v4038_v44 = vpop.permute.xlu0 %4037 }
 0x3e8   : > { %4223 = vrot.lane.b32.xlu1 %v4157_v38, %s5908_s19  ;;  %v4159_v18 = vsub.f32 1.0, %v4127_v42  ;;  %v4128_v31 = vmul.f32 %v4038_v44, %v3936_v34 }
 0x3e9   : > { %v8938_v5 = vpop.permute.xlu1 %3523 }
 0x3ea   : > { %9757 = vst [vmem:[#allocation75_spill] sm:$0xff] %v8938_v5  ;;  %v4160_v35 = vsub.f32 1.0, %v4128_v31  ;;  %v3939_v31 = vsub.f32 %v8539_v59, %v8258_v16 }
 0x3eb   : > { %v4042_v15 = vpop.permute.xlu0 %4041 }
 0x3ec   : > { %4225 = vrot.lane.b32.xlu1 %v4158_v14, %s5908_s19  ;;  %v4130_v42 = vmul.f32 %v4042_v15, %v3938_v47 }
 0x3ed   : > { %v8943_v27 = vpop.permute.xlu1 %3525 }
 0x3ee   : > { %9758 = vst [vmem:[#allocation54_spill] sm:$0xff] %v8943_v27  ;;  %v4162_v21 = vsub.f32 1.0, %v4130_v42 }
 0x3ef   : > { %v4046_v33 = vpop.permute.xlu0 %4045 }
 0x3f0   : > { %4227 = vrot.lane.b32.xlu1 %v4159_v18, %s5908_s19 }
 0x3f1   : > { %v4040_v38 = vpop.permute.xlu1 %4039 }
 0x3f2   : > { %v4129_v5 = vmul.f32 %v4040_v38, %v3937_v43 }
 0x3f3   : > { %v4050_v52 = vpop.permute.xlu0 %4049 }
 0x3f4   : > { %4229 = vrot.lane.b32.xlu1 %v4160_v35, %s5908_s19  ;;  %v4161_v27 = vsub.f32 1.0, %v4129_v5  ;;  %v3940_v35 = vsub.f32 %v8539_v59, %v8260_v25 }
 0x3f5   : > { %v8951_v14 = vpop.permute.xlu1 %3527 }
 0x3f6   : > { %9759 = vst [vmem:[#allocation57_spill] sm:$0xff] %v8951_v14  ;;  %v4132_v15 = vmul.f32 %v4046_v33, %v3940_v35  ;;  %v3942_v33 = vsub.f32 %v8539_v59, %v8283_v62 }
 0x3f7   : > { %v4054_v44 = vpop.permute.xlu0 %4053 }
 0x3f8   : > { %4231 = vrot.lane.b32.xlu1 %v4161_v27, %s5908_s19  ;;  %v4164_v42 = vsub.f32 1.0, %v4132_v15  ;;  %v4134_v15 = vmul.f32 %v4050_v52, %v3942_v33  ;;  %v3944_v33 = vsub.f32 %v8539_v59, %v8305_v45 }
 0x3f9   : > { %v8954_v34 = vpop.permute.xlu1 %3529 }
 0x3fa   : > { %9760 = vst [vmem:[#allocation60_spill] sm:$0xff] %v8954_v34  ;;  %v4166_v20 = vsub.f32 1.0, %v4134_v15 }
 0x3fb   : > { %v4058_v18 = vpop.permute.xlu0 %4057 }
 0x3fc   : > { %4233 = vrot.lane.b32.xlu1 %v4162_v21, %s5908_s19 }
 0x3fd   : > { %v4044_v43 = vpop.permute.xlu1 %4043 }
 0x3fe   : > { %v4131_v38 = vmul.f32 %v4044_v43, %v3939_v31  ;;  %v3941_v31 = vsub.f32 %v8539_v59, %v8281_v9 }
 0x3ff   : > { %v8961_v14 = vpop.permute.xlu0 %4061 }
 0x400   : > { %v4163_v5 = vsub.f32 1.0, %v4131_v38  ;;  %v3954_v38 = vsub.f32 %v8539_v59, %v8429_v58 }
 0x401   : > { %v8963_v47 = vpop.permute.xlu1 %3531 }
 0x402   : > { %9761 = vst [vmem:[#allocation71_spill] sm:$0xff] %v8963_v47  ;;  %4235 = vrot.lane.b32.xlu1 %v4163_v5, %s5908_s19 }
 0x403   : > { %v8966_v27 = vpop.permute.xlu0 %4065 }
 0x405   : > { %v8968_v34 = vpop.permute.xlu1 %3533 }
 0x406   : > { %9762 = vst [vmem:[#allocation72_spill] sm:$0xff] %v8968_v34  ;;  %4237 = vrot.lane.b32.xlu1 %v4164_v42, %s5908_s19 }
 0x407   : > { %v8971_v21 = vpop.permute.xlu0 %4069 }
 0x409   : > { %v4048_v43 = vpop.permute.xlu1 %4047 }
 0x40a   : > { %v4133_v26 = vmul.f32 %v4048_v43, %v3941_v31  ;;  %v3943_v31 = vsub.f32 %v8539_v59, %v8303_v17 }
 0x40b   : > { %v4074_v35 = vpop.permute.xlu0 %4073 }
 0x40c   : > { %v4165_v5 = vsub.f32 1.0, %v4133_v26  ;;  %v4146_v47 = vmul.f32 %v4074_v35, %v3954_v38  ;;  %v4136_v35 = vmul.f32 %v4054_v44, %v3944_v33  ;;  %v3946_v44 = vsub.f32 %v8539_v59, %v8327_v54 }
 0x40d   : > { %v8979_v34 = vpop.permute.xlu1 %3535 }
 0x40e   : > { %9763 = vst [vmem:[#allocation78_spill] sm:$0xff] %v8979_v34  ;;  %4239 = vrot.lane.b32.xlu1 %v4165_v5, %s5908_s19  ;;  %v4178_v42 = vsub.f32 1.0, %v4146_v47  ;;  %v3956_v47 = vsub.f32 %v8539_v59, %v8457_v56  ;;  %v4138_v33 = vmul.f32 %v4058_v18, %v3946_v44 }
 0x410   : > { %4265 = vrot.lane.b32.xlu0 %v4178_v42, %s5908_s19 }
 0x411   : > { %v8983_v9 = vpop.permute.xlu1 %3537 }
 0x412   : > { %9764 = vst [vmem:[#allocation79_spill] sm:$0xff] %v8983_v9  ;;  %4241 = vrot.lane.b32.xlu1 %v4166_v20, %s5908_s19  ;;  %v4168_v9 = vsub.f32 1.0, %v4136_v35 }
 0x414   : > { %v8988_v43 = vpop.permute.xlu0 %4075 }
 0x415   : > { %v4052_v26 = vpop.permute.xlu1 %4051 }
 0x416   : > { %v4135_v52 = vmul.f32 %v4052_v26, %v3943_v31  ;;  %v3945_v31 = vsub.f32 %v8539_v59, %v8325_v61 }
 0x418   : > { %v4167_v38 = vsub.f32 1.0, %v4135_v52  ;;  %v4078_v5 = vpop.permute.xlu0 %4077 }
 0x419   : > { %v8994_v15 = vpop.permute.xlu1 %3539  ;;  %v4148_v42 = vmul.f32 %v4078_v5, %v3956_v47 }
 0x41a   : > { %4243 = vrot.lane.b32.xlu1 %v4167_v38, %s5908_s19  ;;  %v4170_v38 = vsub.f32 1.0, %v4138_v33 }
 0x41b   : > { %v4180_v20 = vsub.f32 1.0, %v4148_v42 }
 0x41d   : > { %v8997_v34 = vpop.permute.xlu1 %3541  ;;  %4269 = vrot.lane.b32.xlu0 %v4180_v20, %s5908_s19  ;;  %v3947_v20 = vsub.f32 %v8539_v59, %v9743_v29 }
 0x41e   : > { %9765 = vst [vmem:[#allocation80_spill] sm:$0xff] %v8997_v34  ;;  %4245 = vrot.lane.b32.xlu1 %v4168_v9, %s5908_s19  ;;  %v3958_v9 = vsub.f32 %v8539_v59, %v9745_v46 }
 0x421   : > { %v4056_v26 = vpop.permute.xlu1 %4055 }
 0x422   : > { %v4137_v52 = vmul.f32 %v4056_v26, %v3945_v31  ;;  %v3948_v26 = vsub.f32 %v8539_v59, %v8349_v36 }
 0x424   : > { %v4169_v47 = vsub.f32 1.0, %v4137_v52  ;;  %v4140_v33 = vmul.f32 %v8961_v14, %v3948_v26 }
 0x425   : > { %v9005_v5 = vpop.permute.xlu1 %3543 }
 0x426   : > { %9766 = vst [vmem:[#allocation81_spill] sm:$0xff] %v9005_v5  ;;  %4247 = vrot.lane.b32.xlu1 %v4169_v47, %s5908_s19 }
 0x428   : > { %v4080_v35 = vpop.permute.xlu0 %4079 }
 0x429   : > { %v9008_v42 = vpop.permute.xlu1 %3545 }
 0x42a   : > { %9767 = vst [vmem:[#allocation82_spill] sm:$0xff] %v9008_v42  ;;  %4249 = vrot.lane.b32.xlu1 %v4170_v38, %s5908_s19  ;;  %v4172_v38 = vsub.f32 1.0, %v4140_v33  ;;  %v3960_v33 = vsub.f32 %v8539_v59, %v9751_v0 }
 0x42c   : > { %v4082_v34 = vpop.permute.xlu0 %4081 }
 0x42d   : > { %v4060_v31 = vpop.permute.xlu1 %4059  ;;  %v4150_v18 = vmul.f32 %v4082_v34, %v3958_v9  ;;  %v3949_v34 = vsub.f32 %v8539_v59, %v9747_v12 }
 0x42e   : > { %v4139_v44 = vmul.f32 %v4060_v31, %v3947_v20  ;;  %v3950_v20 = vsub.f32 %v8539_v59, %v8371_v40 }
 0x42f   : > { %v4182_v52 = vsub.f32 1.0, %v4150_v18 }
 0x430   : > { %v4171_v47 = vsub.f32 1.0, %v4139_v44  ;;  %v4142_v31 = vmul.f32 %v8966_v27, %v3950_v20 }
 0x431   : > { %v9018_v42 = vpop.permute.xlu1 %3547  ;;  %4273 = vrot.lane.b32.xlu0 %v4182_v52, %s5908_s19  ;;  %v3951_v52 = vsub.f32 %v8539_v59, %v9748_v23 }
 0x432   : > { %9768 = vst [vmem:[#allocation83_spill] sm:$0xff] %v9018_v42  ;;  %4251 = vrot.lane.b32.xlu1 %v4171_v47, %s5908_s19  ;;  %v4174_v47 = vsub.f32 1.0, %v4142_v31 }
 0x435   : > { %v9022_v5 = vpop.permute.xlu1 %3549 }
 0x436   : > { %9769 = vst [vmem:[#allocation84_spill] sm:$0xff] %v9022_v5  ;;  %4253 = vrot.lane.b32.xlu1 %v4172_v38, %s5908_s19 }
 0x439   : > { %v4064_v9 = vpop.permute.xlu1 %4063 }
 0x43a   : > { %v4141_v14 = vmul.f32 %v4064_v9, %v3949_v34  ;;  %v3952_v34 = vsub.f32 %v8539_v59, %v8399_v28 }
 0x43c   : > { %v4173_v18 = vsub.f32 1.0, %v4141_v14  ;;  %v4084_v26 = vpop.permute.xlu0 %4083  ;;  %v4144_v9 = vmul.f32 %v8971_v21, %v3952_v34  ;;  %v3961_v34 = vsub.f32 %v8539_v59, %v8587_v10 }
 0x43d   : > { %v4068_v44 = vpop.permute.xlu1 %4067 }
 0x43e   : > { %4255 = vrot.lane.b32.xlu1 %v4173_v18, %s5908_s19  ;;  %v4143_v38 = vmul.f32 %v4068_v44, %v3951_v52  ;;  %v3953_v18 = vsub.f32 %v8539_v59, %v9749_v53  ;;  %v4176_v31 = vsub.f32 1.0, %v4144_v9 }
 0x440   : > { %v4086_v5 = vpop.permute.xlu0 %4085  ;;  %v4175_v20 = vsub.f32 1.0, %v4143_v38  ;;  %v3957_v38 = vsub.f32 %v8539_v59, %v9744_v19 }
 0x441   : > { %v4152_v42 = vmul.f32 %v4086_v5, %v3960_v33  ;;  %v4072_v14 = vpop.permute.xlu1 %4071 }
 0x442   : > { %4257 = vrot.lane.b32.xlu1 %v4174_v47, %s5908_s19  ;;  %v4145_v44 = vmul.f32 %v4072_v14, %v3953_v18  ;;  %v3212_v47 = vadd.f32 1.0, %v9747_v12 }
 0x443   : > { %v4184_v27 = vsub.f32 1.0, %v4152_v42  ;;  %v3955_v42 = vsub.f32 %v8539_v59, %v8455_v6 }
 0x444   : > { %v4177_v33 = vsub.f32 1.0, %v4145_v44  ;;  %v3372_v2 = vsub.f32 %v3212_v47, %v8629_v11  ;;  %v3962_v11 = vsub.f32 %v8539_v59, %v8595_v63 }
 0x445   : > { %4277 = vrot.lane.b32.xlu0 %v4184_v27, %s5908_s19  ;;  %v4147_v21 = vmul.f32 %v8988_v43, %v3955_v42  ;;  %v3213_v27 = vadd.f32 1.0, %v8371_v40 }
 0x446   : > { %4259 = vrot.lane.b32.xlu1 %v4175_v20, %s5908_s19  ;;  %v4149_v20 = vmul.f32 %v4080_v35, %v3957_v38  ;;  %v3405_v44 = vadd.f32 %v8539_v59, %v3372_v2  ;;  %v3214_v35 = vadd.f32 1.0, %v9748_v23 }
 0x447   : > { %v4179_v9 = vsub.f32 1.0, %v4147_v21  ;;  %v3373_v43 = vsub.f32 %v3213_v27, %v8656_v51  ;;  %v3215_v27 = vadd.f32 1.0, %v8399_v28 }
 0x448   : > { %v4220_v5 = vpop.permute.xlu0 %4219  ;;  %5806 = vrcp.f32 %v3405_v44  ;;  %v3374_v38 = vsub.f32 %v3214_v35, %v8696_v57 }
 0x449   : > { %v4315_v52 = vsel %vm3867_vm11, %v4220_v5, 0.0  ;;  %v3406_v51 = vadd.f32 %v8539_v59, %v3373_v43  ;;  %vm9772_vm11 = vcmp.gt.f32.partialorder %v8303_v17, 0.0 }
 0x44a   : > { %4261 = vrot.lane.b32.xlu1 %v4176_v31, %s5908_s19  ;;  %4379 = vrot.lane.b32.xlu0 %v4315_v52, %s5909_s9  ;;  %v3959_v31 = vsub.f32 %v8539_v59, %v9750_v37  ;;  %v4181_v52 = vsub.f32 1.0, %v4149_v20  ;;  %v3375_v20 = vsub.f32 %v3215_v27, %v8715_v1 }
 0x44b   : > { %5808 = vrcp.f32 %v3406_v51 }
 0x44c   : > { %v4151_v42 = vmul.f32 %v4084_v26, %v3959_v31  ;;  %v3408_v31 = vadd.f32 %v8539_v59, %v3375_v20 }
 0x44e   : > { %4263 = vrot.lane.b32.xlu1 %v4177_v33, %s5908_s19 }
 0x450   : > { %v4088_v14 = vpop.permute.xlu0 %4087 }
 0x451   : > { %v4153_v18 = vmul.f32 %v4088_v14, %v3961_v34  ;;  %v4183_v34 = vsub.f32 1.0, %v4151_v42 }
 0x452   : > { %4267 = vrot.lane.b32.xlu1 %v4179_v9, %s5908_s19  ;;  %v3407_v9 = vadd.f32 %v8539_v59, %v3374_v38  ;;  %v5807_v7 = vpop.eup %5806 }
 0x453   : > { %v4185_v5 = vsub.f32 1.0, %v4153_v18  ;;  %v3216_v18 = vadd.f32 1.0, %v9749_v53 }
 0x454   : > { %v4090_v33 = vpop.permute.xlu0 %4089  ;;  %5810 = vrcp.f32 %v3407_v9  ;;  %v3380_v9 = vsub.f32 %v3220_v13, %v8850_v8 }
 0x455   : > { %v4154_v21 = vmul.f32 %v4090_v33, %v3962_v11  ;;  %4279 = vrot.lane.b32.xlu0 %v4185_v5, %s5908_s19  ;;  %v3376_v44 = vsub.f32 %v3216_v18, %v8763_v22  ;;  %v3217_v5 = vadd.f32 1.0, %v8429_v58  ;;  %5812 = vrcp.f32 %v3408_v31  ;;  %v5809_v22 = vpop.eup %5808 }
 0x456   : > { %4271 = vrot.lane.b32.xlu1 %v4181_v52, %s5908_s19  ;;  %v4222_v47 = vpop.permute.xlu1 %4221  ;;  %v3222_v31 = vadd.f32 1.0, %v9750_v37 }
 0x457   : > { %v4186_v2 = vsub.f32 1.0, %v4154_v21  ;;  %v4316_v14 = vsel %vm3868_vm6, %v4222_v47, 0.0  ;;  %v3409_v11 = vadd.f32 %v8539_v59, %v3376_v44  ;;  %v3377_v52 = vsub.f32 %v3217_v5, %v8778_v49 }
 0x458   : > { %v3378_v21 = vsub.f32 %v3218_v32, %v8809_v50  ;;  %v3382_v44 = vsub.f32 %v3222_v31, %v8892_v41  ;;  %v3225_v32 = vadd.f32 1.0, %v8595_v63  ;;  %vm9774_vm6 = vcmp.gt.f32.partialorder %v8325_v61, 0.0 }
 0x459   : > { %4281 = vrot.lane.b32.xlu0 %v4186_v2, %s5908_s19  ;;  %5814 = vrcp.f32 %v3409_v11  ;;  %v3410_v35 = vadd.f32 %v8539_v59, %v3377_v52  ;;  %v3379_v2 = vsub.f32 %v3219_v60, %v8819_v24  ;;  %v3224_v52 = vadd.f32 1.0, %v8587_v10 }
 0x45a   : > { %4275 = vrot.lane.b32.xlu1 %v4183_v34, %s5908_s19  ;;  %v4224_v26 = vpop.permute.xlu1 %4223  ;;  %v3411_v38 = vadd.f32 %v8539_v59, %v3378_v21  ;;  %v3415_v16 = vadd.f32 %v8539_v59, %v3382_v44  ;;  %v9771_v21 = vld [vmem:[#allocation70_spill] sm:$0xff] }
 0x45b   : > { %v4317_v57 = vsel %vm3869_vm5, %v4224_v26, 0.0  ;;  %5816 = vrcp.f32 %v3410_v35  ;;  %v3412_v26 = vadd.f32 %v8539_v59, %v3379_v2  ;;  %v3384_v25 = vsub.f32 %v3224_v52, %v8911_v55 }
 0x45c   : > { %5818 = vrcp.f32 %v3411_v38  ;;  %vm9773_vm5 = vcmp.gt.f32.partialorder %v8305_v45, 0.0 }
 0x45d   : > { %4383 = vrot.lane.b32.xlu0 %v4317_v57, %s5909_s9  ;;  %5820 = vrcp.f32 %v3412_v26  ;;  %v3381_v57 = vsub.f32 %v3221_v30, %v8861_v48  ;;  %v3223_v48 = vadd.f32 1.0, %v9751_v0 }
 0x45e   : > { %4381 = vrot.lane.b32.xlu1 %v4316_v14, %s5909_s9  ;;  %v4226_v43 = vpop.permute.xlu1 %4225  ;;  %v5811_v49 = vpop.eup %5810  ;;  %v3413_v14 = vadd.f32 %v8539_v59, %v3380_v9 }
 0x45f   : > { %v4318_v1 = vsel %vm3870_vm8, %v4226_v43, 0.0  ;;  %v5813_v50 = vpop.eup %5812  ;;  %v3414_v8 = vadd.f32 %v8539_v59, %v3381_v57  ;;  %vm9775_vm8 = vcmp.gt.f32.partialorder %v8327_v54, 0.0 }
 0x460   : > { %5822 = vrcp.f32 %v3413_v14 }
 0x461   : > { %4385 = vrot.lane.b32.xlu0 %v4318_v1, %s5909_s9  ;;  %5824 = vrcp.f32 %v3414_v8 }
 0x462   : > { %3551 = vrot.lane.b32.xlu1 %v5807_v7, %s5909_s9  ;;  %v4228_v39 = vpop.permute.xlu1 %4227  ;;  %5826 = vrcp.f32 %v3415_v16 }
 0x463   : > { %v4319_v42 = vsel %vm3871_vm12, %v4228_v39, 0.0  ;;  %v5815_v24 = vpop.eup %5814  ;;  %v3383_v39 = vsub.f32 %v3223_v48, %v8895_v3  ;;  %v3417_v3 = vadd.f32 %v8539_v59, %v3384_v25  ;;  %vm9776_vm12 = vcmp.gt.f32.partialorder %v9743_v29, 0.0  ;;  %v9779_v29 = vld [vmem:[#allocation47_spill] sm:$0xff] }
 0x464   : > { %v3419_v8 = vsub.f32 %v8539_v59, %v9779_v29 }
 0x465   : > { %4387 = vrot.lane.b32.xlu0 %v4319_v42, %s5909_s9  ;;  %v5817_v43 = vpop.eup %5816  ;;  %v3416_v41 = vadd.f32 %v8539_v59, %v3383_v39 }
 0x466   : > { %3553 = vrot.lane.b32.xlu1 %v5809_v22, %s5909_s9  ;;  %v4230_v33 = vpop.permute.xlu1 %4229  ;;  %v5819_v7 = vpop.eup %5818 }
 0x467   : > { %v4320_v51 = vsel %vm3872_vm10, %v4230_v33, 0.0  ;;  %v5821_v11 = vpop.eup %5820  ;;  %5828 = vrcp.f32 %v3416_v41  ;;  %vm9777_vm10 = vcmp.gt.f32.partialorder %v8349_v36, 0.0  ;;  %v9781_v36 = vld [vmem:[#allocation51_spill] sm:$0xff] }
 0x468   : > { %5830 = vrcp.f32 %v3417_v3 }
 0x469   : > { %4389 = vrot.lane.b32.xlu0 %v4320_v51, %s5909_s9  ;;  %v3385_v51 = vsub.f32 %v3225_v32, %v9771_v21 }
 0x46a   : > { %3555 = vrot.lane.b32.xlu1 %v5811_v49, %s5909_s9  ;;  %v4232_v47 = vpop.permute.xlu1 %4231  ;;  %v5823_v22 = vpop.eup %5822 }
 0x46b   : > { %v4321_v34 = vsel %vm3873_vm9, %v4232_v47, 0.0  ;;  %v5825_v60 = vpop.eup %5824  ;;  %v3418_v47 = vadd.f32 %v8539_v59, %v3385_v51  ;;  %vm9784_vm9 = vcmp.gt.f32.partialorder %v8399_v28, 0.0 }
 0x46c   : > { %v5827_v38 = vpop.eup %5826 }
 0x46d   : > { %4391 = vrot.lane.b32.xlu0 %v4321_v34, %s5909_s9  ;;  %5832 = vrcp.f32 %v3418_v47 }
 0x46e   : > { %3557 = vrot.lane.b32.xlu1 %v5813_v50, %s5909_s9  ;;  %v4234_v27 = vpop.permute.xlu1 %4233 }
 0x46f   : > { %v4322_v20 = vsel %vm3874_vm4, %v4234_v27, 0.0  ;;  %vm9778_vm4 = vcmp.gt.f32.partialorder %v9747_v12, 0.0 }
 0x471   : > { %4393 = vrot.lane.b32.xlu0 %v4322_v20, %s5909_s9  ;;  %v5829_v34 = vpop.eup %5828 }
 0x472   : > { %3559 = vrot.lane.b32.xlu1 %v5815_v24, %s5909_s9  ;;  %v5831_v13 = vpop.eup %5830 }
 0x474   : > { %v4236_v18 = vpop.permute.xlu1 %4235 }
 0x475   : > { %v4323_v4 = vsel %vm3875_vm14, %v4236_v18, 0.0  ;;  %vm9786_vm14 = vcmp.gt.f32.partialorder %v8455_v6, 0.0 }
 0x476   : > { %3561 = vrot.lane.b32.xlu1 %v5817_v43, %s5909_s9  ;;  %4395 = vrot.lane.b32.xlu0 %v4323_v4, %s5909_s9 }
 0x477   : > { %v5833_v26 = vpop.eup %5832 }
 0x478   : > { %v4238_v1 = vpop.permute.xlu1 %4237 }
 0x479   : > { %v4324_v5 = vsel %vm3876_vm1, %v4238_v1, 0.0  ;;  %vm9780_vm1 = vcmp.gt.f32.partialorder %v8371_v40, 0.0  ;;  %v3611_v1 = vmul.f32 %v9781_v36, %v3419_v8  ;;  %v9803_v36 = vld [vmem:[#allocation39_spill] sm:$0xff] }
 0x47a   : > { %3563 = vrot.lane.b32.xlu1 %v5819_v7, %s5909_s9  ;;  %4397 = vrot.lane.b32.xlu0 %v4324_v5, %s5909_s9  ;;  %v9782_v5 = vld [vmem:[#allocation3_spill] sm:$0xff] }
 0x47b   : > { %v9783_v16 = vsub.f32 1.0, %v9782_v5 }
 0x47d   : > { %v4507_v39 = vmax.f32 %v9783_v16, 0.0  ;;  %v9805_v16 = vld [vmem:[#allocation8_spill] sm:$0xff] }
 0x47e   : > { %3565 = vrot.lane.b32.xlu1 %v5821_v11, %s5909_s9  ;;  %v3643_v11 = vsub.f32 1.0, %v3611_v1  ;;  %v3425_v1 = vsub.f32 %v8539_v59, %v9803_v36 }
 0x480   : > { %v4240_v42 = vpop.permute.xlu1 %4239 }
 0x481   : > { %v4325_v35 = vsel %vm3877_vm0, %v4240_v42, 0.0  ;;  %vm9790_vm0 = vcmp.gt.f32.partialorder %v9750_v37, 0.0  ;;  %v9793_v37 = vld [vmem:[#allocation69_spill] sm:$0xff] }
 0x482   : > { %3567 = vrot.lane.b32.xlu1 %v5823_v22, %s5909_s9  ;;  %4399 = vrot.lane.b32.xlu0 %v4325_v35, %s5909_s9  ;;  %v4266_v61 = vpop.permute.xlu0 %4265 }
 0x484   : > { %v4242_v49 = vpop.permute.xlu1 %4241 }
 0x485   : > { %v4326_v55 = vsel %vm3878_vm15, %v4242_v49, 0.0  ;;  %vm9785_vm15 = vcmp.gt.f32.partialorder %v8429_v58, 0.0 }
 0x486   : > { %3569 = vrot.lane.b32.xlu1 %v5825_v60, %s5909_s9  ;;  %4401 = vrot.lane.b32.xlu0 %v4326_v55, %s5909_s9  ;;  %v4338_v32 = vsel %vm9785_vm15, %v4266_v61, 0.0  ;;  %v9799_v61 = vld [vmem:[#allocation38_spill] sm:$0xff] }
 0x48a   : > { %3571 = vrot.lane.b32.xlu1 %v5827_v38, %s5909_s9 }
 0x48c   : > { %v4244_v2 = vpop.permute.xlu1 %4243 }
 0x48d   : > { %v4327_v50 = vsel %vm9772_vm11, %v4244_v2, 0.0  ;;  %vm9791_vm11 = vcmp.gt.f32.partialorder %v9751_v0, 0.0  ;;  %v9795_v0 = vld [vmem:[#allocation65_spill] sm:$0xff] }
 0x48e   : > { %3573 = vrot.lane.b32.xlu1 %v5829_v34, %s5909_s9  ;;  %4403 = vrot.lane.b32.xlu0 %v4327_v50, %s5909_s9  ;;  %v9792_v34 = vld [vmem:[#allocation34_spill] sm:$0xff] }
 0x48f   : > { %v4270_v18 = vpop.permute.xlu0 %4269  ;;  %v3420_v50 = vsub.f32 %v8539_v59, %v9792_v34 }
 0x490   : > { %v4246_v62 = vpop.permute.xlu1 %4245 }
 0x491   : > { %v4328_v27 = vsel %vm9773_vm5, %v4246_v62, 0.0  ;;  %v3612_v62 = vmul.f32 %v9793_v37, %v3420_v50  ;;  %v9815_v50 = vld [vmem:[#allocation71_spill] sm:$0xff]  ;;  %vm4649_vm5 = vcmask (!%p5249_p7), 0  }
 0x492   : > { %3575 = vrot.lane.b32.xlu1 %v5831_v13, %s5909_s9  ;;  %4405 = vrot.lane.b32.xlu0 %v4328_v27, %s5909_s9  ;;  %v9794_v13 = vld [vmem:[#allocation35_spill] sm:$0xff] }
 0x493   : > { %v3421_v27 = vsub.f32 %v8539_v59, %v9794_v13 }
 0x496   : > { %3577 = vrot.lane.b32.xlu1 %v5833_v26, %s5909_s9 }
 0x498   : > { %v4248_v9 = vpop.permute.xlu1 %4247 }
 0x499   : > { %v4329_v17 = vsel %vm9774_vm6, %v4248_v9, 0.0  ;;  %v3613_v9 = vmul.f32 %v9795_v0, %v3421_v27 }
 0x49a   : > { %4407 = vrot.lane.b32.xlu0 %v4329_v17, %s5909_s9  ;;  %v9796_v17 = vld [vmem:[#allocation36_spill] sm:$0xff] }
 0x49c   : > { %v4250_v20 = vpop.permute.xlu1 %4249 }
 0x49d   : > { %v4330_v24 = vsel %vm9775_vm8, %v4250_v20, 0.0  ;;  %v3422_v20 = vsub.f32 %v8539_v59, %v9796_v17 }
 0x49e   : > { %4409 = vrot.lane.b32.xlu0 %v4330_v24, %s5909_s9  ;;  %v3644_v24 = vsub.f32 1.0, %v3612_v62  ;;  %v9816_v62 = vld [vmem:[#allocation42_spill] sm:$0xff] }
 0x49f   : > { %v3428_v13 = vsub.f32 %v8539_v59, %v9816_v62 }
 0x4a3   : > { %v4274_v31 = vpop.permute.xlu0 %4273 }
 0x4a4   : > { %v4252_v45 = vpop.permute.xlu1 %4251 }
 0x4a5   : > { %v4331_v30 = vsel %vm9776_vm12, %v4252_v45, 0.0  ;;  %v9797_v45 = vld [vmem:[#allocation66_spill] sm:$0xff] }
 0x4a6   : > { %4411 = vrot.lane.b32.xlu0 %v4331_v30, %s5909_s9  ;;  %v3614_v30 = vmul.f32 %v9797_v45, %v3422_v20  ;;  %v9819_v45 = vld [vmem:[#allocation72_spill] sm:$0xff] }
 0x4a8   : > { %v4254_v14 = vpop.permute.xlu1 %4253 }
 0x4a9   : > { %v4332_v57 = vsel %vm9777_vm10, %v4254_v14, 0.0  ;;  %v9798_v14 = vld [vmem:[#allocation37_spill] sm:$0xff] }
 0x4aa   : > { %4413 = vrot.lane.b32.xlu0 %v4332_v57, %s5909_s9  ;;  %v3423_v57 = vsub.f32 %v8539_v59, %v9798_v14  ;;  %v9820_v14 = vld [vmem:[#allocation45_spill] sm:$0xff] }
 0x4b0   : > { %v4256_v43 = vpop.permute.xlu1 %4255 }
 0x4b1   : > { %v4333_v54 = vsel %vm9778_vm4, %v4256_v43, 0.0  ;;  %v3645_v43 = vsub.f32 1.0, %v3613_v9  ;;  %v9817_v9 = vld [vmem:[#allocation13_spill] sm:$0xff] }
 0x4b2   : > { %4415 = vrot.lane.b32.xlu0 %v4333_v54, %s5909_s9  ;;  %v9800_v54 = vld [vmem:[#allocation75_spill] sm:$0xff]  ;;  %v9818_v17 = vsub.f32 1.0, %v9817_v9  ;;  %v9835_v9 = vld [vmem:[#allocation24_spill] sm:$0xff] }
 0x4b4   : > { %v4258_v4 = vpop.permute.xlu1 %4257  ;;  %v4512_v20 = vmax.f32 %v9818_v17, 0.0  ;;  %v9836_v17 = vsub.f32 1.0, %v9835_v9  ;;  %v9851_v9 = vld [vmem:[#allocation52_spill] sm:$0xff] }
 0x4b5   : > { %v4334_v44 = vsel %vm9780_vm1, %v4258_v4, 0.0  ;;  %v9801_v4 = vld [vmem:[#allocation5_spill] sm:$0xff] }
 0x4b6   : > { %4417 = vrot.lane.b32.xlu0 %v4334_v44, %s5909_s9  ;;  %v9802_v29 = vsub.f32 1.0, %v9801_v4 }
 0x4b7   : > { %v4278_v7 = vpop.permute.xlu0 %4277 }
 0x4b8   : > { %v4260_v48 = vpop.permute.xlu1 %4259  ;;  %v4508_v8 = vmax.f32 %v9802_v29, 0.0 }
 0x4b9   : > { %v4335_v12 = vsel %vm3887_vm3, %v4260_v48, 0.0  ;;  %vm9788_vm3 = vcmp.gt.f32.partialorder %v9744_v19, 0.0  ;;  %v4344_v19 = vsel %vm9791_vm11, %v4278_v7, 0.0  ;;  %v3646_v48 = vsub.f32 1.0, %v3614_v30 }
 0x4ba   : > { %4419 = vrot.lane.b32.xlu0 %v4335_v12, %s5909_s9  ;;  %v9804_v12 = vld [vmem:[#allocation54_spill] sm:$0xff]  ;;  %v3620_v30 = vmul.f32 %v9819_v45, %v3428_v13 }
 0x4bc   : > { %v4262_v52 = vpop.permute.xlu1 %4261  ;;  %v4380_v41 = vpop.permute.xlu0 %4379 }
 0x4bd   : > { %v4336_v40 = vsel %vm9784_vm9, %v4262_v52, 0.0  ;;  %v4475_v25 = vsub.f32 %v3643_v11, %v4380_v41  ;;  %v9807_v41 = vld [vmem:[#allocation57_spill] sm:$0xff] }
 0x4be   : > { %4421 = vrot.lane.b32.xlu0 %v4336_v40, %s5909_s9  ;;  %v3617_v40 = vmul.f32 %v9807_v41, %v3425_v1  ;;  %v9827_v41 = vld [vmem:[#allocation79_spill] sm:$0xff] }
 0x4bf   : > { %v9188_v42 = vmul.f32 %v4507_v39, %v4475_v25  ;;  %v9806_v39 = vsub.f32 1.0, %v9805_v16  ;;  %v9808_v25 = vld [vmem:[#allocation40_spill] sm:$0xff]  ;;  %v9825_v16 = vld [vmem:[#allocation17_spill] sm:$0xff] }
 0x4c0   : > { %v4264_v22 = vpop.permute.xlu1 %4263  ;;  %v3649_v34 = vsub.f32 1.0, %v3617_v40 }
 0x4c1   : > { %v4337_v23 = vsel %vm3889_vm13, %v4264_v22, 0.0  ;;  %vm9787_vm13 = vcmp.gt.f32.partialorder %v8457_v56, 0.0  ;;  %v4509_v11 = vmax.f32 %v9806_v39, 0.0  ;;  %v3426_v22 = vsub.f32 %v8539_v59, %v9808_v25 }
 0x4c2   : > { %4423 = vrot.lane.b32.xlu0 %v4337_v23, %s5909_s9  ;;  %v4340_v21 = vsel %vm9787_vm13, %v4270_v18, 0.0  ;;  %v3424_v18 = vsub.f32 %v8539_v59, %v9799_v61  ;;  %v9826_v39 = vsub.f32 1.0, %v9825_v16 }
 0x4c4   : > { %v4268_v33 = vpop.permute.xlu1 %4267  ;;  %v3616_v5 = vmul.f32 %v9804_v12, %v3424_v18 }
 0x4c5   : > { %v4339_v3 = vsel %vm9786_vm14, %v4268_v33, 0.0  ;;  %v9809_v33 = vld [vmem:[#allocation9_spill] sm:$0xff] }
 0x4c6   : > { %4425 = vrot.lane.b32.xlu0 %v4338_v32, %s5909_s9 }
 0x4c7   : > { %v4280_v35 = vpop.permute.xlu0 %4279 }
 0x4c8   : > { %v4345_v28 = vsel %vm3897_vm2, %v4280_v35, 0.0  ;;  %v4272_v58 = vpop.permute.xlu1 %4271  ;;  %vm9789_vm2 = vcmp.gt.f32.partialorder %v9745_v46, 0.0  ;;  %v9810_v35 = vsub.f32 1.0, %v9809_v33 }
 0x4c9   : > { %4439 = vrot.lane.b32.xlu1 %v4345_v28, %s5909_s9  ;;  %v4341_v49 = vsel %vm9788_vm3, %v4272_v58, 0.0  ;;  %v4342_v6 = vsel %vm9789_vm2, %v4274_v31, 0.0  ;;  %v3615_v31 = vmul.f32 %v9800_v54, %v3423_v57  ;;  %v9812_v58 = vld [vmem:[#allocation41_spill] sm:$0xff]  ;;  %v9821_v57 = vld [vmem:[#allocation16_spill] sm:$0xff] }
 0x4ca   : > { %4427 = vrot.lane.b32.xlu0 %v4339_v3, %s5909_s9  ;;  %v4510_v28 = vmax.f32 %v9810_v35, 0.0  ;;  %v9822_v61 = vsub.f32 1.0, %v9821_v57  ;;  %v9829_v35 = vld [vmem:[#allocation20_spill] sm:$0xff] }
 0x4cb   : > { %v4282_v53 = vpop.permute.xlu0 %4281  ;;  %v3647_v23 = vsub.f32 1.0, %v3615_v31 }
 0x4cc   : > { %v4276_v60 = vpop.permute.xlu1 %4275  ;;  %v4346_v46 = vsel %vm3898_vm7, %v4282_v53, 0.0  ;;  %v9811_v53 = vld [vmem:[#allocation60_spill] sm:$0xff]  ;;  %vm4571_vm7 = vcmask 7168   ;;  %v4513_v18 = vmax.f32 %v9822_v61, 0.0 }
 0x4cd   : > { %v4343_v56 = vsel %vm9790_vm0, %v4276_v60, 0.0 }
 0x4ce   : > { %4429 = vrot.lane.b32.xlu0 %v4340_v21, %s5909_s9  ;;  %v3618_v21 = vmul.f32 %v9811_v53, %v3426_v22 }
 0x4cf   : > { %v4384_v51 = vpop.permute.xlu0 %4383 }
 0x4d0   : > { %v4382_v63 = vpop.permute.xlu1 %4381  ;;  %v4477_v52 = vsub.f32 %v3645_v43, %v4384_v51  ;;  %v4572_v43 = vsel %vm4571_vm7, %v9188_v42, 0.0 }
 0x4d1   : > { %v4476_v44 = vsub.f32 %v3644_v24, %v4382_v63  ;;  %v3650_v24 = vsub.f32 1.0, %v3618_v21 }
 0x4d2   : > { %4431 = vrot.lane.b32.xlu0 %v4341_v49, %s5909_s9  ;;  %v3427_v49 = vsub.f32 %v8539_v59, %v9812_v58  ;;  %v4541_v60 = vmul.f32 %v4509_v11, %v4477_v52  ;;  %v4514_v11 = vmax.f32 %v9826_v39, 0.0  ;;  %v3652_v52 = vsub.f32 1.0, %v3620_v30 }
 0x4d3   : > { %v4386_v10 = vpop.permute.xlu0 %4385  ;;  %v4540_v32 = vmul.f32 %v4508_v8, %v4476_v44  ;;  %v9823_v8 = vld [vmem:[#allocation78_spill] sm:$0xff] }
 0x4d4   : > { %v4478_v3 = vsub.f32 %v3646_v48, %v4386_v10  ;;  %v3619_v37 = vmul.f32 %v9815_v50, %v3427_v49  ;;  %v4575_v54 = vsel %vm4571_vm7, %v4541_v60, 0.0  ;;  %v9270_v48 = vpop.permute.xlu1 %3551 }
 0x4d5   : > { %v4573_v10 = vsel %vm4571_vm7, %v4540_v32, 0.0 }
 0x4d6   : > { %4433 = vrot.lane.b32.xlu0 %v4342_v6, %s5909_s9  ;;  %v3648_v6 = vsub.f32 1.0, %v3616_v5  ;;  %v4542_v0 = vmul.f32 %v4510_v28, %v4478_v3  ;;  %v3651_v29 = vsub.f32 1.0, %v3619_v37  ;;  %v4574_v1 = vadd.f32 %v4573_v10, %v4572_v43  ;;  %v9834_v37 = vld [vmem:[#allocation80_spill] sm:$0xff]  ;;  %v9839_v43 = vld [vmem:[#allocation49_spill] sm:$0xff] }
 0x4d7   : > { %v4388_v55 = vpop.permute.xlu0 %4387  ;;  %v9830_v28 = vsub.f32 1.0, %v9829_v35 }
 0x4d8   : > { %v4577_v12 = vsel %vm4571_vm7, %v4542_v0, 0.0  ;;  %v4576_v22 = vadd.f32 %v4575_v54, %v4574_v1  ;;  %v9289_v13 = vpop.permute.xlu1 %3553  ;;  %v3433_v54 = vsub.f32 %v8539_v59, %v9839_v43  ;;  %v9842_v1 = vld [vmem:[#allocation81_spill] sm:$0xff] }
 0x4d9   : > { %v4515_v3 = vmax.f32 %v9830_v28, 0.0  ;;  %v9846_v28 = vld [vmem:[#allocation82_spill] sm:$0xff] }
 0x4da   : > { %4435 = vrot.lane.b32.xlu0 %v4343_v56, %s5909_s9  ;;  %v9813_v56 = vld [vmem:[#allocation12_spill] sm:$0xff] }
 0x4db   : > { %v4390_v47 = vpop.permute.xlu0 %4389  ;;  %v9814_v51 = vsub.f32 1.0, %v9813_v56 }
 0x4dc   : > { %v4480_v63 = vsub.f32 %v3648_v6, %v4390_v47  ;;  %v9824_v47 = vld [vmem:[#allocation44_spill] sm:$0xff]  ;;  %v4578_v6 = vadd.f32 %v4577_v12, %v4576_v22  ;;  %v3625_v12 = vmul.f32 %v9842_v1, %v3433_v54  ;;  %v9854_v54 = vld [vmem:[#allocation2_spill] sm:$0xff] }
 0x4dd   : > { %v3430_v36 = vsub.f32 %v8539_v59, %v9824_v47 }
 0x4de   : > { %4437 = vrot.lane.b32.xlu0 %v4344_v19, %s5909_s9  ;;  %v4511_v19 = vmax.f32 %v9814_v51, 0.0  ;;  %v4544_v5 = vmul.f32 %v4512_v20, %v4480_v63  ;;  %v9832_v51 = vld [vmem:[#allocation21_spill] sm:$0xff]  ;;  %v4517_v20 = vmax.f32 %v9836_v17, 0.0  ;;  %v3435_v17 = vsub.f32 %v8539_v59, %v9851_v9 }
 0x4df   : > { %v4392_v38 = vpop.permute.xlu0 %4391  ;;  %v3622_v40 = vmul.f32 %v9827_v41, %v3430_v36 }
 0x4e0   : > { %v4481_v4 = vsub.f32 %v3649_v34, %v4392_v38  ;;  %v9828_v38 = vld [vmem:[#allocation46_spill] sm:$0xff]  ;;  %v4581_v60 = vsel %vm4571_vm7, %v4544_v5, 0.0  ;;  %v9303_v5 = vpop.permute.xlu1 %3555 }
 0x4e1   : > { %v3431_v25 = vsub.f32 %v8539_v59, %v9828_v38  ;;  %v3654_v50 = vsub.f32 1.0, %v3622_v40 }
 0x4e2   : > { %4441 = vrot.lane.b32.xlu0 %v4346_v46, %s5909_s9  ;;  %v4479_v46 = vsub.f32 %v3647_v23, %v4388_v55  ;;  %v3429_v55 = vsub.f32 %v8539_v59, %v9820_v14  ;;  %v4545_v33 = vmul.f32 %v4513_v18, %v4481_v4 }
 0x4e3   : > { %v4394_v2 = vpop.permute.xlu0 %4393  ;;  %v3623_v58 = vmul.f32 %v8994_v15, %v3431_v25  ;;  %v9845_v25 = vld [vmem:[#allocation50_spill] sm:$0xff] }
 0x4e4   : > { %v4543_v31 = vmul.f32 %v4511_v19, %v4479_v46  ;;  %v3621_v44 = vmul.f32 %v9823_v8, %v3429_v55  ;;  %v4482_v42 = vsub.f32 %v3650_v24, %v4394_v2  ;;  %v9831_v2 = vld [vmem:[#allocation48_spill] sm:$0xff]  ;;  %v9833_v19 = vsub.f32 1.0, %v9832_v51 }
 0x4e5   : > { %v3432_v49 = vsub.f32 %v8539_v59, %v9831_v2  ;;  %v4583_v15 = vsel %vm4571_vm7, %v4545_v33, 0.0  ;;  %v3655_v24 = vsub.f32 1.0, %v3623_v58  ;;  %v3434_v22 = vsub.f32 %v8539_v59, %v9845_v25  ;;  %v9847_v58 = vld [vmem:[#allocation32_spill] sm:$0xff] }
 0x4e6   : > { %v4579_v32 = vsel %vm4571_vm7, %v4543_v31, 0.0  ;;  %v3653_v21 = vsub.f32 1.0, %v3621_v44  ;;  %v4546_v56 = vmul.f32 %v4514_v11, %v4482_v42  ;;  %v4516_v46 = vmax.f32 %v9833_v19, 0.0  ;;  %v9840_v44 = vld [vmem:[#allocation28_spill] sm:$0xff]  ;;  %v9843_v42 = vld [vmem:[#allocation29_spill] sm:$0xff] }
 0x4e7   : > { %v3624_v62 = vmul.f32 %v9834_v37, %v3432_v49  ;;  %v3657_v33 = vsub.f32 1.0, %v3625_v12  ;;  %v9848_v2 = vsub.f32 1.0, %v9847_v58  ;;  %v9861_v58 = vld [vmem:[#allocation6_spill] sm:$0xff] }
 0x4e8   : > { %v9225_v26 = vpop.permute.xlu0 %4395  ;;  %v4585_v30 = vsel %vm4571_vm7, %v4546_v56, 0.0 }
 0x4e9   : > { %v4483_v53 = vsub.f32 %v3651_v29, %v9225_v26  ;;  %v4580_v26 = vadd.f32 %v4579_v32, %v4578_v6  ;;  %v3656_v18 = vsub.f32 1.0, %v3624_v62  ;;  %v4521_v49 = vmax.f32 %v9848_v2, 0.0  ;;  %v3558_v6 = vpop.permute.xlu1 %3557  ;;  %v9849_v62 = vld [vmem:[#allocation33_spill] sm:$0xff] }
 0x4ea   : > { %v9862_v2 = vsub.f32 1.0, %v9861_v58 }
 0x4eb   : > { %v4547_v0 = vmul.f32 %v4515_v3, %v4483_v53  ;;  %v4582_v45 = vadd.f32 %v4581_v60, %v4580_v26  ;;  %v3626_v3 = vmul.f32 %v9846_v28, %v3434_v22  ;;  %v9850_v26 = vsub.f32 1.0, %v9849_v62 }
 0x4ec   : > { %v4398_v7 = vpop.permute.xlu0 %4397 }
 0x4ed   : > { %v4484_v34 = vsub.f32 %v3652_v52, %v4398_v7  ;;  %v9837_v7 = vld [vmem:[#allocation25_spill] sm:$0xff]  ;;  %v4584_v31 = vadd.f32 %v4583_v15, %v4582_v45  ;;  %v4587_v29 = vsel %vm4571_vm7, %v4547_v0, 0.0  ;;  %v9844_v52 = vsub.f32 1.0, %v9843_v42 }
 0x4ee   : > { %v9838_v55 = vsub.f32 1.0, %v9837_v7 }
 0x4ef   : > { %v4548_v14 = vmul.f32 %v4516_v46, %v4484_v34  ;;  %v4586_v16 = vadd.f32 %v4585_v30, %v4584_v31  ;;  %v4520_v41 = vmax.f32 %v9844_v52, 0.0  ;;  %v3658_v34 = vsub.f32 1.0, %v3626_v3  ;;  %v9852_v30 = vld [vmem:[#allocation83_spill] sm:$0xff] }
 0x4f0   : > { %v4518_v57 = vmax.f32 %v9838_v55, 0.0  ;;  %v9855_v31 = vsub.f32 1.0, %v9854_v54  ;;  %v9859_v52 = vld [vmem:[#allocation55_spill] sm:$0xff] }
 0x4f1   : > { %v4589_v39 = vsel %vm4571_vm7, %v4548_v14, 0.0  ;;  %v4588_v38 = vadd.f32 %v4587_v29, %v4586_v16  ;;  %v3627_v14 = vmul.f32 %v9852_v30, %v3435_v17  ;;  %v9857_v16 = vld [vmem:[#allocation4_spill] sm:$0xff]  ;;  %v9867_v17 = vld [vmem:[#allocation10_spill] sm:$0xff] }
 0x4f3   : > { %v4590_v35 = vadd.f32 %v4589_v39, %v4588_v38  ;;  %v3659_v29 = vsub.f32 1.0, %v3627_v14  ;;  %v9858_v39 = vsub.f32 1.0, %v9857_v16 }
 0x4f4   : > { %v4400_v27 = vpop.permute.xlu0 %4399 }
 0x4f5   : > { %v4485_v63 = vsub.f32 %v3653_v21, %v4400_v27  ;;  %v9841_v27 = vsub.f32 1.0, %v9840_v44 }
 0x4f7   : > { %v4549_v8 = vmul.f32 %v4517_v20, %v4485_v63  ;;  %v4519_v47 = vmax.f32 %v9841_v27, 0.0 }
 0x4f8   : > { %v4402_v23 = vpop.permute.xlu0 %4401 }
 0x4f9   : > { %v4486_v61 = vsub.f32 %v3654_v50, %v4402_v23  ;;  %v4591_v23 = vsel %vm4571_vm7, %v4549_v8, 0.0  ;;  %v9856_v8 = vld [vmem:[#allocation84_spill] sm:$0xff] }
 0x4fa   : > { %v4592_v60 = vadd.f32 %v4591_v23, %v4590_v35 }
 0x4fb   : > { %v4550_v11 = vmul.f32 %v4518_v57, %v4486_v61  ;;  %v9853_v57 = vld [vmem:[#allocation53_spill] sm:$0xff] }
 0x4fc   : > { %v3436_v61 = vsub.f32 %v8539_v59, %v9853_v57 }
 0x4fd   : > { %v4593_v53 = vsel %vm4571_vm7, %v4550_v11, 0.0  ;;  %v4524_v11 = vmax.f32 %v9858_v39, 0.0 }
 0x4fe   : > { %v4594_v46 = vadd.f32 %v4593_v53, %v4592_v60  ;;  %v3628_v44 = vmul.f32 %v9856_v8, %v3436_v61 }
 0x500   : > { %v4404_v10 = vpop.permute.xlu0 %4403  ;;  %v3660_v1 = vsub.f32 1.0, %v3628_v44 }
 0x501   : > { %v4487_v36 = vsub.f32 %v3655_v24, %v4404_v10  ;;  %v4522_v10 = vmax.f32 %v9850_v26, 0.0  ;;  %v3560_v24 = vpop.permute.xlu1 %3559 }
 0x503   : > { %v4551_v32 = vmul.f32 %v4519_v47, %v4487_v36 }
 0x504   : > { %v4406_v4 = vpop.permute.xlu0 %4405 }
 0x505   : > { %v4488_v40 = vsub.f32 %v3656_v18, %v4406_v4  ;;  %v4595_v51 = vsel %vm4571_vm7, %v4551_v32, 0.0  ;;  %v4523_v4 = vmax.f32 %v9855_v31, 0.0  ;;  %v3562_v27 = vpop.permute.xlu1 %3561 }
 0x506   : > { %v4596_v15 = vadd.f32 %v4595_v51, %v4594_v46  ;;  %v9863_v51 = vld [vmem:[#allocation58_spill] sm:$0xff] }
 0x507   : > { %v4552_v21 = vmul.f32 %v4520_v41, %v4488_v40  ;;  %v3437_v41 = vsub.f32 %v8539_v59, %v9859_v52 }
 0x509   : > { %v4597_v50 = vsel %vm4571_vm7, %v4552_v21, 0.0  ;;  %v3564_v25 = vpop.permute.xlu1 %3563  ;;  %v3629_v23 = vmul.f32 %v9270_v48, %v3437_v41 }
 0x50a   : > { %v4598_v45 = vadd.f32 %v4597_v50, %v4596_v15  ;;  %v9866_v15 = vld [vmem:[#allocation59_spill] sm:$0xff] }
 0x50b   : > { %v3661_v53 = vsub.f32 1.0, %v3629_v23  ;;  %v9875_v23 = vld [vmem:[#allocation63_spill] sm:$0xff] }
 0x50c   : > { %v4408_v56 = vpop.permute.xlu0 %4407 }
 0x50d   : > { %v4489_v19 = vsub.f32 %v3657_v33, %v4408_v56  ;;  %v9860_v33 = vld [vmem:[#allocation56_spill] sm:$0xff]  ;;  %v3566_v60 = vpop.permute.xlu1 %3565 }
 0x50e   : > { %v3438_v35 = vsub.f32 %v8539_v59, %v9860_v33 }
 0x50f   : > { %v4553_v37 = vmul.f32 %v4521_v49, %v4489_v19  ;;  %v4525_v49 = vmax.f32 %v9862_v2, 0.0  ;;  %v3439_v19 = vsub.f32 %v8539_v59, %v9863_v51  ;;  %v9876_v2 = vld [vmem:[#allocation15_spill] sm:$0xff]  ;;  %v9878_v51 = vld [vmem:[#allocation64_spill] sm:$0xff] }
 0x510   : > { %v4410_v0 = vpop.permute.xlu0 %4409  ;;  %v3630_v21 = vmul.f32 %v9289_v13, %v3438_v35  ;;  %v3440_v13 = vsub.f32 %v8539_v59, %v9866_v15 }
 0x511   : > { %v4599_v20 = vsel %vm4571_vm7, %v4553_v37, 0.0  ;;  %v4490_v63 = vsub.f32 %v3658_v34, %v4410_v0  ;;  %v3631_v34 = vmul.f32 %v9303_v5, %v3439_v19  ;;  %v9864_v37 = vld [vmem:[#allocation7_spill] sm:$0xff]  ;;  %v3568_v9 = vpop.permute.xlu1 %3567  ;;  %v9869_v5 = vld [vmem:[#allocation61_spill] sm:$0xff]  ;;  %v3444_v19 = vsub.f32 %v8539_v59, %v9878_v51  ;;  %v9892_v51 = vld [vmem:[#allocation26_spill] sm:$0xff] }
 0x512   : > { %v4600_v55 = vadd.f32 %v4599_v20, %v4598_v45  ;;  %v3662_v48 = vsub.f32 1.0, %v3630_v21  ;;  %v9865_v62 = vsub.f32 1.0, %v9864_v37  ;;  %v9868_v20 = vsub.f32 1.0, %v9867_v17 }
 0x513   : > { %v4554_v7 = vmul.f32 %v4522_v10, %v4490_v63  ;;  %v3663_v45 = vsub.f32 1.0, %v3631_v34  ;;  %v3632_v30 = vmul.f32 %v3558_v6, %v3440_v13  ;;  %v3441_v57 = vsub.f32 %v8539_v59, %v9869_v5 }
 0x514   : > { %v4526_v26 = vmax.f32 %v9865_v62, 0.0  ;;  %v4527_v63 = vmax.f32 %v9868_v20, 0.0  ;;  %v3636_v37 = vmul.f32 %v3566_v60, %v3444_v19  ;;  %v9893_v19 = vsub.f32 1.0, %v9892_v51 }
 0x515   : > { %v4601_v18 = vsel %vm4571_vm7, %v4554_v7, 0.0  ;;  %v3664_v54 = vsub.f32 1.0, %v3632_v30  ;;  %v3633_v31 = vmul.f32 %v3560_v24, %v3441_v57 }
 0x516   : > { %v4602_v43 = vadd.f32 %v4601_v18, %v4600_v55  ;;  %v3668_v30 = vsub.f32 1.0, %v3636_v37 }
 0x518   : > { %v4412_v47 = vpop.permute.xlu0 %4411 }
 0x519   : > { %v4491_v36 = vsub.f32 %v3659_v29, %v4412_v47  ;;  %v9870_v29 = vld [vmem:[#allocation11_spill] sm:$0xff]  ;;  %v3570_v47 = vpop.permute.xlu1 %3569 }
 0x51a   : > { %v9871_v8 = vsub.f32 1.0, %v9870_v29 }
 0x51b   : > { %v4555_v12 = vmul.f32 %v4523_v4, %v4491_v36 }
 0x51c   : > { %v4414_v42 = vpop.permute.xlu0 %4413  ;;  %v4528_v44 = vmax.f32 %v9871_v8, 0.0 }
 0x51d   : > { %v4603_v40 = vsel %vm4571_vm7, %v4555_v12, 0.0  ;;  %v4492_v38 = vsub.f32 %v3660_v1, %v4414_v42  ;;  %v9872_v1 = vld [vmem:[#allocation62_spill] sm:$0xff]  ;;  %v3665_v42 = vsub.f32 1.0, %v3633_v31 }
 0x51e   : > { %v4604_v22 = vadd.f32 %v4603_v40, %v4602_v43  ;;  %v3442_v12 = vsub.f32 %v8539_v59, %v9872_v1  ;;  %v9873_v40 = vld [vmem:[#allocation14_spill] sm:$0xff] }
 0x51f   : > { %v4556_v32 = vmul.f32 %v4524_v11, %v4492_v38  ;;  %v9874_v38 = vsub.f32 1.0, %v9873_v40 }
 0x520   : > { %v3634_v52 = vmul.f32 %v3562_v27, %v3442_v12  ;;  %v9887_v12 = vld [vmem:[#allocation73_spill] sm:$0xff] }
 0x521   : > { %v4605_v28 = vsel %vm4571_vm7, %v4556_v32, 0.0  ;;  %v4529_v24 = vmax.f32 %v9874_v38, 0.0  ;;  %v3443_v32 = vsub.f32 %v8539_v59, %v9875_v23 }
 0x522   : > { %v4606_v3 = vadd.f32 %v4605_v28, %v4604_v22  ;;  %v3572_v28 = vpop.permute.xlu1 %3571 }
 0x523   : > { %v3635_v21 = vmul.f32 %v3564_v25, %v3443_v32 }
 0x524   : > { %v4416_v56 = vpop.permute.xlu0 %4415 }
 0x525   : > { %v4493_v46 = vsub.f32 %v3661_v53, %v4416_v56  ;;  %v3666_v53 = vsub.f32 1.0, %v3634_v52 }
 0x526   : > { %v3574_v13 = vpop.permute.xlu1 %3573 }
 0x527   : > { %v4557_v50 = vmul.f32 %v4525_v49, %v4493_v46  ;;  %v9877_v49 = vsub.f32 1.0, %v9876_v2 }
 0x528   : > { %v4418_v10 = vpop.permute.xlu0 %4417 }
 0x529   : > { %v4494_v0 = vsub.f32 %v3662_v48, %v4418_v10  ;;  %v4607_v14 = vsel %vm4571_vm7, %v4557_v50, 0.0  ;;  %v4530_v56 = vmax.f32 %v9877_v49, 0.0  ;;  %v3667_v50 = vsub.f32 1.0, %v3635_v21 }
 0x52a   : > { %v4608_v43 = vadd.f32 %v4607_v14, %v4606_v3  ;;  %v3576_v31 = vpop.permute.xlu1 %3575 }
 0x52b   : > { %v4558_v7 = vmul.f32 %v4526_v26, %v4494_v0  ;;  %v9879_v26 = vld [vmem:[#allocation18_spill] sm:$0xff]  ;;  %v9881_v0 = vld [vmem:[#allocation67_spill] sm:$0xff] }
 0x52c   : > { %v4420_v55 = vpop.permute.xlu0 %4419  ;;  %v9880_v10 = vsub.f32 1.0, %v9879_v26  ;;  %v3445_v17 = vsub.f32 %v8539_v59, %v9881_v0 }
 0x52d   : > { %v4609_v61 = vsel %vm4571_vm7, %v4558_v7, 0.0  ;;  %v4495_v18 = vsub.f32 %v3663_v45, %v4420_v55  ;;  %v9882_v55 = vld [vmem:[#allocation19_spill] sm:$0xff] }
 0x52e   : > { %v4610_v36 = vadd.f32 %v4609_v61, %v4608_v43  ;;  %v4531_v15 = vmax.f32 %v9880_v10, 0.0  ;;  %v3637_v14 = vmul.f32 %v3568_v9, %v3445_v17  ;;  %v9883_v5 = vsub.f32 1.0, %v9882_v55  ;;  %v9884_v61 = vld [vmem:[#allocation68_spill] sm:$0xff]  ;;  %v3578_v32 = vpop.permute.xlu1 %3577  ;;  %v9895_v10 = vld [vmem:[#allocation30_spill] sm:$0xff]  ;;  %v9897_v17 = vld [vmem:[#allocation27_spill] sm:$0xff] }
 0x52f   : > { %v4559_v4 = vmul.f32 %v4527_v63, %v4495_v18  ;;  %v3446_v18 = vsub.f32 %v8539_v59, %v9884_v61 }
 0x530   : > { %v4422_v6 = vpop.permute.xlu0 %4421  ;;  %v4532_v57 = vmax.f32 %v9883_v5, 0.0  ;;  %v3669_v29 = vsub.f32 1.0, %v3637_v14 }
 0x531   : > { %v4611_v16 = vsel %vm4571_vm7, %v4559_v4, 0.0  ;;  %v4496_v39 = vsub.f32 %v3664_v54, %v4422_v6  ;;  %v3638_v8 = vmul.f32 %v3570_v47, %v3446_v18  ;;  %v9899_v18 = vld [vmem:[#allocation31_spill] sm:$0xff] }
 0x532   : > { %v4612_v11 = vadd.f32 %v4611_v16, %v4610_v36  ;;  %v9885_v36 = vld [vmem:[#allocation22_spill] sm:$0xff]  ;;  %v3447_v16 = vsub.f32 %v8539_v59, %v9887_v12 }
 0x533   : > { %v4560_v41 = vmul.f32 %v4528_v44, %v4496_v39  ;;  %v9886_v6 = vsub.f32 1.0, %v9885_v36  ;;  %v3670_v40 = vsub.f32 1.0, %v3638_v8 }
 0x534   : > { %v4424_v22 = vpop.permute.xlu0 %4423  ;;  %v3639_v38 = vmul.f32 %v3572_v28, %v3447_v16  ;;  %v4535_v28 = vmax.f32 %v9893_v19, 0.0 }
 0x535   : > { %v4613_v33 = vsel %vm4571_vm7, %v4560_v41, 0.0  ;;  %v4497_v35 = vsub.f32 %v3665_v42, %v4424_v22  ;;  %v4533_v1 = vmax.f32 %v9886_v6, 0.0  ;;  %v9888_v42 = vld [vmem:[#allocation76_spill] sm:$0xff]  ;;  %v9889_v22 = vld [vmem:[#allocation23_spill] sm:$0xff] }
 0x536   : > { %v4614_v3 = vadd.f32 %v4613_v33, %v4612_v11  ;;  %v3449_v52 = vsub.f32 %v8539_v59, %v9888_v42  ;;  %v9890_v47 = vsub.f32 1.0, %v9889_v22  ;;  %v3671_v49 = vsub.f32 1.0, %v3639_v38 }
 0x537   : > { %v4561_v58 = vmul.f32 %v4529_v24, %v4497_v35  ;;  %v9891_v35 = vld [vmem:[#allocation74_spill] sm:$0xff]  ;;  %v5910_v38 = vmov (!%p5249_p7), 0.0  }
 0x538   : > { %v4426_v27 = vpop.permute.xlu0 %4425  ;;  %v4534_v23 = vmax.f32 %v9890_v47, 0.0  ;;  %4650 = vst.msk [vmem:[%s5981_s29] sm:$0x1] (!%p5249_p7), %vm4649_vm5, %v5910_v38 }
 0x539   : > { %v4615_v46 = vsel %vm4571_vm7, %v4561_v58, 0.0  ;;  %v4498_v48 = vsub.f32 %v3666_v53, %v4426_v27  ;;  %v3641_v53 = vmul.f32 %v3576_v31, %v3449_v52 }
 0x53a   : > { %v4616_v34 = vadd.f32 %v4615_v46, %v4614_v3  ;;  %v3448_v3 = vsub.f32 %v8539_v59, %v9891_v35 }
 0x53b   : > { %v4562_v62 = vmul.f32 %v4530_v56, %v4498_v48  ;;  %v4440_v46 = vpop.permute.xlu1 %4439 }
 0x53c   : > { %v4428_v25 = vpop.permute.xlu0 %4427  ;;  %v3640_v56 = vmul.f32 %v3574_v13, %v3448_v3 }
 0x53d   : > { %v4617_v20 = vsel %vm4571_vm7, %v4562_v62, 0.0  ;;  %v4499_v63 = vsub.f32 %v3667_v50, %v4428_v25  ;;  %v9894_v50 = vld [vmem:[#allocation77_spill] sm:$0xff] }
 0x53e   : > { %v4618_v45 = vadd.f32 %v4617_v20, %v4616_v34  ;;  %v3673_v34 = vsub.f32 1.0, %v3641_v53  ;;  %v3450_v37 = vsub.f32 %v8539_v59, %v9894_v50  ;;  %v9898_v20 = vsub.f32 1.0, %v9897_v17 }
 0x53f   : > { %v4563_v7 = vmul.f32 %v4531_v15, %v4499_v63  ;;  %v9896_v15 = vsub.f32 1.0, %v9895_v10  ;;  %v3672_v63 = vsub.f32 1.0, %v3640_v56 }
 0x540   : > { %v4430_v60 = vpop.permute.xlu0 %4429  ;;  %v4536_v13 = vmax.f32 %v9898_v20, 0.0 }
 0x541   : > { %v4619_v43 = vsel %vm4571_vm7, %v4563_v7, 0.0  ;;  %v4500_v54 = vsub.f32 %v3668_v30, %v4430_v60  ;;  %v4537_v25 = vmax.f32 %v9896_v15, 0.0  ;;  %v4505_v30 = vsub.f32 %v3673_v34, %v4440_v46 }
 0x542   : > { %v4620_v4 = vadd.f32 %v4619_v43, %v4618_v45  ;;  %v3642_v45 = vmul.f32 %v3578_v32, %v3450_v37  ;;  %v9900_v43 = vsub.f32 1.0, %v9899_v18 }
 0x543   : > { %v4564_v44 = vmul.f32 %v4532_v57, %v4500_v54  ;;  %v4569_v60 = vmul.f32 %v4537_v25, %v4505_v30 }
 0x544   : > { %v4432_v9 = vpop.permute.xlu0 %4431  ;;  %v3674_v59 = vsub.f32 1.0, %v3642_v45  ;;  %v4538_v54 = vmax.f32 %v9900_v43, 0.0 }
 0x545   : > { %v4621_v39 = vsel %vm4571_vm7, %v4564_v44, 0.0  ;;  %v4501_v11 = vsub.f32 %v3669_v29, %v4432_v9  ;;  %v4631_v44 = vsel %vm4571_vm7, %v4569_v60, 0.0 }
 0x546   : > { %v4622_v41 = vadd.f32 %v4621_v39, %v4620_v4 }
 0x547   : > { %v4565_v24 = vmul.f32 %v4533_v1, %v4501_v11 }
 0x548   : > { %v4434_v33 = vpop.permute.xlu0 %4433 }
 0x549   : > { %v4623_v21 = vsel %vm4571_vm7, %v4565_v24, 0.0  ;;  %v4502_v58 = vsub.f32 %v3670_v40, %v4434_v33 }
 0x54a   : > { %v4624_v2 = vadd.f32 %v4623_v21, %v4622_v41 }
 0x54b   : > { %v4566_v27 = vmul.f32 %v4534_v23, %v4502_v58 }
 0x54c   : > { %v4436_v48 = vpop.permute.xlu0 %4435 }
 0x54d   : > { %v4625_v62 = vsel %vm4571_vm7, %v4566_v27, 0.0  ;;  %v4503_v26 = vsub.f32 %v3671_v49, %v4436_v48 }
 0x54e   : > { %v4626_v0 = vadd.f32 %v4625_v62, %v4624_v2 }
 0x54f   : > { %v4567_v14 = vmul.f32 %v4535_v28, %v4503_v26 }
 0x550   : > { %v4438_v7 = vpop.permute.xlu0 %4437 }
 0x551   : > { %v4627_v55 = vsel %vm4571_vm7, %v4567_v14, 0.0  ;;  %v4504_v5 = vsub.f32 %v3672_v63, %v4438_v7 }
 0x552   : > { %v4628_v57 = vadd.f32 %v4627_v55, %v4626_v0 }
 0x553   : > { %v4568_v61 = vmul.f32 %v4536_v13, %v4504_v5 }
 0x554   : > { %v4442_v31 = vpop.permute.xlu0 %4441 }
 0x555   : > { %v4629_v4 = vsel %vm4571_vm7, %v4568_v61, 0.0  ;;  %v4506_v29 = vsub.f32 %v3674_v59, %v4442_v31 }
 0x556   : > { %v4630_v8 = vadd.f32 %v4629_v4, %v4628_v57 }
 0x557   : > { %v4570_v36 = vmul.f32 %v4538_v54, %v4506_v29 }
 0x558   : > { %v4632_v6 = vadd.f32 %v4631_v44, %v4630_v8 }
 0x559   : > { %v4633_v1 = vsel %vm4571_vm7, %v4570_v36, 0.0 }
 0x55a   : > { %v4634_v9 = vadd.f32 %v4633_v1, %v4632_v6 }
 0x55c   : > { %4635 = vadd.xlane.f32.xlu1 %v4634_v9 }
 0x5e9   : > { %v4636_v12 = vpop.xlane.xlu1 %4635 }
 0x5ea   : > { %v4637_v16 = vrot.slane %v4636_v12, 4 }
 0x5ec   : > { %v4638_v39 = vadd.f32 %v4637_v16, %v4636_v12 }
 0x5ee   : > { %v4639_v11 = vrot.slane %v4638_v39, 2 }
 0x5f0   : > { %v4640_v42 = vadd.f32 %v4639_v11, %v4638_v39 }
 0x5f2   : > { %v4641_v52 = vrot.slane %v4640_v42, 1 }
 0x5f4   : > { %v4642_v41 = vadd.f32 %v4641_v52, %v4640_v42 }
 0x5f6   : > { %5609 = vpush %v4642_v41 }
 0x622   : > { %4648 = sbr.rel (%p5249_p7) target bundleno = 1577 (0x629), region = 44 }
 0x627   : > { %s5610_s10 = spop %5609 }
 0x628   : > { %v4644_v40 = vstv %s5610_s10 }
 0x629 PF: > { %v4651_v24 = vld [vmem:[%s5981_s29] sm:$0x1]  ;;  %vm4653_vm6 = vcmask 0  }
 0x62a   : > { %v4652_v22 = vadd.f32 %v4651_v24, %v4644_v40 }
 0x62c   : > { %4654 = vst.msk [vmem:[%s5981_s29] sm:$0x1] %vm4653_vm6, %v4652_v22 }
 0x62d PF: > { %s15_s22 = sadd.s32 1, %s5904_s22   ;;  %s9901_s18 = smov %s5896_s20 }
 0x62e   : > { %p12_p8 = scmp.ge.s32.totalorder %s15_s22, 8   ;;  %s9902_s19 = smov %s5900_s21 }
 0x62f   : > { %s9903_s20 = smov %s9906_s23  ;;  %s9904_s21 = smov %s9910_s24 }
 0x630   :  { %14 = sbr.rel (!%p12_p8) target bundleno = 3 (0x3), region = 86 }

</bundles_post_ra>
